<compile_context>
chip_gen: v7x
topology: tpu7x:2x2x1
jax: 0.10.0
libtpu: 0.0.40
codegen_flags: <defaults>
</compile_context>

<pallas_src>
import functools
import math

import jax
import jax.numpy as jnp
from jax.experimental import pallas as pl
from jax.experimental.pallas import tpu as pltpu


def _spatial_attention_kernel(w_ref, rmask_ref, cmask_ref, x_ref, o_ref,
                              sum_ref, max_ref, *, k, W, HW, bn):
    """Grid = (batch chunk ["parallel"], channel chunk ["arbitrary"])."""
    c = pl.program_id(1)
    nc = pl.num_programs(1)
    p = k // 2
    kk = k * k

    x = x_ref[...]                                         # (bn, ct, HW)
    # Channel reduction for this C chunk.  1/C (for the mean) is folded into
    # the avg-branch conv weights, so a plain sum is enough.  Accumulate in
    # f32 without materializing a named full-block f32 copy of x.
    chunk_sum = jnp.sum(x, axis=1, dtype=jnp.float32)      # (bn, HW)
    chunk_max = jnp.max(x, axis=1).astype(jnp.float32)     # (bn, HW)

    @pl.when(c == 0)
    def _():
        sum_ref[...] = chunk_sum
        max_ref[...] = chunk_max

    @pl.when(c > 0)
    def _():
        sum_ref[...] = sum_ref[...] + chunk_sum
        max_ref[...] = jnp.maximum(max_ref[...], chunk_max)

    @pl.when(c == nc - 1)
    def _():
        # Stack the two reduced feature maps along sublanes so each conv tap
        # needs a single lane rotation (XLU) instead of two.
        feats = jnp.concatenate([sum_ref[...], max_ref[...]], axis=0)  # (2*bn, HW)

        acc = jnp.zeros((bn, HW), dtype=jnp.float32)
        for i in range(k):                                  # k is a small constant
            rmask = rmask_ref[pl.ds(i, 1), :]               # (1, HW) row validity
            row_acc = jnp.zeros((bn, HW), dtype=jnp.float32)
            for j in range(k):
                cmask = cmask_ref[pl.ds(j, 1), :]           # (1, HW) col validity
                # Conv tap (i, j): output position q reads
                # feat[q + (i-p)*W + (j-p)]; lane roll + masks reproduce the
                # Conv2d zero padding and kill the roll wrap-around.
                shift = (-((i - p) * W + (j - p))) % HW
                rolled = pltpu.roll(feats, shift, axis=1)   # ONE roll per tap
                tap = (w_ref[i * k + j] * rolled[:bn, :]
                       + w_ref[kk + i * k + j] * rolled[bn:, :])
                row_acc = row_acc + tap * cmask
            acc = acc + row_acc * rmask                     # row mask hoisted out of j

        o_ref[...] = jax.nn.sigmoid(acc).astype(o_ref.dtype)


def _pick_c_tile(C, max_ct):
    """Largest C tile that divides C, is layout-friendly (mult of 8), and fits."""
    if C <= max_ct:
        return C
    divs = [d for d in range(8, C, 8) if C % d == 0]
    fits = [d for d in divs if d <= max_ct]
    if fits:
        return max(fits)
    if divs:
        return min(divs)        # over budget, but the smallest legal exact tile
    # TODO(synk): mask trailing channels in-kernel to support arbitrary C tiles.
    return C


def spatial_attention_pallas(x, weight, *, x_block_budget_bytes=20 * 1024 * 1024):
    """x: (N, C, H, W); weight: (1, 2, k, k) Conv2d weight. Returns (N, 1, H, W)."""
    N, C, H, W = x.shape
    assert weight.shape[:2] == (1, 2), f"expected Conv2d(2,1,k) weight, got {weight.shape}"
    k = weight.shape[-1]
    assert weight.shape[-2] == k
    assert k % 2 == 1, "kernel_size must be odd to match PyTorch padding=k//2"
    p = k // 2
    HW = H * W

    x2 = x.reshape(N, C, HW)                                   # free, contiguous

    # Fold 1/C (channel mean) into the avg branch; flatten to 1-D f32 for SMEM.
    w = weight.reshape(2, k, k).astype(jnp.float32)
    w = jnp.concatenate([w[:1] / float(C), w[1:]], axis=0)
    w_flat = w.reshape(2 * k * k)

    # Row / column validity masks for the flattened-spatial conv taps.
    pos = jnp.arange(HW, dtype=jnp.int32)
    row, col = pos // W, pos % W
    delta = jnp.arange(k, dtype=jnp.int32)[:, None] - p        # (k, 1)
    rmask = ((row[None, :] + delta >= 0) & (row[None, :] + delta < H)).astype(jnp.float32)
    cmask = ((col[None, :] + delta >= 0) & (col[None, :] + delta < W)).astype(jnp.float32)

    # ---- block sizing (honest: x2 double buffering, sublane-padded C tile) ----
    itemsize = jnp.dtype(x.dtype).itemsize
    sub = max(1, 32 // itemsize)            # sublane packing: f32->8, bf16->16, i8->32
    pad = lambda n: ((n + sub - 1) // sub) * sub
    bn_min = N if N < 8 else 8              # out block 2nd-to-last dim: mult of 8 or N

    max_ct = max(1, x_block_budget_bytes // (2 * bn_min * HW * itemsize))
    ct = _pick_c_tile(C, max_ct)

    bytes_per_row = pad(ct) * HW * itemsize
    max_bn = max(1, x_block_budget_bytes // (2 * bytes_per_row))
    if max_bn >= N:
        bn = N
    elif max_bn >= 8:
        bn = (max_bn // 8) * 8
    else:
        bn = bn_min
    # v7x has 2 TensorCores: keep >= 2 steps on the "parallel" batch axis when
    # the batch is big enough to split into multiple-of-8 chunks.
    if bn == N and N >= 16:
        half = (N + 1) // 2
        bn = min(N, ((half + 7) // 8) * 8)
    # Note: when bn does not divide N, the last partial x block reads
    # out-of-bounds batch rows; their results are garbage but those output rows
    # are dropped by Pallas.  Nothing in the kernel reduces across batch.

    grid = (pl.cdiv(N, bn), pl.cdiv(C, ct))
    kernel = functools.partial(_spatial_attention_kernel, k=k, W=W, HW=HW, bn=bn)

    out = pl.pallas_call(
        kernel,
        out_shape=jax.ShapeDtypeStruct((N, HW), x.dtype),
        grid=grid,
        in_specs=[
            pl.BlockSpec(memory_space=pltpu.MemorySpace.SMEM),      # conv weights (2*k*k,)
            pl.BlockSpec((k, HW), lambda b, c: (0, 0)),             # row-validity masks
            pl.BlockSpec((k, HW), lambda b, c: (0, 0)),             # col-validity masks
            pl.BlockSpec((bn, ct, HW), lambda b, c: (b, c, 0)),     # x chunk
        ],
        # Output block index is constant across the C axis -> resident
        # accumulator, written back to HBM only after the last C step.
        out_specs=pl.BlockSpec((bn, HW), lambda b, c: (b, 0)),
        scratch_shapes=[pltpu.VMEM((bn, HW), jnp.float32),          # running channel sum
                        pltpu.VMEM((bn, HW), jnp.float32)],         # running channel max
        compiler_params=pltpu.CompilerParams(
            dimension_semantics=("parallel", "arbitrary"),
            vmem_limit_bytes=32 * 1024 * 1024),
    )(w_flat, rmask, cmask, x2)

    return out.reshape(N, 1, H, W)


def spatial_attention_reference(x, weight):
    """Plain-JAX reference matching the PyTorch forward."""
    k = weight.shape[-1]
    p = k // 2
    avg = jnp.mean(x, axis=1, keepdims=True)
    mx = jnp.max(x, axis=1, keepdims=True)
    feats = jnp.concatenate([avg, mx], axis=1)                  # (N, 2, H, W)
    y = jax.lax.conv_general_dilated(
        feats, weight, window_strides=(1, 1), padding=[(p, p), (p, p)],
        dimension_numbers=("NCHW", "OIHW", "NCHW"))
    return jax.nn.sigmoid(y)


if __name__ == "__main__":
    key = jax.random.PRNGKey(0)
    kx, kw = jax.random.split(key)

    N, C, H, W = 2, 4, 16, 16
    kernel_size = 7

    x = jax.random.normal(kx, (N, C, H, W), dtype=jnp.float32)
    fan_in = 2 * kernel_size * kernel_size
    bound = 1.0 / math.sqrt(fan_in)              # PyTorch Conv2d default init range
    weight = jax.random.uniform(kw, (1, 2, kernel_size, kernel_size),
                                dtype=jnp.float32, minval=-bound, maxval=bound)

    out = spatial_attention_pallas(x, weight)
    out = jax.block_until_ready(out)

    ref = spatial_attention_reference(x, weight)
    assert out.shape == (N, 1, H, W)
    assert jnp.allclose(out, ref, atol=1e-5, rtol=1e-5), "mismatch vs reference"

    print("KERNEL_OK")
</pallas_src>

<mosaic_0001>
module attributes {stable_mosaic.version = 11 : i64} {
  func.func @_spatial_attention_kernel(%arg0: i32, %arg1: i32, %arg2: memref<98xf32, #tpu.memory_space<smem>>, %arg3: memref<7x256xf32, #tpu.memory_space<vmem>>, %arg4: memref<7x256xf32, #tpu.memory_space<vmem>>, %arg5: memref<2x4x256xf32, #tpu.memory_space<vmem>>, %arg6: memref<2x256xf32, #tpu.memory_space<vmem>>, %arg7: memref<2x256xf32, #tpu.memory_space<vmem>>, %arg8: memref<2x256xf32, #tpu.memory_space<vmem>>) attributes {dimension_semantics = [#tpu.dimension_semantics<parallel>, #tpu.dimension_semantics<arbitrary>], iteration_bounds = array<i64: 1, 1>, scalar_prefetch = 0 : i64, scratch_operands = 2 : i64, tpu.core_type = #tpu.core_type<tc>, window_params = [{transform_indices = @transform_0, window_bounds = array<i64: 98>}, {pipeline_mode = #tpu.pipeline_mode<synchronous>, transform_indices = @transform_1, window_bounds = array<i64: 7, 256>}, {pipeline_mode = #tpu.pipeline_mode<synchronous>, transform_indices = @transform_2, window_bounds = array<i64: 7, 256>}, {transform_indices = @transform_3, window_bounds = array<i64: 2, 4, 256>}, {transform_indices = @transform_4, window_bounds = array<i64: 2, 256>}]} {
    %c0 = arith.constant 0 : index
    %c0_0 = arith.constant 0 : index
    %c0_1 = arith.constant 0 : index
    %0 = vector.load %arg5[%c0, %c0_0, %c0_1] : memref<2x4x256xf32, #tpu.memory_space<vmem>>, vector<2x4x256xf32>
    %cst = arith.constant dense<0.000000e+00> : vector<2x256xf32>
    %1 = vector.multi_reduction <add>, %0, %cst [1] : vector<2x4x256xf32> to vector<2x256xf32>
    %cst_2 = arith.constant dense<0xFF800000> : vector<2x256xf32>
    %2 = vector.multi_reduction <maximumf>, %0, %cst_2 [1] : vector<2x4x256xf32> to vector<2x256xf32>
    %c0_i32 = arith.constant 0 : i32
    %3 = arith.cmpi eq, %arg1, %c0_i32 : i32
    %4 = arith.extui %3 : i1 to i32
    %c0_i32_3 = arith.constant 0 : i32
    %5 = arith.cmpi ne, %4, %c0_i32_3 : i32
    scf.if %5 {
      %c0_8 = arith.constant 0 : index
      %c0_9 = arith.constant 0 : index
      %12 = vector.load %arg7[%c0_8, %c0_9] : memref<2x256xf32, #tpu.memory_space<vmem>>, vector<2x256xf32>
      tpu.vector_store %arg7[%c0_8, %c0_9], %1 {strides = array<i32>} : memref<2x256xf32, #tpu.memory_space<vmem>>, vector<2x256xf32>,
      %c0_10 = arith.constant 0 : index
      %c0_11 = arith.constant 0 : index
      %13 = vector.load %arg8[%c0_10, %c0_11] : memref<2x256xf32, #tpu.memory_space<vmem>>, vector<2x256xf32>
      tpu.vector_store %arg8[%c0_10, %c0_11], %2 {strides = array<i32>} : memref<2x256xf32, #tpu.memory_space<vmem>>, vector<2x256xf32>,
    } else {
    }
    %c0_i32_4 = arith.constant 0 : i32
    %6 = arith.cmpi sgt, %arg1, %c0_i32_4 : i32
    %7 = arith.extui %6 : i1 to i32
    %c0_i32_5 = arith.constant 0 : i32
    %8 = arith.cmpi ne, %7, %c0_i32_5 : i32
    scf.if %8 {
      %c0_8 = arith.constant 0 : index
      %c0_9 = arith.constant 0 : index
      %12 = vector.load %arg7[%c0_8, %c0_9] : memref<2x256xf32, #tpu.memory_space<vmem>>, vector<2x256xf32>
      %13 = arith.addf %12, %1 : vector<2x256xf32>
      %c0_10 = arith.constant 0 : index
      %c0_11 = arith.constant 0 : index
      %14 = vector.load %arg7[%c0_10, %c0_11] : memref<2x256xf32, #tpu.memory_space<vmem>>, vector<2x256xf32>
      tpu.vector_store %arg7[%c0_10, %c0_11], %13 {strides = array<i32>} : memref<2x256xf32, #tpu.memory_space<vmem>>, vector<2x256xf32>,
      %c0_12 = arith.constant 0 : index
      %c0_13 = arith.constant 0 : index
      %15 = vector.load %arg8[%c0_12, %c0_13] : memref<2x256xf32, #tpu.memory_space<vmem>>, vector<2x256xf32>
      %16 = arith.maximumf %15, %2 : vector<2x256xf32>
      %c0_14 = arith.constant 0 : index
      %c0_15 = arith.constant 0 : index
      %17 = vector.load %arg8[%c0_14, %c0_15] : memref<2x256xf32, #tpu.memory_space<vmem>>, vector<2x256xf32>
      tpu.vector_store %arg8[%c0_14, %c0_15], %16 {strides = array<i32>} : memref<2x256xf32, #tpu.memory_space<vmem>>, vector<2x256xf32>,
    } else {
    }
    %c0_i32_6 = arith.constant 0 : i32
    %9 = arith.cmpi eq, %arg1, %c0_i32_6 : i32
    %10 = arith.extui %9 : i1 to i32
    %c0_i32_7 = arith.constant 0 : i32
    %11 = arith.cmpi ne, %10, %c0_i32_7 : i32
    scf.if %11 {
      %c0_8 = arith.constant 0 : index
      %c0_9 = arith.constant 0 : index
      %12 = vector.load %arg7[%c0_8, %c0_9] : memref<2x256xf32, #tpu.memory_space<vmem>>, vector<2x256xf32>
      %c0_10 = arith.constant 0 : index
      %c0_11 = arith.constant 0 : index
      %13 = vector.load %arg8[%c0_10, %c0_11] : memref<2x256xf32, #tpu.memory_space<vmem>>, vector<2x256xf32>
      %14 = tpu.concatenate %12, %13 in 0 : vector<2x256xf32>, vector<2x256xf32> -> vector<4x256xf32>
      %cst_12 = arith.constant 0.000000e+00 : f32
      %15 = vector.broadcast %cst_12 : f32 to vector<2x256xf32>
      %c0_13 = arith.constant 0 : index
      %c0_14 = arith.constant 0 : index
      %16 = vector.load %arg3[%c0_13, %c0_14] : memref<7x256xf32, #tpu.memory_space<vmem>>, vector<1x256xf32>
      %cst_15 = arith.constant 0.000000e+00 : f32
      %17 = vector.broadcast %cst_15 : f32 to vector<2x256xf32>
      %c0_16 = arith.constant 0 : index
      %c0_17 = arith.constant 0 : index
      %18 = vector.load %arg4[%c0_16, %c0_17] : memref<7x256xf32, #tpu.memory_space<vmem>>, vector<1x256xf32>
      %c51_i32 = arith.constant 51 : i32
      %19 = tpu.dynamic_rotate %14 by %c51_i32 dim 1 : vector<4x256xf32>, i32 -> vector<4x256xf32>
      %c0_18 = arith.constant 0 : index
      %20 = memref.load %arg2[%c0_18] : memref<98xf32, #tpu.memory_space<smem>>
      %21 = vector.extract_strided_slice %19 {offsets = [0, 0], sizes = [2, 256], strides = [1, 1]} : vector<4x256xf32> to vector<2x256xf32>
      %22 = vector.broadcast %20 : f32 to vector<2x256xf32>
      %23 = arith.mulf %22, %21 : vector<2x256xf32>
      %c49 = arith.constant 49 : index
      %24 = memref.load %arg2[%c49] : memref<98xf32, #tpu.memory_space<smem>>
      %25 = vector.extract_strided_slice %19 {offsets = [2, 0], sizes = [2, 256], strides = [1, 1]} : vector<4x256xf32> to vector<2x256xf32>
      %26 = vector.broadcast %24 : f32 to vector<2x256xf32>
      %27 = arith.mulf %26, %25 : vector<2x256xf32>
      %28 = arith.addf %23, %27 : vector<2x256xf32>
      %29 = vector.broadcast %18 : vector<1x256xf32> to vector<2x256xf32>
      %30 = arith.mulf %28, %29 : vector<2x256xf32>
      %31 = arith.addf %17, %30 : vector<2x256xf32>
      %c1 = arith.constant 1 : index
      %c0_19 = arith.constant 0 : index
      %32 = vector.load %arg4[%c1, %c0_19] : memref<7x256xf32, #tpu.memory_space<vmem>>, vector<1x256xf32>
      %c50_i32 = arith.constant 50 : i32
      %33 = tpu.dynamic_rotate %14 by %c50_i32 dim 1 : vector<4x256xf32>, i32 -> vector<4x256xf32>
      %c1_20 = arith.constant 1 : index
      %34 = memref.load %arg2[%c1_20] : memref<98xf32, #tpu.memory_space<smem>>
      %35 = vector.extract_strided_slice %33 {offsets = [0, 0], sizes = [2, 256], strides = [1, 1]} : vector<4x256xf32> to vector<2x256xf32>
      %36 = vector.broadcast %34 : f32 to vector<2x256xf32>
      %37 = arith.mulf %36, %35 : vector<2x256xf32>
      %c50 = arith.constant 50 : index
      %38 = memref.load %arg2[%c50] : memref<98xf32, #tpu.memory_space<smem>>
      %39 = vector.extract_strided_slice %33 {offsets = [2, 0], sizes = [2, 256], strides = [1, 1]} : vector<4x256xf32> to vector<2x256xf32>
      %40 = vector.broadcast %38 : f32 to vector<2x256xf32>
      %41 = arith.mulf %40, %39 : vector<2x256xf32>
      %42 = arith.addf %37, %41 : vector<2x256xf32>
      %43 = vector.broadcast %32 : vector<1x256xf32> to vector<2x256xf32>
      %44 = arith.mulf %42, %43 : vector<2x256xf32>
      %45 = arith.addf %31, %44 : vector<2x256xf32>
      %c2 = arith.constant 2 : index
      %c0_21 = arith.constant 0 : index
      %46 = vector.load %arg4[%c2, %c0_21] : memref<7x256xf32, #tpu.memory_space<vmem>>, vector<1x256xf32>
      %c49_i32 = arith.constant 49 : i32
      %47 = tpu.dynamic_rotate %14 by %c49_i32 dim 1 : vector<4x256xf32>, i32 -> vector<4x256xf32>
      %c2_22 = arith.constant 2 : index
      %48 = memref.load %arg2[%c2_22] : memref<98xf32, #tpu.memory_space<smem>>
      %49 = vector.extract_strided_slice %47 {offsets = [0, 0], sizes = [2, 256], strides = [1, 1]} : vector<4x256xf32> to vector<2x256xf32>
      %50 = vector.broadcast %48 : f32 to vector<2x256xf32>
      %51 = arith.mulf %50, %49 : vector<2x256xf32>
      %c51 = arith.constant 51 : index
      %52 = memref.load %arg2[%c51] : memref<98xf32, #tpu.memory_space<smem>>
      %53 = vector.extract_strided_slice %47 {offsets = [2, 0], sizes = [2, 256], strides = [1, 1]} : vector<4x256xf32> to vector<2x256xf32>
      %54 = vector.broadcast %52 : f32 to vector<2x256xf32>
      %55 = arith.mulf %54, %53 : vector<2x256xf32>
      %56 = arith.addf %51, %55 : vector<2x256xf32>
      %57 = vector.broadcast %46 : vector<1x256xf32> to vector<2x256xf32>
      %58 = arith.mulf %56, %57 : vector<2x256xf32>
      %59 = arith.addf %45, %58 : vector<2x256xf32>
      %c3 = arith.constant 3 : index
      %c0_23 = arith.constant 0 : index
      %60 = vector.load %arg4[%c3, %c0_23] : memref<7x256xf32, #tpu.memory_space<vmem>>, vector<1x256xf32>
      %c48_i32 = arith.constant 48 : i32
      %61 = tpu.dynamic_rotate %14 by %c48_i32 dim 1 : vector<4x256xf32>, i32 -> vector<4x256xf32>
      %c3_24 = arith.constant 3 : index
      %62 = memref.load %arg2[%c3_24] : memref<98xf32, #tpu.memory_space<smem>>
      %63 = vector.extract_strided_slice %61 {offsets = [0, 0], sizes = [2, 256], strides = [1, 1]} : vector<4x256xf32> to vector<2x256xf32>
      %64 = vector.broadcast %62 : f32 to vector<2x256xf32>
      %65 = arith.mulf %64, %63 : vector<2x256xf32>
      %c52 = arith.constant 52 : index
      %66 = memref.load %arg2[%c52] : memref<98xf32, #tpu.memory_space<smem>>
      %67 = vector.extract_strided_slice %61 {offsets = [2, 0], sizes = [2, 256], strides = [1, 1]} : vector<4x256xf32> to vector<2x256xf32>
      %68 = vector.broadcast %66 : f32 to vector<2x256xf32>
      %69 = arith.mulf %68, %67 : vector<2x256xf32>
      %70 = arith.addf %65, %69 : vector<2x256xf32>
      %71 = vector.broadcast %60 : vector<1x256xf32> to vector<2x256xf32>
      %72 = arith.mulf %70, %71 : vector<2x256xf32>
      %73 = arith.addf %59, %72 : vector<2x256xf32>
      %c4 = arith.constant 4 : index
      %c0_25 = arith.constant 0 : index
      %74 = vector.load %arg4[%c4, %c0_25] : memref<7x256xf32, #tpu.memory_space<vmem>>, vector<1x256xf32>
      %c47_i32 = arith.constant 47 : i32
      %75 = tpu.dynamic_rotate %14 by %c47_i32 dim 1 : vector<4x256xf32>, i32 -> vector<4x256xf32>
      %c4_26 = arith.constant 4 : index
      %76 = memref.load %arg2[%c4_26] : memref<98xf32, #tpu.memory_space<smem>>
      %77 = vector.extract_strided_slice %75 {offsets = [0, 0], sizes = [2, 256], strides = [1, 1]} : vector<4x256xf32> to vector<2x256xf32>
      %78 = vector.broadcast %76 : f32 to vector<2x256xf32>
      %79 = arith.mulf %78, %77 : vector<2x256xf32>
      %c53 = arith.constant 53 : index
      %80 = memref.load %arg2[%c53] : memref<98xf32, #tpu.memory_space<smem>>
      %81 = vector.extract_strided_slice %75 {offsets = [2, 0], sizes = [2, 256], strides = [1, 1]} : vector<4x256xf32> to vector<2x256xf32>
      %82 = vector.broadcast %80 : f32 to vector<2x256xf32>
      %83 = arith.mulf %82, %81 : vector<2x256xf32>
      %84 = arith.addf %79, %83 : vector<2x256xf32>
      %85 = vector.broadcast %74 : vector<1x256xf32> to vector<2x256xf32>
      %86 = arith.mulf %84, %85 : vector<2x256xf32>
      %87 = arith.addf %73, %86 : vector<2x256xf32>
      %c5 = arith.constant 5 : index
      %c0_27 = arith.constant 0 : index
      %88 = vector.load %arg4[%c5, %c0_27] : memref<7x256xf32, #tpu.memory_space<vmem>>, vector<1x256xf32>
      %c46_i32 = arith.constant 46 : i32
      %89 = tpu.dynamic_rotate %14 by %c46_i32 dim 1 : vector<4x256xf32>, i32 -> vector<4x256xf32>
      %c5_28 = arith.constant 5 : index
      %90 = memref.load %arg2[%c5_28] : memref<98xf32, #tpu.memory_space<smem>>
      %91 = vector.extract_strided_slice %89 {offsets = [0, 0], sizes = [2, 256], strides = [1, 1]} : vector<4x256xf32> to vector<2x256xf32>
      %92 = vector.broadcast %90 : f32 to vector<2x256xf32>
      %93 = arith.mulf %92, %91 : vector<2x256xf32>
      %c54 = arith.constant 54 : index
      %94 = memref.load %arg2[%c54] : memref<98xf32, #tpu.memory_space<smem>>
      %95 = vector.extract_strided_slice %89 {offsets = [2, 0], sizes = [2, 256], strides = [1, 1]} : vector<4x256xf32> to vector<2x256xf32>
      %96 = vector.broadcast %94 : f32 to vector<2x256xf32>
      %97 = arith.mulf %96, %95 : vector<2x256xf32>
      %98 = arith.addf %93, %97 : vector<2x256xf32>
      %99 = vector.broadcast %88 : vector<1x256xf32> to vector<2x256xf32>
      %100 = arith.mulf %98, %99 : vector<2x256xf32>
      %101 = arith.addf %87, %100 : vector<2x256xf32>
      %c6 = arith.constant 6 : index
      %c0_29 = arith.constant 0 : index
      %102 = vector.load %arg4[%c6, %c0_29] : memref<7x256xf32, #tpu.memory_space<vmem>>, vector<1x256xf32>
      %c45_i32 = arith.constant 45 : i32
      %103 = tpu.dynamic_rotate %14 by %c45_i32 dim 1 : vector<4x256xf32>, i32 -> vector<4x256xf32>
      %c6_30 = arith.constant 6 : index
      %104 = memref.load %arg2[%c6_30] : memref<98xf32, #tpu.memory_space<smem>>
      %105 = vector.extract_strided_slice %103 {offsets = [0, 0], sizes = [2, 256], strides = [1, 1]} : vector<4x256xf32> to vector<2x256xf32>
      %106 = vector.broadcast %104 : f32 to vector<2x256xf32>
      %107 = arith.mulf %106, %105 : vector<2x256xf32>
      %c55 = arith.constant 55 : index
      %108 = memref.load %arg2[%c55] : memref<98xf32, #tpu.memory_space<smem>>
      %109 = vector.extract_strided_slice %103 {offsets = [2, 0], sizes = [2, 256], strides = [1, 1]} : vector<4x256xf32> to vector<2x256xf32>
      %110 = vector.broadcast %108 : f32 to vector<2x256xf32>
      %111 = arith.mulf %110, %109 : vector<2x256xf32>
      %112 = arith.addf %107, %111 : vector<2x256xf32>
      %113 = vector.broadcast %102 : vector<1x256xf32> to vector<2x256xf32>
      %114 = arith.mulf %112, %113 : vector<2x256xf32>
      %115 = arith.addf %101, %114 : vector<2x256xf32>
      %116 = vector.broadcast %16 : vector<1x256xf32> to vector<2x256xf32>
      %117 = arith.mulf %115, %116 : vector<2x256xf32>
      %118 = arith.addf %15, %117 : vector<2x256xf32>
      %c1_31 = arith.constant 1 : index
      %c0_32 = arith.constant 0 : index
      %119 = vector.load %arg3[%c1_31, %c0_32] : memref<7x256xf32, #tpu.memory_space<vmem>>, vector<1x256xf32>
      %cst_33 = arith.constant 0.000000e+00 : f32
      %120 = vector.broadcast %cst_33 : f32 to vector<2x256xf32>
      %c0_34 = arith.constant 0 : index
      %c0_35 = arith.constant 0 : index
      %121 = vector.load %arg4[%c0_34, %c0_35] : memref<7x256xf32, #tpu.memory_space<vmem>>, vector<1x256xf32>
      %c35_i32 = arith.constant 35 : i32
      %122 = tpu.dynamic_rotate %14 by %c35_i32 dim 1 : vector<4x256xf32>, i32 -> vector<4x256xf32>
      %c7 = arith.constant 7 : index
      %123 = memref.load %arg2[%c7] : memref<98xf32, #tpu.memory_space<smem>>
      %124 = vector.extract_strided_slice %122 {offsets = [0, 0], sizes = [2, 256], strides = [1, 1]} : vector<4x256xf32> to vector<2x256xf32>
      %125 = vector.broadcast %123 : f32 to vector<2x256xf32>
      %126 = arith.mulf %125, %124 : vector<2x256xf32>
      %c56 = arith.constant 56 : index
      %127 = memref.load %arg2[%c56] : memref<98xf32, #tpu.memory_space<smem>>
      %128 = vector.extract_strided_slice %122 {offsets = [2, 0], sizes = [2, 256], strides = [1, 1]} : vector<4x256xf32> to vector<2x256xf32>
      %129 = vector.broadcast %127 : f32 to vector<2x256xf32>
      %130 = arith.mulf %129, %128 : vector<2x256xf32>
      %131 = arith.addf %126, %130 : vector<2x256xf32>
      %132 = vector.broadcast %121 : vector<1x256xf32> to vector<2x256xf32>
      %133 = arith.mulf %131, %132 : vector<2x256xf32>
      %134 = arith.addf %120, %133 : vector<2x256xf32>
      %c1_36 = arith.constant 1 : index
      %c0_37 = arith.constant 0 : index
      %135 = vector.load %arg4[%c1_36, %c0_37] : memref<7x256xf32, #tpu.memory_space<vmem>>, vector<1x256xf32>
      %c34_i32 = arith.constant 34 : i32
      %136 = tpu.dynamic_rotate %14 by %c34_i32 dim 1 : vector<4x256xf32>, i32 -> vector<4x256xf32>
      %c8 = arith.constant 8 : index
      %137 = memref.load %arg2[%c8] : memref<98xf32, #tpu.memory_space<smem>>
      %138 = vector.extract_strided_slice %136 {offsets = [0, 0], sizes = [2, 256], strides = [1, 1]} : vector<4x256xf32> to vector<2x256xf32>
      %139 = vector.broadcast %137 : f32 to vector<2x256xf32>
      %140 = arith.mulf %139, %138 : vector<2x256xf32>
      %c57 = arith.constant 57 : index
      %141 = memref.load %arg2[%c57] : memref<98xf32, #tpu.memory_space<smem>>
      %142 = vector.extract_strided_slice %136 {offsets = [2, 0], sizes = [2, 256], strides = [1, 1]} : vector<4x256xf32> to vector<2x256xf32>
      %143 = vector.broadcast %141 : f32 to vector<2x256xf32>
      %144 = arith.mulf %143, %142 : vector<2x256xf32>
      %145 = arith.addf %140, %144 : vector<2x256xf32>
      %146 = vector.broadcast %135 : vector<1x256xf32> to vector<2x256xf32>
      %147 = arith.mulf %145, %146 : vector<2x256xf32>
      %148 = arith.addf %134, %147 : vector<2x256xf32>
      %c2_38 = arith.constant 2 : index
      %c0_39 = arith.constant 0 : index
      %149 = vector.load %arg4[%c2_38, %c0_39] : memref<7x256xf32, #tpu.memory_space<vmem>>, vector<1x256xf32>
      %c33_i32 = arith.constant 33 : i32
      %150 = tpu.dynamic_rotate %14 by %c33_i32 dim 1 : vector<4x256xf32>, i32 -> vector<4x256xf32>
      %c9 = arith.constant 9 : index
      %151 = memref.load %arg2[%c9] : memref<98xf32, #tpu.memory_space<smem>>
      %152 = vector.extract_strided_slice %150 {offsets = [0, 0], sizes = [2, 256], strides = [1, 1]} : vector<4x256xf32> to vector<2x256xf32>
      %153 = vector.broadcast %151 : f32 to vector<2x256xf32>
      %154 = arith.mulf %153, %152 : vector<2x256xf32>
      %c58 = arith.constant 58 : index
      %155 = memref.load %arg2[%c58] : memref<98xf32, #tpu.memory_space<smem>>
      %156 = vector.extract_strided_slice %150 {offsets = [2, 0], sizes = [2, 256], strides = [1, 1]} : vector<4x256xf32> to vector<2x256xf32>
      %157 = vector.broadcast %155 : f32 to vector<2x256xf32>
      %158 = arith.mulf %157, %156 : vector<2x256xf32>
      %159 = arith.addf %154, %158 : vector<2x256xf32>
      %160 = vector.broadcast %149 : vector<1x256xf32> to vector<2x256xf32>
      %161 = arith.mulf %159, %160 : vector<2x256xf32>
      %162 = arith.addf %148, %161 : vector<2x256xf32>
      %c3_40 = arith.constant 3 : index
      %c0_41 = arith.constant 0 : index
      %163 = vector.load %arg4[%c3_40, %c0_41] : memref<7x256xf32, #tpu.memory_space<vmem>>, vector<1x256xf32>
      %c32_i32 = arith.constant 32 : i32
      %164 = tpu.dynamic_rotate %14 by %c32_i32 dim 1 : vector<4x256xf32>, i32 -> vector<4x256xf32>
      %c10 = arith.constant 10 : index
      %165 = memref.load %arg2[%c10] : memref<98xf32, #tpu.memory_space<smem>>
      %166 = vector.extract_strided_slice %164 {offsets = [0, 0], sizes = [2, 256], strides = [1, 1]} : vector<4x256xf32> to vector<2x256xf32>
      %167 = vector.broadcast %165 : f32 to vector<2x256xf32>
      %168 = arith.mulf %167, %166 : vector<2x256xf32>
      %c59 = arith.constant 59 : index
      %169 = memref.load %arg2[%c59] : memref<98xf32, #tpu.memory_space<smem>>
      %170 = vector.extract_strided_slice %164 {offsets = [2, 0], sizes = [2, 256], strides = [1, 1]} : vector<4x256xf32> to vector<2x256xf32>
      %171 = vector.broadcast %169 : f32 to vector<2x256xf32>
      %172 = arith.mulf %171, %170 : vector<2x256xf32>
      %173 = arith.addf %168, %172 : vector<2x256xf32>
      %174 = vector.broadcast %163 : vector<1x256xf32> to vector<2x256xf32>
      %175 = arith.mulf %173, %174 : vector<2x256xf32>
      %176 = arith.addf %162, %175 : vector<2x256xf32>
      %c4_42 = arith.constant 4 : index
      %c0_43 = arith.constant 0 : index
      %177 = vector.load %arg4[%c4_42, %c0_43] : memref<7x256xf32, #tpu.memory_space<vmem>>, vector<1x256xf32>
      %c31_i32 = arith.constant 31 : i32
      %178 = tpu.dynamic_rotate %14 by %c31_i32 dim 1 : vector<4x256xf32>, i32 -> vector<4x256xf32>
      %c11 = arith.constant 11 : index
      %179 = memref.load %arg2[%c11] : memref<98xf32, #tpu.memory_space<smem>>
      %180 = vector.extract_strided_slice %178 {offsets = [0, 0], sizes = [2, 256], strides = [1, 1]} : vector<4x256xf32> to vector<2x256xf32>
      %181 = vector.broadcast %179 : f32 to vector<2x256xf32>
      %182 = arith.mulf %181, %180 : vector<2x256xf32>
      %c60 = arith.constant 60 : index
      %183 = memref.load %arg2[%c60] : memref<98xf32, #tpu.memory_space<smem>>
      %184 = vector.extract_strided_slice %178 {offsets = [2, 0], sizes = [2, 256], strides = [1, 1]} : vector<4x256xf32> to vector<2x256xf32>
      %185 = vector.broadcast %183 : f32 to vector<2x256xf32>
      %186 = arith.mulf %185, %184 : vector<2x256xf32>
      %187 = arith.addf %182, %186 : vector<2x256xf32>
      %188 = vector.broadcast %177 : vector<1x256xf32> to vector<2x256xf32>
      %189 = arith.mulf %187, %188 : vector<2x256xf32>
      %190 = arith.addf %176, %189 : vector<2x256xf32>
      %c5_44 = arith.constant 5 : index
      %c0_45 = arith.constant 0 : index
      %191 = vector.load %arg4[%c5_44, %c0_45] : memref<7x256xf32, #tpu.memory_space<vmem>>, vector<1x256xf32>
      %c30_i32 = arith.constant 30 : i32
      %192 = tpu.dynamic_rotate %14 by %c30_i32 dim 1 : vector<4x256xf32>, i32 -> vector<4x256xf32>
      %c12 = arith.constant 12 : index
      %193 = memref.load %arg2[%c12] : memref<98xf32, #tpu.memory_space<smem>>
      %194 = vector.extract_strided_slice %192 {offsets = [0, 0], sizes = [2, 256], strides = [1, 1]} : vector<4x256xf32> to vector<2x256xf32>
      %195 = vector.broadcast %193 : f32 to vector<2x256xf32>
      %196 = arith.mulf %195, %194 : vector<2x256xf32>
      %c61 = arith.constant 61 : index
      %197 = memref.load %arg2[%c61] : memref<98xf32, #tpu.memory_space<smem>>
      %198 = vector.extract_strided_slice %192 {offsets = [2, 0], sizes = [2, 256], strides = [1, 1]} : vector<4x256xf32> to vector<2x256xf32>
      %199 = vector.broadcast %197 : f32 to vector<2x256xf32>
      %200 = arith.mulf %199, %198 : vector<2x256xf32>
      %201 = arith.addf %196, %200 : vector<2x256xf32>
      %202 = vector.broadcast %191 : vector<1x256xf32> to vector<2x256xf32>
      %203 = arith.mulf %201, %202 : vector<2x256xf32>
      %204 = arith.addf %190, %203 : vector<2x256xf32>
      %c6_46 = arith.constant 6 : index
      %c0_47 = arith.constant 0 : index
      %205 = vector.load %arg4[%c6_46, %c0_47] : memref<7x256xf32, #tpu.memory_space<vmem>>, vector<1x256xf32>
      %c29_i32 = arith.constant 29 : i32
      %206 = tpu.dynamic_rotate %14 by %c29_i32 dim 1 : vector<4x256xf32>, i32 -> vector<4x256xf32>
      %c13 = arith.constant 13 : index
      %207 = memref.load %arg2[%c13] : memref<98xf32, #tpu.memory_space<smem>>
      %208 = vector.extract_strided_slice %206 {offsets = [0, 0], sizes = [2, 256], strides = [1, 1]} : vector<4x256xf32> to vector<2x256xf32>
      %209 = vector.broadcast %207 : f32 to vector<2x256xf32>
      %210 = arith.mulf %209, %208 : vector<2x256xf32>
      %c62 = arith.constant 62 : index
      %211 = memref.load %arg2[%c62] : memref<98xf32, #tpu.memory_space<smem>>
      %212 = vector.extract_strided_slice %206 {offsets = [2, 0], sizes = [2, 256], strides = [1, 1]} : vector<4x256xf32> to vector<2x256xf32>
      %213 = vector.broadcast %211 : f32 to vector<2x256xf32>
      %214 = arith.mulf %213, %212 : vector<2x256xf32>
      %215 = arith.addf %210, %214 : vector<2x256xf32>
      %216 = vector.broadcast %205 : vector<1x256xf32> to vector<2x256xf32>
      %217 = arith.mulf %215, %216 : vector<2x256xf32>
      %218 = arith.addf %204, %217 : vector<2x256xf32>
      %219 = vector.broadcast %119 : vector<1x256xf32> to vector<2x256xf32>
      %220 = arith.mulf %218, %219 : vector<2x256xf32>
      %221 = arith.addf %118, %220 : vector<2x256xf32>
      %c2_48 = arith.constant 2 : index
      %c0_49 = arith.constant 0 : index
      %222 = vector.load %arg3[%c2_48, %c0_49] : memref<7x256xf32, #tpu.memory_space<vmem>>, vector<1x256xf32>
      %cst_50 = arith.constant 0.000000e+00 : f32
      %223 = vector.broadcast %cst_50 : f32 to vector<2x256xf32>
      %c0_51 = arith.constant 0 : index
      %c0_52 = arith.constant 0 : index
      %224 = vector.load %arg4[%c0_51, %c0_52] : memref<7x256xf32, #tpu.memory_space<vmem>>, vector<1x256xf32>
      %c19_i32 = arith.constant 19 : i32
      %225 = tpu.dynamic_rotate %14 by %c19_i32 dim 1 : vector<4x256xf32>, i32 -> vector<4x256xf32>
      %c14 = arith.constant 14 : index
      %226 = memref.load %arg2[%c14] : memref<98xf32, #tpu.memory_space<smem>>
      %227 = vector.extract_strided_slice %225 {offsets = [0, 0], sizes = [2, 256], strides = [1, 1]} : vector<4x256xf32> to vector<2x256xf32>
      %228 = vector.broadcast %226 : f32 to vector<2x256xf32>
      %229 = arith.mulf %228, %227 : vector<2x256xf32>
      %c63 = arith.constant 63 : index
      %230 = memref.load %arg2[%c63] : memref<98xf32, #tpu.memory_space<smem>>
      %231 = vector.extract_strided_slice %225 {offsets = [2, 0], sizes = [2, 256], strides = [1, 1]} : vector<4x256xf32> to vector<2x256xf32>
      %232 = vector.broadcast %230 : f32 to vector<2x256xf32>
      %233 = arith.mulf %232, %231 : vector<2x256xf32>
      %234 = arith.addf %229, %233 : vector<2x256xf32>
      %235 = vector.broadcast %224 : vector<1x256xf32> to vector<2x256xf32>
      %236 = arith.mulf %234, %235 : vector<2x256xf32>
      %237 = arith.addf %223, %236 : vector<2x256xf32>
      %c1_53 = arith.constant 1 : index
      %c0_54 = arith.constant 0 : index
      %238 = vector.load %arg4[%c1_53, %c0_54] : memref<7x256xf32, #tpu.memory_space<vmem>>, vector<1x256xf32>
      %c18_i32 = arith.constant 18 : i32
      %239 = tpu.dynamic_rotate %14 by %c18_i32 dim 1 : vector<4x256xf32>, i32 -> vector<4x256xf32>
      %c15 = arith.constant 15 : index
      %240 = memref.load %arg2[%c15] : memref<98xf32, #tpu.memory_space<smem>>
      %241 = vector.extract_strided_slice %239 {offsets = [0, 0], sizes = [2, 256], strides = [1, 1]} : vector<4x256xf32> to vector<2x256xf32>
      %242 = vector.broadcast %240 : f32 to vector<2x256xf32>
      %243 = arith.mulf %242, %241 : vector<2x256xf32>
      %c64 = arith.constant 64 : index
      %244 = memref.load %arg2[%c64] : memref<98xf32, #tpu.memory_space<smem>>
      %245 = vector.extract_strided_slice %239 {offsets = [2, 0], sizes = [2, 256], strides = [1, 1]} : vector<4x256xf32> to vector<2x256xf32>
      %246 = vector.broadcast %244 : f32 to vector<2x256xf32>
      %247 = arith.mulf %246, %245 : vector<2x256xf32>
      %248 = arith.addf %243, %247 : vector<2x256xf32>
      %249 = vector.broadcast %238 : vector<1x256xf32> to vector<2x256xf32>
      %250 = arith.mulf %248, %249 : vector<2x256xf32>
      %251 = arith.addf %237, %250 : vector<2x256xf32>
      %c2_55 = arith.constant 2 : index
      %c0_56 = arith.constant 0 : index
      %252 = vector.load %arg4[%c2_55, %c0_56] : memref<7x256xf32, #tpu.memory_space<vmem>>, vector<1x256xf32>
      %c17_i32 = arith.constant 17 : i32
      %253 = tpu.dynamic_rotate %14 by %c17_i32 dim 1 : vector<4x256xf32>, i32 -> vector<4x256xf32>
      %c16 = arith.constant 16 : index
      %254 = memref.load %arg2[%c16] : memref<98xf32, #tpu.memory_space<smem>>
      %255 = vector.extract_strided_slice %253 {offsets = [0, 0], sizes = [2, 256], strides = [1, 1]} : vector<4x256xf32> to vector<2x256xf32>
      %256 = vector.broadcast %254 : f32 to vector<2x256xf32>
      %257 = arith.mulf %256, %255 : vector<2x256xf32>
      %c65 = arith.constant 65 : index
      %258 = memref.load %arg2[%c65] : memref<98xf32, #tpu.memory_space<smem>>
      %259 = vector.extract_strided_slice %253 {offsets = [2, 0], sizes = [2, 256], strides = [1, 1]} : vector<4x256xf32> to vector<2x256xf32>
      %260 = vector.broadcast %258 : f32 to vector<2x256xf32>
      %261 = arith.mulf %260, %259 : vector<2x256xf32>
      %262 = arith.addf %257, %261 : vector<2x256xf32>
      %263 = vector.broadcast %252 : vector<1x256xf32> to vector<2x256xf32>
      %264 = arith.mulf %262, %263 : vector<2x256xf32>
      %265 = arith.addf %251, %264 : vector<2x256xf32>
      %c3_57 = arith.constant 3 : index
      %c0_58 = arith.constant 0 : index
      %266 = vector.load %arg4[%c3_57, %c0_58] : memref<7x256xf32, #tpu.memory_space<vmem>>, vector<1x256xf32>
      %c16_i32 = arith.constant 16 : i32
      %267 = tpu.dynamic_rotate %14 by %c16_i32 dim 1 : vector<4x256xf32>, i32 -> vector<4x256xf32>
      %c17 = arith.constant 17 : index
      %268 = memref.load %arg2[%c17] : memref<98xf32, #tpu.memory_space<smem>>
      %269 = vector.extract_strided_slice %267 {offsets = [0, 0], sizes = [2, 256], strides = [1, 1]} : vector<4x256xf32> to vector<2x256xf32>
      %270 = vector.broadcast %268 : f32 to vector<2x256xf32>
      %271 = arith.mulf %270, %269 : vector<2x256xf32>
      %c66 = arith.constant 66 : index
      %272 = memref.load %arg2[%c66] : memref<98xf32, #tpu.memory_space<smem>>
      %273 = vector.extract_strided_slice %267 {offsets = [2, 0], sizes = [2, 256], strides = [1, 1]} : vector<4x256xf32> to vector<2x256xf32>
      %274 = vector.broadcast %272 : f32 to vector<2x256xf32>
      %275 = arith.mulf %274, %273 : vector<2x256xf32>
      %276 = arith.addf %271, %275 : vector<2x256xf32>
      %277 = vector.broadcast %266 : vector<1x256xf32> to vector<2x256xf32>
      %278 = arith.mulf %276, %277 : vector<2x256xf32>
      %279 = arith.addf %265, %278 : vector<2x256xf32>
      %c4_59 = arith.constant 4 : index
      %c0_60 = arith.constant 0 : index
      %280 = vector.load %arg4[%c4_59, %c0_60] : memref<7x256xf32, #tpu.memory_space<vmem>>, vector<1x256xf32>
      %c15_i32 = arith.constant 15 : i32
      %281 = tpu.dynamic_rotate %14 by %c15_i32 dim 1 : vector<4x256xf32>, i32 -> vector<4x256xf32>
      %c18 = arith.constant 18 : index
      %282 = memref.load %arg2[%c18] : memref<98xf32, #tpu.memory_space<smem>>
      %283 = vector.extract_strided_slice %281 {offsets = [0, 0], sizes = [2, 256], strides = [1, 1]} : vector<4x256xf32> to vector<2x256xf32>
      %284 = vector.broadcast %282 : f32 to vector<2x256xf32>
      %285 = arith.mulf %284, %283 : vector<2x256xf32>
      %c67 = arith.constant 67 : index
      %286 = memref.load %arg2[%c67] : memref<98xf32, #tpu.memory_space<smem>>
      %287 = vector.extract_strided_slice %281 {offsets = [2, 0], sizes = [2, 256], strides = [1, 1]} : vector<4x256xf32> to vector<2x256xf32>
      %288 = vector.broadcast %286 : f32 to vector<2x256xf32>
      %289 = arith.mulf %288, %287 : vector<2x256xf32>
      %290 = arith.addf %285, %289 : vector<2x256xf32>
      %291 = vector.broadcast %280 : vector<1x256xf32> to vector<2x256xf32>
      %292 = arith.mulf %290, %291 : vector<2x256xf32>
      %293 = arith.addf %279, %292 : vector<2x256xf32>
      %c5_61 = arith.constant 5 : index
      %c0_62 = arith.constant 0 : index
      %294 = vector.load %arg4[%c5_61, %c0_62] : memref<7x256xf32, #tpu.memory_space<vmem>>, vector<1x256xf32>
      %c14_i32 = arith.constant 14 : i32
      %295 = tpu.dynamic_rotate %14 by %c14_i32 dim 1 : vector<4x256xf32>, i32 -> vector<4x256xf32>
      %c19 = arith.constant 19 : index
      %296 = memref.load %arg2[%c19] : memref<98xf32, #tpu.memory_space<smem>>
      %297 = vector.extract_strided_slice %295 {offsets = [0, 0], sizes = [2, 256], strides = [1, 1]} : vector<4x256xf32> to vector<2x256xf32>
      %298 = vector.broadcast %296 : f32 to vector<2x256xf32>
      %299 = arith.mulf %298, %297 : vector<2x256xf32>
      %c68 = arith.constant 68 : index
      %300 = memref.load %arg2[%c68] : memref<98xf32, #tpu.memory_space<smem>>
      %301 = vector.extract_strided_slice %295 {offsets = [2, 0], sizes = [2, 256], strides = [1, 1]} : vector<4x256xf32> to vector<2x256xf32>
      %302 = vector.broadcast %300 : f32 to vector<2x256xf32>
      %303 = arith.mulf %302, %301 : vector<2x256xf32>
      %304 = arith.addf %299, %303 : vector<2x256xf32>
      %305 = vector.broadcast %294 : vector<1x256xf32> to vector<2x256xf32>
      %306 = arith.mulf %304, %305 : vector<2x256xf32>
      %307 = arith.addf %293, %306 : vector<2x256xf32>
      %c6_63 = arith.constant 6 : index
      %c0_64 = arith.constant 0 : index
      %308 = vector.load %arg4[%c6_63, %c0_64] : memref<7x256xf32, #tpu.memory_space<vmem>>, vector<1x256xf32>
      %c13_i32 = arith.constant 13 : i32
      %309 = tpu.dynamic_rotate %14 by %c13_i32 dim 1 : vector<4x256xf32>, i32 -> vector<4x256xf32>
      %c20 = arith.constant 20 : index
      %310 = memref.load %arg2[%c20] : memref<98xf32, #tpu.memory_space<smem>>
      %311 = vector.extract_strided_slice %309 {offsets = [0, 0], sizes = [2, 256], strides = [1, 1]} : vector<4x256xf32> to vector<2x256xf32>
      %312 = vector.broadcast %310 : f32 to vector<2x256xf32>
      %313 = arith.mulf %312, %311 : vector<2x256xf32>
      %c69 = arith.constant 69 : index
      %314 = memref.load %arg2[%c69] : memref<98xf32, #tpu.memory_space<smem>>
      %315 = vector.extract_strided_slice %309 {offsets = [2, 0], sizes = [2, 256], strides = [1, 1]} : vector<4x256xf32> to vector<2x256xf32>
      %316 = vector.broadcast %314 : f32 to vector<2x256xf32>
      %317 = arith.mulf %316, %315 : vector<2x256xf32>
      %318 = arith.addf %313, %317 : vector<2x256xf32>
      %319 = vector.broadcast %308 : vector<1x256xf32> to vector<2x256xf32>
      %320 = arith.mulf %318, %319 : vector<2x256xf32>
      %321 = arith.addf %307, %320 : vector<2x256xf32>
      %322 = vector.broadcast %222 : vector<1x256xf32> to vector<2x256xf32>
      %323 = arith.mulf %321, %322 : vector<2x256xf32>
      %324 = arith.addf %221, %323 : vector<2x256xf32>
      %c3_65 = arith.constant 3 : index
      %c0_66 = arith.constant 0 : index
      %325 = vector.load %arg3[%c3_65, %c0_66] : memref<7x256xf32, #tpu.memory_space<vmem>>, vector<1x256xf32>
      %cst_67 = arith.constant 0.000000e+00 : f32
      %326 = vector.broadcast %cst_67 : f32 to vector<2x256xf32>
      %c0_68 = arith.constant 0 : index
      %c0_69 = arith.constant 0 : index
      %327 = vector.load %arg4[%c0_68, %c0_69] : memref<7x256xf32, #tpu.memory_space<vmem>>, vector<1x256xf32>
      %c3_i32 = arith.constant 3 : i32
      %328 = tpu.dynamic_rotate %14 by %c3_i32 dim 1 : vector<4x256xf32>, i32 -> vector<4x256xf32>
      %c21 = arith.constant 21 : index
      %329 = memref.load %arg2[%c21] : memref<98xf32, #tpu.memory_space<smem>>
      %330 = vector.extract_strided_slice %328 {offsets = [0, 0], sizes = [2, 256], strides = [1, 1]} : vector<4x256xf32> to vector<2x256xf32>
      %331 = vector.broadcast %329 : f32 to vector<2x256xf32>
      %332 = arith.mulf %331, %330 : vector<2x256xf32>
      %c70 = arith.constant 70 : index
      %333 = memref.load %arg2[%c70] : memref<98xf32, #tpu.memory_space<smem>>
      %334 = vector.extract_strided_slice %328 {offsets = [2, 0], sizes = [2, 256], strides = [1, 1]} : vector<4x256xf32> to vector<2x256xf32>
      %335 = vector.broadcast %333 : f32 to vector<2x256xf32>
      %336 = arith.mulf %335, %334 : vector<2x256xf32>
      %337 = arith.addf %332, %336 : vector<2x256xf32>
      %338 = vector.broadcast %327 : vector<1x256xf32> to vector<2x256xf32>
      %339 = arith.mulf %337, %338 : vector<2x256xf32>
      %340 = arith.addf %326, %339 : vector<2x256xf32>
      %c1_70 = arith.constant 1 : index
      %c0_71 = arith.constant 0 : index
      %341 = vector.load %arg4[%c1_70, %c0_71] : memref<7x256xf32, #tpu.memory_space<vmem>>, vector<1x256xf32>
      %c2_i32 = arith.constant 2 : i32
      %342 = tpu.dynamic_rotate %14 by %c2_i32 dim 1 : vector<4x256xf32>, i32 -> vector<4x256xf32>
      %c22 = arith.constant 22 : index
      %343 = memref.load %arg2[%c22] : memref<98xf32, #tpu.memory_space<smem>>
      %344 = vector.extract_strided_slice %342 {offsets = [0, 0], sizes = [2, 256], strides = [1, 1]} : vector<4x256xf32> to vector<2x256xf32>
      %345 = vector.broadcast %343 : f32 to vector<2x256xf32>
      %346 = arith.mulf %345, %344 : vector<2x256xf32>
      %c71 = arith.constant 71 : index
      %347 = memref.load %arg2[%c71] : memref<98xf32, #tpu.memory_space<smem>>
      %348 = vector.extract_strided_slice %342 {offsets = [2, 0], sizes = [2, 256], strides = [1, 1]} : vector<4x256xf32> to vector<2x256xf32>
      %349 = vector.broadcast %347 : f32 to vector<2x256xf32>
      %350 = arith.mulf %349, %348 : vector<2x256xf32>
      %351 = arith.addf %346, %350 : vector<2x256xf32>
      %352 = vector.broadcast %341 : vector<1x256xf32> to vector<2x256xf32>
      %353 = arith.mulf %351, %352 : vector<2x256xf32>
      %354 = arith.addf %340, %353 : vector<2x256xf32>
      %c2_72 = arith.constant 2 : index
      %c0_73 = arith.constant 0 : index
      %355 = vector.load %arg4[%c2_72, %c0_73] : memref<7x256xf32, #tpu.memory_space<vmem>>, vector<1x256xf32>
      %c1_i32 = arith.constant 1 : i32
      %356 = tpu.dynamic_rotate %14 by %c1_i32 dim 1 : vector<4x256xf32>, i32 -> vector<4x256xf32>
      %c23 = arith.constant 23 : index
      %357 = memref.load %arg2[%c23] : memref<98xf32, #tpu.memory_space<smem>>
      %358 = vector.extract_strided_slice %356 {offsets = [0, 0], sizes = [2, 256], strides = [1, 1]} : vector<4x256xf32> to vector<2x256xf32>
      %359 = vector.broadcast %357 : f32 to vector<2x256xf32>
      %360 = arith.mulf %359, %358 : vector<2x256xf32>
      %c72 = arith.constant 72 : index
      %361 = memref.load %arg2[%c72] : memref<98xf32, #tpu.memory_space<smem>>
      %362 = vector.extract_strided_slice %356 {offsets = [2, 0], sizes = [2, 256], strides = [1, 1]} : vector<4x256xf32> to vector<2x256xf32>
      %363 = vector.broadcast %361 : f32 to vector<2x256xf32>
      %364 = arith.mulf %363, %362 : vector<2x256xf32>
      %365 = arith.addf %360, %364 : vector<2x256xf32>
      %366 = vector.broadcast %355 : vector<1x256xf32> to vector<2x256xf32>
      %367 = arith.mulf %365, %366 : vector<2x256xf32>
      %368 = arith.addf %354, %367 : vector<2x256xf32>
      %c3_74 = arith.constant 3 : index
      %c0_75 = arith.constant 0 : index
      %369 = vector.load %arg4[%c3_74, %c0_75] : memref<7x256xf32, #tpu.memory_space<vmem>>, vector<1x256xf32>
      %c0_i32_76 = arith.constant 0 : i32
      %370 = tpu.dynamic_rotate %14 by %c0_i32_76 dim 1 : vector<4x256xf32>, i32 -> vector<4x256xf32>
      %c24 = arith.constant 24 : index
      %371 = memref.load %arg2[%c24] : memref<98xf32, #tpu.memory_space<smem>>
      %372 = vector.extract_strided_slice %370 {offsets = [0, 0], sizes = [2, 256], strides = [1, 1]} : vector<4x256xf32> to vector<2x256xf32>
      %373 = vector.broadcast %371 : f32 to vector<2x256xf32>
      %374 = arith.mulf %373, %372 : vector<2x256xf32>
      %c73 = arith.constant 73 : index
      %375 = memref.load %arg2[%c73] : memref<98xf32, #tpu.memory_space<smem>>
      %376 = vector.extract_strided_slice %370 {offsets = [2, 0], sizes = [2, 256], strides = [1, 1]} : vector<4x256xf32> to vector<2x256xf32>
      %377 = vector.broadcast %375 : f32 to vector<2x256xf32>
      %378 = arith.mulf %377, %376 : vector<2x256xf32>
      %379 = arith.addf %374, %378 : vector<2x256xf32>
      %380 = vector.broadcast %369 : vector<1x256xf32> to vector<2x256xf32>
      %381 = arith.mulf %379, %380 : vector<2x256xf32>
      %382 = arith.addf %368, %381 : vector<2x256xf32>
      %c4_77 = arith.constant 4 : index
      %c0_78 = arith.constant 0 : index
      %383 = vector.load %arg4[%c4_77, %c0_78] : memref<7x256xf32, #tpu.memory_space<vmem>>, vector<1x256xf32>
      %c255_i32 = arith.constant 255 : i32
      %384 = tpu.dynamic_rotate %14 by %c255_i32 dim 1 : vector<4x256xf32>, i32 -> vector<4x256xf32>
      %c25 = arith.constant 25 : index
      %385 = memref.load %arg2[%c25] : memref<98xf32, #tpu.memory_space<smem>>
      %386 = vector.extract_strided_slice %384 {offsets = [0, 0], sizes = [2, 256], strides = [1, 1]} : vector<4x256xf32> to vector<2x256xf32>
      %387 = vector.broadcast %385 : f32 to vector<2x256xf32>
      %388 = arith.mulf %387, %386 : vector<2x256xf32>
      %c74 = arith.constant 74 : index
      %389 = memref.load %arg2[%c74] : memref<98xf32, #tpu.memory_space<smem>>
      %390 = vector.extract_strided_slice %384 {offsets = [2, 0], sizes = [2, 256], strides = [1, 1]} : vector<4x256xf32> to vector<2x256xf32>
      %391 = vector.broadcast %389 : f32 to vector<2x256xf32>
      %392 = arith.mulf %391, %390 : vector<2x256xf32>
      %393 = arith.addf %388, %392 : vector<2x256xf32>
      %394 = vector.broadcast %383 : vector<1x256xf32> to vector<2x256xf32>
      %395 = arith.mulf %393, %394 : vector<2x256xf32>
      %396 = arith.addf %382, %395 : vector<2x256xf32>
      %c5_79 = arith.constant 5 : index
      %c0_80 = arith.constant 0 : index
      %397 = vector.load %arg4[%c5_79, %c0_80] : memref<7x256xf32, #tpu.memory_space<vmem>>, vector<1x256xf32>
      %c254_i32 = arith.constant 254 : i32
      %398 = tpu.dynamic_rotate %14 by %c254_i32 dim 1 : vector<4x256xf32>, i32 -> vector<4x256xf32>
      %c26 = arith.constant 26 : index
      %399 = memref.load %arg2[%c26] : memref<98xf32, #tpu.memory_space<smem>>
      %400 = vector.extract_strided_slice %398 {offsets = [0, 0], sizes = [2, 256], strides = [1, 1]} : vector<4x256xf32> to vector<2x256xf32>
      %401 = vector.broadcast %399 : f32 to vector<2x256xf32>
      %402 = arith.mulf %401, %400 : vector<2x256xf32>
      %c75 = arith.constant 75 : index
      %403 = memref.load %arg2[%c75] : memref<98xf32, #tpu.memory_space<smem>>
      %404 = vector.extract_strided_slice %398 {offsets = [2, 0], sizes = [2, 256], strides = [1, 1]} : vector<4x256xf32> to vector<2x256xf32>
      %405 = vector.broadcast %403 : f32 to vector<2x256xf32>
      %406 = arith.mulf %405, %404 : vector<2x256xf32>
      %407 = arith.addf %402, %406 : vector<2x256xf32>
      %408 = vector.broadcast %397 : vector<1x256xf32> to vector<2x256xf32>
      %409 = arith.mulf %407, %408 : vector<2x256xf32>
      %410 = arith.addf %396, %409 : vector<2x256xf32>
      %c6_81 = arith.constant 6 : index
      %c0_82 = arith.constant 0 : index
      %411 = vector.load %arg4[%c6_81, %c0_82] : memref<7x256xf32, #tpu.memory_space<vmem>>, vector<1x256xf32>
      %c253_i32 = arith.constant 253 : i32
      %412 = tpu.dynamic_rotate %14 by %c253_i32 dim 1 : vector<4x256xf32>, i32 -> vector<4x256xf32>
      %c27 = arith.constant 27 : index
      %413 = memref.load %arg2[%c27] : memref<98xf32, #tpu.memory_space<smem>>
      %414 = vector.extract_strided_slice %412 {offsets = [0, 0], sizes = [2, 256], strides = [1, 1]} : vector<4x256xf32> to vector<2x256xf32>
      %415 = vector.broadcast %413 : f32 to vector<2x256xf32>
      %416 = arith.mulf %415, %414 : vector<2x256xf32>
      %c76 = arith.constant 76 : index
      %417 = memref.load %arg2[%c76] : memref<98xf32, #tpu.memory_space<smem>>
      %418 = vector.extract_strided_slice %412 {offsets = [2, 0], sizes = [2, 256], strides = [1, 1]} : vector<4x256xf32> to vector<2x256xf32>
      %419 = vector.broadcast %417 : f32 to vector<2x256xf32>
      %420 = arith.mulf %419, %418 : vector<2x256xf32>
      %421 = arith.addf %416, %420 : vector<2x256xf32>
      %422 = vector.broadcast %411 : vector<1x256xf32> to vector<2x256xf32>
      %423 = arith.mulf %421, %422 : vector<2x256xf32>
      %424 = arith.addf %410, %423 : vector<2x256xf32>
      %425 = vector.broadcast %325 : vector<1x256xf32> to vector<2x256xf32>
      %426 = arith.mulf %424, %425 : vector<2x256xf32>
      %427 = arith.addf %324, %426 : vector<2x256xf32>
      %c4_83 = arith.constant 4 : index
      %c0_84 = arith.constant 0 : index
      %428 = vector.load %arg3[%c4_83, %c0_84] : memref<7x256xf32, #tpu.memory_space<vmem>>, vector<1x256xf32>
      %cst_85 = arith.constant 0.000000e+00 : f32
      %429 = vector.broadcast %cst_85 : f32 to vector<2x256xf32>
      %c0_86 = arith.constant 0 : index
      %c0_87 = arith.constant 0 : index
      %430 = vector.load %arg4[%c0_86, %c0_87] : memref<7x256xf32, #tpu.memory_space<vmem>>, vector<1x256xf32>
      %c243_i32 = arith.constant 243 : i32
      %431 = tpu.dynamic_rotate %14 by %c243_i32 dim 1 : vector<4x256xf32>, i32 -> vector<4x256xf32>
      %c28 = arith.constant 28 : index
      %432 = memref.load %arg2[%c28] : memref<98xf32, #tpu.memory_space<smem>>
      %433 = vector.extract_strided_slice %431 {offsets = [0, 0], sizes = [2, 256], strides = [1, 1]} : vector<4x256xf32> to vector<2x256xf32>
      %434 = vector.broadcast %432 : f32 to vector<2x256xf32>
      %435 = arith.mulf %434, %433 : vector<2x256xf32>
      %c77 = arith.constant 77 : index
      %436 = memref.load %arg2[%c77] : memref<98xf32, #tpu.memory_space<smem>>
      %437 = vector.extract_strided_slice %431 {offsets = [2, 0], sizes = [2, 256], strides = [1, 1]} : vector<4x256xf32> to vector<2x256xf32>
      %438 = vector.broadcast %436 : f32 to vector<2x256xf32>
      %439 = arith.mulf %438, %437 : vector<2x256xf32>
      %440 = arith.addf %435, %439 : vector<2x256xf32>
      %441 = vector.broadcast %430 : vector<1x256xf32> to vector<2x256xf32>
      %442 = arith.mulf %440, %441 : vector<2x256xf32>
      %443 = arith.addf %429, %442 : vector<2x256xf32>
      %c1_88 = arith.constant 1 : index
      %c0_89 = arith.constant 0 : index
      %444 = vector.load %arg4[%c1_88, %c0_89] : memref<7x256xf32, #tpu.memory_space<vmem>>, vector<1x256xf32>
      %c242_i32 = arith.constant 242 : i32
      %445 = tpu.dynamic_rotate %14 by %c242_i32 dim 1 : vector<4x256xf32>, i32 -> vector<4x256xf32>
      %c29 = arith.constant 29 : index
      %446 = memref.load %arg2[%c29] : memref<98xf32, #tpu.memory_space<smem>>
      %447 = vector.extract_strided_slice %445 {offsets = [0, 0], sizes = [2, 256], strides = [1, 1]} : vector<4x256xf32> to vector<2x256xf32>
      %448 = vector.broadcast %446 : f32 to vector<2x256xf32>
      %449 = arith.mulf %448, %447 : vector<2x256xf32>
      %c78 = arith.constant 78 : index
      %450 = memref.load %arg2[%c78] : memref<98xf32, #tpu.memory_space<smem>>
      %451 = vector.extract_strided_slice %445 {offsets = [2, 0], sizes = [2, 256], strides = [1, 1]} : vector<4x256xf32> to vector<2x256xf32>
      %452 = vector.broadcast %450 : f32 to vector<2x256xf32>
      %453 = arith.mulf %452, %451 : vector<2x256xf32>
      %454 = arith.addf %449, %453 : vector<2x256xf32>
      %455 = vector.broadcast %444 : vector<1x256xf32> to vector<2x256xf32>
      %456 = arith.mulf %454, %455 : vector<2x256xf32>
      %457 = arith.addf %443, %456 : vector<2x256xf32>
      %c2_90 = arith.constant 2 : index
      %c0_91 = arith.constant 0 : index
      %458 = vector.load %arg4[%c2_90, %c0_91] : memref<7x256xf32, #tpu.memory_space<vmem>>, vector<1x256xf32>
      %c241_i32 = arith.constant 241 : i32
      %459 = tpu.dynamic_rotate %14 by %c241_i32 dim 1 : vector<4x256xf32>, i32 -> vector<4x256xf32>
      %c30 = arith.constant 30 : index
      %460 = memref.load %arg2[%c30] : memref<98xf32, #tpu.memory_space<smem>>
      %461 = vector.extract_strided_slice %459 {offsets = [0, 0], sizes = [2, 256], strides = [1, 1]} : vector<4x256xf32> to vector<2x256xf32>
      %462 = vector.broadcast %460 : f32 to vector<2x256xf32>
      %463 = arith.mulf %462, %461 : vector<2x256xf32>
      %c79 = arith.constant 79 : index
      %464 = memref.load %arg2[%c79] : memref<98xf32, #tpu.memory_space<smem>>
      %465 = vector.extract_strided_slice %459 {offsets = [2, 0], sizes = [2, 256], strides = [1, 1]} : vector<4x256xf32> to vector<2x256xf32>
      %466 = vector.broadcast %464 : f32 to vector<2x256xf32>
      %467 = arith.mulf %466, %465 : vector<2x256xf32>
      %468 = arith.addf %463, %467 : vector<2x256xf32>
      %469 = vector.broadcast %458 : vector<1x256xf32> to vector<2x256xf32>
      %470 = arith.mulf %468, %469 : vector<2x256xf32>
      %471 = arith.addf %457, %470 : vector<2x256xf32>
      %c3_92 = arith.constant 3 : index
      %c0_93 = arith.constant 0 : index
      %472 = vector.load %arg4[%c3_92, %c0_93] : memref<7x256xf32, #tpu.memory_space<vmem>>, vector<1x256xf32>
      %c240_i32 = arith.constant 240 : i32
      %473 = tpu.dynamic_rotate %14 by %c240_i32 dim 1 : vector<4x256xf32>, i32 -> vector<4x256xf32>
      %c31 = arith.constant 31 : index
      %474 = memref.load %arg2[%c31] : memref<98xf32, #tpu.memory_space<smem>>
      %475 = vector.extract_strided_slice %473 {offsets = [0, 0], sizes = [2, 256], strides = [1, 1]} : vector<4x256xf32> to vector<2x256xf32>
      %476 = vector.broadcast %474 : f32 to vector<2x256xf32>
      %477 = arith.mulf %476, %475 : vector<2x256xf32>
      %c80 = arith.constant 80 : index
      %478 = memref.load %arg2[%c80] : memref<98xf32, #tpu.memory_space<smem>>
      %479 = vector.extract_strided_slice %473 {offsets = [2, 0], sizes = [2, 256], strides = [1, 1]} : vector<4x256xf32> to vector<2x256xf32>
      %480 = vector.broadcast %478 : f32 to vector<2x256xf32>
      %481 = arith.mulf %480, %479 : vector<2x256xf32>
      %482 = arith.addf %477, %481 : vector<2x256xf32>
      %483 = vector.broadcast %472 : vector<1x256xf32> to vector<2x256xf32>
      %484 = arith.mulf %482, %483 : vector<2x256xf32>
      %485 = arith.addf %471, %484 : vector<2x256xf32>
      %c4_94 = arith.constant 4 : index
      %c0_95 = arith.constant 0 : index
      %486 = vector.load %arg4[%c4_94, %c0_95] : memref<7x256xf32, #tpu.memory_space<vmem>>, vector<1x256xf32>
      %c239_i32 = arith.constant 239 : i32
      %487 = tpu.dynamic_rotate %14 by %c239_i32 dim 1 : vector<4x256xf32>, i32 -> vector<4x256xf32>
      %c32 = arith.constant 32 : index
      %488 = memref.load %arg2[%c32] : memref<98xf32, #tpu.memory_space<smem>>
      %489 = vector.extract_strided_slice %487 {offsets = [0, 0], sizes = [2, 256], strides = [1, 1]} : vector<4x256xf32> to vector<2x256xf32>
      %490 = vector.broadcast %488 : f32 to vector<2x256xf32>
      %491 = arith.mulf %490, %489 : vector<2x256xf32>
      %c81 = arith.constant 81 : index
      %492 = memref.load %arg2[%c81] : memref<98xf32, #tpu.memory_space<smem>>
      %493 = vector.extract_strided_slice %487 {offsets = [2, 0], sizes = [2, 256], strides = [1, 1]} : vector<4x256xf32> to vector<2x256xf32>
      %494 = vector.broadcast %492 : f32 to vector<2x256xf32>
      %495 = arith.mulf %494, %493 : vector<2x256xf32>
      %496 = arith.addf %491, %495 : vector<2x256xf32>
      %497 = vector.broadcast %486 : vector<1x256xf32> to vector<2x256xf32>
      %498 = arith.mulf %496, %497 : vector<2x256xf32>
      %499 = arith.addf %485, %498 : vector<2x256xf32>
      %c5_96 = arith.constant 5 : index
      %c0_97 = arith.constant 0 : index
      %500 = vector.load %arg4[%c5_96, %c0_97] : memref<7x256xf32, #tpu.memory_space<vmem>>, vector<1x256xf32>
      %c238_i32 = arith.constant 238 : i32
      %501 = tpu.dynamic_rotate %14 by %c238_i32 dim 1 : vector<4x256xf32>, i32 -> vector<4x256xf32>
      %c33 = arith.constant 33 : index
      %502 = memref.load %arg2[%c33] : memref<98xf32, #tpu.memory_space<smem>>
      %503 = vector.extract_strided_slice %501 {offsets = [0, 0], sizes = [2, 256], strides = [1, 1]} : vector<4x256xf32> to vector<2x256xf32>
      %504 = vector.broadcast %502 : f32 to vector<2x256xf32>
      %505 = arith.mulf %504, %503 : vector<2x256xf32>
      %c82 = arith.constant 82 : index
      %506 = memref.load %arg2[%c82] : memref<98xf32, #tpu.memory_space<smem>>
      %507 = vector.extract_strided_slice %501 {offsets = [2, 0], sizes = [2, 256], strides = [1, 1]} : vector<4x256xf32> to vector<2x256xf32>
      %508 = vector.broadcast %506 : f32 to vector<2x256xf32>
      %509 = arith.mulf %508, %507 : vector<2x256xf32>
      %510 = arith.addf %505, %509 : vector<2x256xf32>
      %511 = vector.broadcast %500 : vector<1x256xf32> to vector<2x256xf32>
      %512 = arith.mulf %510, %511 : vector<2x256xf32>
      %513 = arith.addf %499, %512 : vector<2x256xf32>
      %c6_98 = arith.constant 6 : index
      %c0_99 = arith.constant 0 : index
      %514 = vector.load %arg4[%c6_98, %c0_99] : memref<7x256xf32, #tpu.memory_space<vmem>>, vector<1x256xf32>
      %c237_i32 = arith.constant 237 : i32
      %515 = tpu.dynamic_rotate %14 by %c237_i32 dim 1 : vector<4x256xf32>, i32 -> vector<4x256xf32>
      %c34 = arith.constant 34 : index
      %516 = memref.load %arg2[%c34] : memref<98xf32, #tpu.memory_space<smem>>
      %517 = vector.extract_strided_slice %515 {offsets = [0, 0], sizes = [2, 256], strides = [1, 1]} : vector<4x256xf32> to vector<2x256xf32>
      %518 = vector.broadcast %516 : f32 to vector<2x256xf32>
      %519 = arith.mulf %518, %517 : vector<2x256xf32>
      %c83 = arith.constant 83 : index
      %520 = memref.load %arg2[%c83] : memref<98xf32, #tpu.memory_space<smem>>
      %521 = vector.extract_strided_slice %515 {offsets = [2, 0], sizes = [2, 256], strides = [1, 1]} : vector<4x256xf32> to vector<2x256xf32>
      %522 = vector.broadcast %520 : f32 to vector<2x256xf32>
      %523 = arith.mulf %522, %521 : vector<2x256xf32>
      %524 = arith.addf %519, %523 : vector<2x256xf32>
      %525 = vector.broadcast %514 : vector<1x256xf32> to vector<2x256xf32>
      %526 = arith.mulf %524, %525 : vector<2x256xf32>
      %527 = arith.addf %513, %526 : vector<2x256xf32>
      %528 = vector.broadcast %428 : vector<1x256xf32> to vector<2x256xf32>
      %529 = arith.mulf %527, %528 : vector<2x256xf32>
      %530 = arith.addf %427, %529 : vector<2x256xf32>
      %c5_100 = arith.constant 5 : index
      %c0_101 = arith.constant 0 : index
      %531 = vector.load %arg3[%c5_100, %c0_101] : memref<7x256xf32, #tpu.memory_space<vmem>>, vector<1x256xf32>
      %cst_102 = arith.constant 0.000000e+00 : f32
      %532 = vector.broadcast %cst_102 : f32 to vector<2x256xf32>
      %c0_103 = arith.constant 0 : index
      %c0_104 = arith.constant 0 : index
      %533 = vector.load %arg4[%c0_103, %c0_104] : memref<7x256xf32, #tpu.memory_space<vmem>>, vector<1x256xf32>
      %c227_i32 = arith.constant 227 : i32
      %534 = tpu.dynamic_rotate %14 by %c227_i32 dim 1 : vector<4x256xf32>, i32 -> vector<4x256xf32>
      %c35 = arith.constant 35 : index
      %535 = memref.load %arg2[%c35] : memref<98xf32, #tpu.memory_space<smem>>
      %536 = vector.extract_strided_slice %534 {offsets = [0, 0], sizes = [2, 256], strides = [1, 1]} : vector<4x256xf32> to vector<2x256xf32>
      %537 = vector.broadcast %535 : f32 to vector<2x256xf32>
      %538 = arith.mulf %537, %536 : vector<2x256xf32>
      %c84 = arith.constant 84 : index
      %539 = memref.load %arg2[%c84] : memref<98xf32, #tpu.memory_space<smem>>
      %540 = vector.extract_strided_slice %534 {offsets = [2, 0], sizes = [2, 256], strides = [1, 1]} : vector<4x256xf32> to vector<2x256xf32>
      %541 = vector.broadcast %539 : f32 to vector<2x256xf32>
      %542 = arith.mulf %541, %540 : vector<2x256xf32>
      %543 = arith.addf %538, %542 : vector<2x256xf32>
      %544 = vector.broadcast %533 : vector<1x256xf32> to vector<2x256xf32>
      %545 = arith.mulf %543, %544 : vector<2x256xf32>
      %546 = arith.addf %532, %545 : vector<2x256xf32>
      %c1_105 = arith.constant 1 : index
      %c0_106 = arith.constant 0 : index
      %547 = vector.load %arg4[%c1_105, %c0_106] : memref<7x256xf32, #tpu.memory_space<vmem>>, vector<1x256xf32>
      %c226_i32 = arith.constant 226 : i32
      %548 = tpu.dynamic_rotate %14 by %c226_i32 dim 1 : vector<4x256xf32>, i32 -> vector<4x256xf32>
      %c36 = arith.constant 36 : index
      %549 = memref.load %arg2[%c36] : memref<98xf32, #tpu.memory_space<smem>>
      %550 = vector.extract_strided_slice %548 {offsets = [0, 0], sizes = [2, 256], strides = [1, 1]} : vector<4x256xf32> to vector<2x256xf32>
      %551 = vector.broadcast %549 : f32 to vector<2x256xf32>
      %552 = arith.mulf %551, %550 : vector<2x256xf32>
      %c85 = arith.constant 85 : index
      %553 = memref.load %arg2[%c85] : memref<98xf32, #tpu.memory_space<smem>>
      %554 = vector.extract_strided_slice %548 {offsets = [2, 0], sizes = [2, 256], strides = [1, 1]} : vector<4x256xf32> to vector<2x256xf32>
      %555 = vector.broadcast %553 : f32 to vector<2x256xf32>
      %556 = arith.mulf %555, %554 : vector<2x256xf32>
      %557 = arith.addf %552, %556 : vector<2x256xf32>
      %558 = vector.broadcast %547 : vector<1x256xf32> to vector<2x256xf32>
      %559 = arith.mulf %557, %558 : vector<2x256xf32>
      %560 = arith.addf %546, %559 : vector<2x256xf32>
      %c2_107 = arith.constant 2 : index
      %c0_108 = arith.constant 0 : index
      %561 = vector.load %arg4[%c2_107, %c0_108] : memref<7x256xf32, #tpu.memory_space<vmem>>, vector<1x256xf32>
      %c225_i32 = arith.constant 225 : i32
      %562 = tpu.dynamic_rotate %14 by %c225_i32 dim 1 : vector<4x256xf32>, i32 -> vector<4x256xf32>
      %c37 = arith.constant 37 : index
      %563 = memref.load %arg2[%c37] : memref<98xf32, #tpu.memory_space<smem>>
      %564 = vector.extract_strided_slice %562 {offsets = [0, 0], sizes = [2, 256], strides = [1, 1]} : vector<4x256xf32> to vector<2x256xf32>
      %565 = vector.broadcast %563 : f32 to vector<2x256xf32>
      %566 = arith.mulf %565, %564 : vector<2x256xf32>
      %c86 = arith.constant 86 : index
      %567 = memref.load %arg2[%c86] : memref<98xf32, #tpu.memory_space<smem>>
      %568 = vector.extract_strided_slice %562 {offsets = [2, 0], sizes = [2, 256], strides = [1, 1]} : vector<4x256xf32> to vector<2x256xf32>
      %569 = vector.broadcast %567 : f32 to vector<2x256xf32>
      %570 = arith.mulf %569, %568 : vector<2x256xf32>
      %571 = arith.addf %566, %570 : vector<2x256xf32>
      %572 = vector.broadcast %561 : vector<1x256xf32> to vector<2x256xf32>
      %573 = arith.mulf %571, %572 : vector<2x256xf32>
      %574 = arith.addf %560, %573 : vector<2x256xf32>
      %c3_109 = arith.constant 3 : index
      %c0_110 = arith.constant 0 : index
      %575 = vector.load %arg4[%c3_109, %c0_110] : memref<7x256xf32, #tpu.memory_space<vmem>>, vector<1x256xf32>
      %c224_i32 = arith.constant 224 : i32
      %576 = tpu.dynamic_rotate %14 by %c224_i32 dim 1 : vector<4x256xf32>, i32 -> vector<4x256xf32>
      %c38 = arith.constant 38 : index
      %577 = memref.load %arg2[%c38] : memref<98xf32, #tpu.memory_space<smem>>
      %578 = vector.extract_strided_slice %576 {offsets = [0, 0], sizes = [2, 256], strides = [1, 1]} : vector<4x256xf32> to vector<2x256xf32>
      %579 = vector.broadcast %577 : f32 to vector<2x256xf32>
      %580 = arith.mulf %579, %578 : vector<2x256xf32>
      %c87 = arith.constant 87 : index
      %581 = memref.load %arg2[%c87] : memref<98xf32, #tpu.memory_space<smem>>
      %582 = vector.extract_strided_slice %576 {offsets = [2, 0], sizes = [2, 256], strides = [1, 1]} : vector<4x256xf32> to vector<2x256xf32>
      %583 = vector.broadcast %581 : f32 to vector<2x256xf32>
      %584 = arith.mulf %583, %582 : vector<2x256xf32>
      %585 = arith.addf %580, %584 : vector<2x256xf32>
      %586 = vector.broadcast %575 : vector<1x256xf32> to vector<2x256xf32>
      %587 = arith.mulf %585, %586 : vector<2x256xf32>
      %588 = arith.addf %574, %587 : vector<2x256xf32>
      %c4_111 = arith.constant 4 : index
      %c0_112 = arith.constant 0 : index
      %589 = vector.load %arg4[%c4_111, %c0_112] : memref<7x256xf32, #tpu.memory_space<vmem>>, vector<1x256xf32>
      %c223_i32 = arith.constant 223 : i32
      %590 = tpu.dynamic_rotate %14 by %c223_i32 dim 1 : vector<4x256xf32>, i32 -> vector<4x256xf32>
      %c39 = arith.constant 39 : index
      %591 = memref.load %arg2[%c39] : memref<98xf32, #tpu.memory_space<smem>>
      %592 = vector.extract_strided_slice %590 {offsets = [0, 0], sizes = [2, 256], strides = [1, 1]} : vector<4x256xf32> to vector<2x256xf32>
      %593 = vector.broadcast %591 : f32 to vector<2x256xf32>
      %594 = arith.mulf %593, %592 : vector<2x256xf32>
      %c88 = arith.constant 88 : index
      %595 = memref.load %arg2[%c88] : memref<98xf32, #tpu.memory_space<smem>>
      %596 = vector.extract_strided_slice %590 {offsets = [2, 0], sizes = [2, 256], strides = [1, 1]} : vector<4x256xf32> to vector<2x256xf32>
      %597 = vector.broadcast %595 : f32 to vector<2x256xf32>
      %598 = arith.mulf %597, %596 : vector<2x256xf32>
      %599 = arith.addf %594, %598 : vector<2x256xf32>
      %600 = vector.broadcast %589 : vector<1x256xf32> to vector<2x256xf32>
      %601 = arith.mulf %599, %600 : vector<2x256xf32>
      %602 = arith.addf %588, %601 : vector<2x256xf32>
      %c5_113 = arith.constant 5 : index
      %c0_114 = arith.constant 0 : index
      %603 = vector.load %arg4[%c5_113, %c0_114] : memref<7x256xf32, #tpu.memory_space<vmem>>, vector<1x256xf32>
      %c222_i32 = arith.constant 222 : i32
      %604 = tpu.dynamic_rotate %14 by %c222_i32 dim 1 : vector<4x256xf32>, i32 -> vector<4x256xf32>
      %c40 = arith.constant 40 : index
      %605 = memref.load %arg2[%c40] : memref<98xf32, #tpu.memory_space<smem>>
      %606 = vector.extract_strided_slice %604 {offsets = [0, 0], sizes = [2, 256], strides = [1, 1]} : vector<4x256xf32> to vector<2x256xf32>
      %607 = vector.broadcast %605 : f32 to vector<2x256xf32>
      %608 = arith.mulf %607, %606 : vector<2x256xf32>
      %c89 = arith.constant 89 : index
      %609 = memref.load %arg2[%c89] : memref<98xf32, #tpu.memory_space<smem>>
      %610 = vector.extract_strided_slice %604 {offsets = [2, 0], sizes = [2, 256], strides = [1, 1]} : vector<4x256xf32> to vector<2x256xf32>
      %611 = vector.broadcast %609 : f32 to vector<2x256xf32>
      %612 = arith.mulf %611, %610 : vector<2x256xf32>
      %613 = arith.addf %608, %612 : vector<2x256xf32>
      %614 = vector.broadcast %603 : vector<1x256xf32> to vector<2x256xf32>
      %615 = arith.mulf %613, %614 : vector<2x256xf32>
      %616 = arith.addf %602, %615 : vector<2x256xf32>
      %c6_115 = arith.constant 6 : index
      %c0_116 = arith.constant 0 : index
      %617 = vector.load %arg4[%c6_115, %c0_116] : memref<7x256xf32, #tpu.memory_space<vmem>>, vector<1x256xf32>
      %c221_i32 = arith.constant 221 : i32
      %618 = tpu.dynamic_rotate %14 by %c221_i32 dim 1 : vector<4x256xf32>, i32 -> vector<4x256xf32>
      %c41 = arith.constant 41 : index
      %619 = memref.load %arg2[%c41] : memref<98xf32, #tpu.memory_space<smem>>
      %620 = vector.extract_strided_slice %618 {offsets = [0, 0], sizes = [2, 256], strides = [1, 1]} : vector<4x256xf32> to vector<2x256xf32>
      %621 = vector.broadcast %619 : f32 to vector<2x256xf32>
      %622 = arith.mulf %621, %620 : vector<2x256xf32>
      %c90 = arith.constant 90 : index
      %623 = memref.load %arg2[%c90] : memref<98xf32, #tpu.memory_space<smem>>
      %624 = vector.extract_strided_slice %618 {offsets = [2, 0], sizes = [2, 256], strides = [1, 1]} : vector<4x256xf32> to vector<2x256xf32>
      %625 = vector.broadcast %623 : f32 to vector<2x256xf32>
      %626 = arith.mulf %625, %624 : vector<2x256xf32>
      %627 = arith.addf %622, %626 : vector<2x256xf32>
      %628 = vector.broadcast %617 : vector<1x256xf32> to vector<2x256xf32>
      %629 = arith.mulf %627, %628 : vector<2x256xf32>
      %630 = arith.addf %616, %629 : vector<2x256xf32>
      %631 = vector.broadcast %531 : vector<1x256xf32> to vector<2x256xf32>
      %632 = arith.mulf %630, %631 : vector<2x256xf32>
      %633 = arith.addf %530, %632 : vector<2x256xf32>
      %c6_117 = arith.constant 6 : index
      %c0_118 = arith.constant 0 : index
      %634 = vector.load %arg3[%c6_117, %c0_118] : memref<7x256xf32, #tpu.memory_space<vmem>>, vector<1x256xf32>
      %cst_119 = arith.constant 0.000000e+00 : f32
      %635 = vector.broadcast %cst_119 : f32 to vector<2x256xf32>
      %c0_120 = arith.constant 0 : index
      %c0_121 = arith.constant 0 : index
      %636 = vector.load %arg4[%c0_120, %c0_121] : memref<7x256xf32, #tpu.memory_space<vmem>>, vector<1x256xf32>
      %c211_i32 = arith.constant 211 : i32
      %637 = tpu.dynamic_rotate %14 by %c211_i32 dim 1 : vector<4x256xf32>, i32 -> vector<4x256xf32>
      %c42 = arith.constant 42 : index
      %638 = memref.load %arg2[%c42] : memref<98xf32, #tpu.memory_space<smem>>
      %639 = vector.extract_strided_slice %637 {offsets = [0, 0], sizes = [2, 256], strides = [1, 1]} : vector<4x256xf32> to vector<2x256xf32>
      %640 = vector.broadcast %638 : f32 to vector<2x256xf32>
      %641 = arith.mulf %640, %639 : vector<2x256xf32>
      %c91 = arith.constant 91 : index
      %642 = memref.load %arg2[%c91] : memref<98xf32, #tpu.memory_space<smem>>
      %643 = vector.extract_strided_slice %637 {offsets = [2, 0], sizes = [2, 256], strides = [1, 1]} : vector<4x256xf32> to vector<2x256xf32>
      %644 = vector.broadcast %642 : f32 to vector<2x256xf32>
      %645 = arith.mulf %644, %643 : vector<2x256xf32>
      %646 = arith.addf %641, %645 : vector<2x256xf32>
      %647 = vector.broadcast %636 : vector<1x256xf32> to vector<2x256xf32>
      %648 = arith.mulf %646, %647 : vector<2x256xf32>
      %649 = arith.addf %635, %648 : vector<2x256xf32>
      %c1_122 = arith.constant 1 : index
      %c0_123 = arith.constant 0 : index
      %650 = vector.load %arg4[%c1_122, %c0_123] : memref<7x256xf32, #tpu.memory_space<vmem>>, vector<1x256xf32>
      %c210_i32 = arith.constant 210 : i32
      %651 = tpu.dynamic_rotate %14 by %c210_i32 dim 1 : vector<4x256xf32>, i32 -> vector<4x256xf32>
      %c43 = arith.constant 43 : index
      %652 = memref.load %arg2[%c43] : memref<98xf32, #tpu.memory_space<smem>>
      %653 = vector.extract_strided_slice %651 {offsets = [0, 0], sizes = [2, 256], strides = [1, 1]} : vector<4x256xf32> to vector<2x256xf32>
      %654 = vector.broadcast %652 : f32 to vector<2x256xf32>
      %655 = arith.mulf %654, %653 : vector<2x256xf32>
      %c92 = arith.constant 92 : index
      %656 = memref.load %arg2[%c92] : memref<98xf32, #tpu.memory_space<smem>>
      %657 = vector.extract_strided_slice %651 {offsets = [2, 0], sizes = [2, 256], strides = [1, 1]} : vector<4x256xf32> to vector<2x256xf32>
      %658 = vector.broadcast %656 : f32 to vector<2x256xf32>
      %659 = arith.mulf %658, %657 : vector<2x256xf32>
      %660 = arith.addf %655, %659 : vector<2x256xf32>
      %661 = vector.broadcast %650 : vector<1x256xf32> to vector<2x256xf32>
      %662 = arith.mulf %660, %661 : vector<2x256xf32>
      %663 = arith.addf %649, %662 : vector<2x256xf32>
      %c2_124 = arith.constant 2 : index
      %c0_125 = arith.constant 0 : index
      %664 = vector.load %arg4[%c2_124, %c0_125] : memref<7x256xf32, #tpu.memory_space<vmem>>, vector<1x256xf32>
      %c209_i32 = arith.constant 209 : i32
      %665 = tpu.dynamic_rotate %14 by %c209_i32 dim 1 : vector<4x256xf32>, i32 -> vector<4x256xf32>
      %c44 = arith.constant 44 : index
      %666 = memref.load %arg2[%c44] : memref<98xf32, #tpu.memory_space<smem>>
      %667 = vector.extract_strided_slice %665 {offsets = [0, 0], sizes = [2, 256], strides = [1, 1]} : vector<4x256xf32> to vector<2x256xf32>
      %668 = vector.broadcast %666 : f32 to vector<2x256xf32>
      %669 = arith.mulf %668, %667 : vector<2x256xf32>
      %c93 = arith.constant 93 : index
      %670 = memref.load %arg2[%c93] : memref<98xf32, #tpu.memory_space<smem>>
      %671 = vector.extract_strided_slice %665 {offsets = [2, 0], sizes = [2, 256], strides = [1, 1]} : vector<4x256xf32> to vector<2x256xf32>
      %672 = vector.broadcast %670 : f32 to vector<2x256xf32>
      %673 = arith.mulf %672, %671 : vector<2x256xf32>
      %674 = arith.addf %669, %673 : vector<2x256xf32>
      %675 = vector.broadcast %664 : vector<1x256xf32> to vector<2x256xf32>
      %676 = arith.mulf %674, %675 : vector<2x256xf32>
      %677 = arith.addf %663, %676 : vector<2x256xf32>
      %c3_126 = arith.constant 3 : index
      %c0_127 = arith.constant 0 : index
      %678 = vector.load %arg4[%c3_126, %c0_127] : memref<7x256xf32, #tpu.memory_space<vmem>>, vector<1x256xf32>
      %c208_i32 = arith.constant 208 : i32
      %679 = tpu.dynamic_rotate %14 by %c208_i32 dim 1 : vector<4x256xf32>, i32 -> vector<4x256xf32>
      %c45 = arith.constant 45 : index
      %680 = memref.load %arg2[%c45] : memref<98xf32, #tpu.memory_space<smem>>
      %681 = vector.extract_strided_slice %679 {offsets = [0, 0], sizes = [2, 256], strides = [1, 1]} : vector<4x256xf32> to vector<2x256xf32>
      %682 = vector.broadcast %680 : f32 to vector<2x256xf32>
      %683 = arith.mulf %682, %681 : vector<2x256xf32>
      %c94 = arith.constant 94 : index
      %684 = memref.load %arg2[%c94] : memref<98xf32, #tpu.memory_space<smem>>
      %685 = vector.extract_strided_slice %679 {offsets = [2, 0], sizes = [2, 256], strides = [1, 1]} : vector<4x256xf32> to vector<2x256xf32>
      %686 = vector.broadcast %684 : f32 to vector<2x256xf32>
      %687 = arith.mulf %686, %685 : vector<2x256xf32>
      %688 = arith.addf %683, %687 : vector<2x256xf32>
      %689 = vector.broadcast %678 : vector<1x256xf32> to vector<2x256xf32>
      %690 = arith.mulf %688, %689 : vector<2x256xf32>
      %691 = arith.addf %677, %690 : vector<2x256xf32>
      %c4_128 = arith.constant 4 : index
      %c0_129 = arith.constant 0 : index
      %692 = vector.load %arg4[%c4_128, %c0_129] : memref<7x256xf32, #tpu.memory_space<vmem>>, vector<1x256xf32>
      %c207_i32 = arith.constant 207 : i32
      %693 = tpu.dynamic_rotate %14 by %c207_i32 dim 1 : vector<4x256xf32>, i32 -> vector<4x256xf32>
      %c46 = arith.constant 46 : index
      %694 = memref.load %arg2[%c46] : memref<98xf32, #tpu.memory_space<smem>>
      %695 = vector.extract_strided_slice %693 {offsets = [0, 0], sizes = [2, 256], strides = [1, 1]} : vector<4x256xf32> to vector<2x256xf32>
      %696 = vector.broadcast %694 : f32 to vector<2x256xf32>
      %697 = arith.mulf %696, %695 : vector<2x256xf32>
      %c95 = arith.constant 95 : index
      %698 = memref.load %arg2[%c95] : memref<98xf32, #tpu.memory_space<smem>>
      %699 = vector.extract_strided_slice %693 {offsets = [2, 0], sizes = [2, 256], strides = [1, 1]} : vector<4x256xf32> to vector<2x256xf32>
      %700 = vector.broadcast %698 : f32 to vector<2x256xf32>
      %701 = arith.mulf %700, %699 : vector<2x256xf32>
      %702 = arith.addf %697, %701 : vector<2x256xf32>
      %703 = vector.broadcast %692 : vector<1x256xf32> to vector<2x256xf32>
      %704 = arith.mulf %702, %703 : vector<2x256xf32>
      %705 = arith.addf %691, %704 : vector<2x256xf32>
      %c5_130 = arith.constant 5 : index
      %c0_131 = arith.constant 0 : index
      %706 = vector.load %arg4[%c5_130, %c0_131] : memref<7x256xf32, #tpu.memory_space<vmem>>, vector<1x256xf32>
      %c206_i32 = arith.constant 206 : i32
      %707 = tpu.dynamic_rotate %14 by %c206_i32 dim 1 : vector<4x256xf32>, i32 -> vector<4x256xf32>
      %c47 = arith.constant 47 : index
      %708 = memref.load %arg2[%c47] : memref<98xf32, #tpu.memory_space<smem>>
      %709 = vector.extract_strided_slice %707 {offsets = [0, 0], sizes = [2, 256], strides = [1, 1]} : vector<4x256xf32> to vector<2x256xf32>
      %710 = vector.broadcast %708 : f32 to vector<2x256xf32>
      %711 = arith.mulf %710, %709 : vector<2x256xf32>
      %c96 = arith.constant 96 : index
      %712 = memref.load %arg2[%c96] : memref<98xf32, #tpu.memory_space<smem>>
      %713 = vector.extract_strided_slice %707 {offsets = [2, 0], sizes = [2, 256], strides = [1, 1]} : vector<4x256xf32> to vector<2x256xf32>
      %714 = vector.broadcast %712 : f32 to vector<2x256xf32>
      %715 = arith.mulf %714, %713 : vector<2x256xf32>
      %716 = arith.addf %711, %715 : vector<2x256xf32>
      %717 = vector.broadcast %706 : vector<1x256xf32> to vector<2x256xf32>
      %718 = arith.mulf %716, %717 : vector<2x256xf32>
      %719 = arith.addf %705, %718 : vector<2x256xf32>
      %c6_132 = arith.constant 6 : index
      %c0_133 = arith.constant 0 : index
      %720 = vector.load %arg4[%c6_132, %c0_133] : memref<7x256xf32, #tpu.memory_space<vmem>>, vector<1x256xf32>
      %c205_i32 = arith.constant 205 : i32
      %721 = tpu.dynamic_rotate %14 by %c205_i32 dim 1 : vector<4x256xf32>, i32 -> vector<4x256xf32>
      %c48 = arith.constant 48 : index
      %722 = memref.load %arg2[%c48] : memref<98xf32, #tpu.memory_space<smem>>
      %723 = vector.extract_strided_slice %721 {offsets = [0, 0], sizes = [2, 256], strides = [1, 1]} : vector<4x256xf32> to vector<2x256xf32>
      %724 = vector.broadcast %722 : f32 to vector<2x256xf32>
      %725 = arith.mulf %724, %723 : vector<2x256xf32>
      %c97 = arith.constant 97 : index
      %726 = memref.load %arg2[%c97] : memref<98xf32, #tpu.memory_space<smem>>
      %727 = vector.extract_strided_slice %721 {offsets = [2, 0], sizes = [2, 256], strides = [1, 1]} : vector<4x256xf32> to vector<2x256xf32>
      %728 = vector.broadcast %726 : f32 to vector<2x256xf32>
      %729 = arith.mulf %728, %727 : vector<2x256xf32>
      %730 = arith.addf %725, %729 : vector<2x256xf32>
      %731 = vector.broadcast %720 : vector<1x256xf32> to vector<2x256xf32>
      %732 = arith.mulf %730, %731 : vector<2x256xf32>
      %733 = arith.addf %719, %732 : vector<2x256xf32>
      %734 = vector.broadcast %634 : vector<1x256xf32> to vector<2x256xf32>
      %735 = arith.mulf %733, %734 : vector<2x256xf32>
      %736 = arith.addf %633, %735 : vector<2x256xf32>
      %737 = arith.negf %736 : vector<2x256xf32>
      %738 = math.exp %737 : vector<2x256xf32>
      %cst_134 = arith.constant 1.000000e+00 : f32
      %739 = vector.broadcast %cst_134 : f32 to vector<2x256xf32>
      %740 = arith.addf %739, %738 : vector<2x256xf32>
      %741 = arith.divf %739, %740 : vector<2x256xf32>
      %c0_135 = arith.constant 0 : index
      %c0_136 = arith.constant 0 : index
      %742 = vector.load %arg6[%c0_135, %c0_136] : memref<2x256xf32, #tpu.memory_space<vmem>>, vector<2x256xf32>
      tpu.vector_store %arg6[%c0_135, %c0_136], %741 {strides = array<i32>} : memref<2x256xf32, #tpu.memory_space<vmem>>, vector<2x256xf32>,
    } else {
    }
    return
  }
  func.func @transform_0(%arg0: i32, %arg1: i32) -> i32 {
    %c0_i32 = arith.constant 0 : i32
    %c0_i32_0 = arith.constant 0 : i32
    return %c0_i32 : i32
  }
  func.func @transform_1(%arg0: i32, %arg1: i32) -> (i32, i32) {
    %c0_i32 = arith.constant 0 : i32
    %c0_i32_0 = arith.constant 0 : i32
    %c0_i32_1 = arith.constant 0 : i32
    return %c0_i32, %c0_i32_0 : i32, i32
  }
  func.func @transform_2(%arg0: i32, %arg1: i32) -> (i32, i32) {
    %c0_i32 = arith.constant 0 : i32
    %c0_i32_0 = arith.constant 0 : i32
    %c0_i32_1 = arith.constant 0 : i32
    return %c0_i32, %c0_i32_0 : i32, i32
  }
  func.func @transform_3(%arg0: i32, %arg1: i32) -> (i32, i32, i32) {
    %c0_i32 = arith.constant 0 : i32
    %c0_i32_0 = arith.constant 0 : i32
    return %arg0, %arg1, %c0_i32 : i32, i32, i32
  }
  func.func @transform_4(%arg0: i32, %arg1: i32) -> (i32, i32) {
    %c0_i32 = arith.constant 0 : i32
    %c0_i32_0 = arith.constant 0 : i32
    return %arg0, %c0_i32 : i32, i32
  }
}

</mosaic_0001>

<bundles_post_ra>
// kernel: tpu_custom_call.1
= control target key start
LH: loop header
LB: loop body
LE: loop exit
PB: predicated region body
PF: predicated region fallthrough
CT: control target
= control target key end

     0   :  { %s3692_s0 = inlined_call_operand.hbm [shape: f32[98], index: 0, kind: input, shape index: {}]   ;;  %s3693_s1 = inlined_call_operand.hbm [shape: f32[7,256], index: 1, kind: input, shape index: {}]   ;;  %s3694_s2 = inlined_call_operand.hbm [shape: f32[7,256], index: 2, kind: input, shape index: {}]   ;;  %s3695_s3 = inlined_call_operand.hbm [shape: f32[2,4,256], index: 3, kind: input, shape index: {}]   ;;  %s3696_s4 = inlined_call_operand.hbm [shape: f32[2,256], index: 4, kind: output, shape index: {}]  }
   0x1   :  { %3734 = sst [smem:[#allocation35_spill]] %s3696_s4 }
   0x2   :  { %9 = vsyncpa [#allocation7], 0 }
   0x3   :  { %10 = vsyncpa [#allocation5], 0 }
   0x4   :  { %11 = vsyncpa [#allocation10], 0 }
   0x5   :  { %12 = vsyncpa [#allocation6], 0  ;;  %s2143_s15 = smov [#allocation9]   ;;  %s2144_s17 = smov [#allocation8]  }
   0x6   :  { %s37_s16 = sshll.u32 %s2143_s15, 4  ;;  %s27_s18 = sshll.u32 %s2144_s17, 4  ;;  %s38_s16 = int_to_ptr.vmem [resolvable:$true] %s37_s16  ;;  %s28_s18 = int_to_ptr.vmem [resolvable:$true] %s27_s18 }
   0x7   :  { %s2037_s21 = scalar_lea.hbm %s3694_s2, 256 }
   0x8   :  { %p2038_p0 = scmp.ne.s32.totalorder %s3694_s2, %s2037_s21  ;;  %p2041_p1 = scmp.lt.u32.totalorder %s2037_s21, %s3694_s2 }
   0xa   :  { %p2043_p2 = pnand %p2041_p1, %p2038_p0 }
   0xc   :  { %2046 = shalt.err (!%p2043_p2)
}
   0xd   :  { %s2047_s26 = scalar_lea.vmem %s38_s16, 256  ;;  %p2052_p4 = scmp.lt.s32.totalorder %s38_s16, %s38_s16 }
   0xe   :  { %p2048_p3 = scmp.ne.s32.totalorder %s38_s16, %s2047_s26  ;;  %p2053_p5 = scmp.lt.s32.totalorder %s2047_s26, %s2047_s26 }
  0x10   :  { %p2054_p6 = por %p2053_p5, %p2052_p4 }
  0x12   :  { %p2055_p7 = pnand %p2054_p6, %p2048_p3 }
  0x14   :  { %2058 = shalt.err (!%p2055_p7)
}
  0x15   :  { %40 = dma.hbm_to_vmem [thread:$0]  %s3694_s2, 256, %s38_s16, [#allocation10]  }
  0x16   :  { %s2059_s5 = scalar_lea.hbm %s3692_s0, 16 }
  0x17   :  { %p2060_p8 = scmp.ne.s32.totalorder %s3692_s0, %s2059_s5  ;;  %p2063_p9 = scmp.lt.u32.totalorder %s2059_s5, %s3692_s0 }
  0x19   :  { %p2065_p10 = pnand %p2063_p9, %p2060_p8 }
  0x1b   :  { %2068 = shalt.err (!%p2065_p10)
}
  0x1c   :  { %s2145_s10 = smov [#allocation4]   ;;  %s2069_s14 = scalar_lea.hbm %s3693_s1, 256 }
  0x1d   :  { %20 = dma.hbm_to_smem %s3692_s0, 16, %s2145_s10, [#allocation7]  }
  0x1e   :  { %p2070_p11 = scmp.ne.s32.totalorder %s3693_s1, %s2069_s14  ;;  %p2073_p12 = scmp.lt.u32.totalorder %s2069_s14, %s3693_s1 }
  0x20   :  { %p2075_p13 = pnand %p2073_p12, %p2070_p11 }
  0x22   :  { %2078 = shalt.err (!%p2075_p13)
}
  0x23   :  { %s2079_s20 = scalar_lea.vmem %s28_s18, 256  ;;  %p2084_p1 = scmp.lt.s32.totalorder %s28_s18, %s28_s18 }
  0x24   :  { %p2080_p0 = scmp.ne.s32.totalorder %s28_s18, %s2079_s20  ;;  %p2085_p2 = scmp.lt.s32.totalorder %s2079_s20, %s2079_s20 }
  0x26   :  { %p2086_p3 = por %p2085_p2, %p2084_p1 }
  0x28   :  { %p2087_p4 = pnand %p2086_p3, %p2080_p0 }
  0x2a   :  { %2090 = shalt.err (!%p2087_p4)
}
  0x2b   :  { %30 = dma.hbm_to_vmem [thread:$0]  %s3693_s1, 256, %s28_s18, [#allocation5]  }
  0x2c   :  { %s2146_s22 = smov [#allocation11]   ;;  %s2091_s26 = scalar_lea.hbm %s3695_s3, 256 }
  0x2d   :  { %s46_s23 = sshll.u32 %s2146_s22, 4  ;;  %p2092_p5 = scmp.ne.s32.totalorder %s3695_s3, %s2091_s26  ;;  %s47_s23 = int_to_ptr.vmem [resolvable:$true] %s46_s23 }
  0x2e   :  { %p2095_p6 = scmp.lt.u32.totalorder %s2091_s26, %s3695_s3 }
  0x30   :  { %p2097_p7 = pnand %p2095_p6, %p2092_p5 }
  0x32   :  { %2100 = shalt.err (!%p2097_p7)
}
  0x33   :  { %s2101_s5 = scalar_lea.vmem %s47_s23, 256  ;;  %p2106_p9 = scmp.lt.s32.totalorder %s47_s23, %s47_s23 }
  0x34   :  { %p2102_p8 = scmp.ne.s32.totalorder %s47_s23, %s2101_s5  ;;  %p2107_p10 = scmp.lt.s32.totalorder %s2101_s5, %s2101_s5 }
  0x36   :  { %p2108_p11 = por %p2107_p10, %p2106_p9 }
  0x38   :  { %p2109_p12 = pnand %p2108_p11, %p2102_p8 }
  0x3a   :  { %2112 = shalt.err (!%p2109_p12)
}
  0x3b   :  { %s2147_s1 = smov 128   ;;  %s2148_s18 = smov 8  }
  0x3c   :  { %52 = dma.hbm_to_vmem [thread:$0]  %s3695_s3, 256, %s47_s23, [#allocation10], %s2147_s1, %s2147_s1, %s2148_s18  }
  0x3d   :  { %2135 = dma.done.wait [#allocation7], 16  }
  0x3e   :  { %2136 = vsyncadd [#allocation7], 4294967280 }
  0x3f   :  { %2137 = dma.done.wait [#allocation5], 256  }
  0x40   :  { %2138 = vsyncadd [#allocation5], 4294967040 }
  0x41   :  { %2139 = dma.done.wait [#allocation10], 512  }
  0x42   :  { %2140 = vsyncadd [#allocation10], 4294966784 }
  0x43   :  { %65 = sfence }
  0x44   :  { %v66_v0 = vld [vmem:[#allocation11] sm:$0xff]  ;;  %v67_v1 = vld [vmem:[#allocation11 + $0x8] sm:$0xff]  ;;  %vm74_vm0 = vcmask 1043456   ;;  %v143_v2 = vlaneseq  ;;  %v2149_v57 = vmov 1983009808   ;;  %vm160_vm1 = vcmask 1041409  }
  0x45   :  { %v70_v3 = vcombine.high %v66_v0, %v66_v0  ;;  %v71_v4 = vcombine.high %v67_v1, %v67_v1  ;;  %v75_v5 = vsel %vm74_vm0, %v66_v0, 0.0  ;;  %v89_v6 = vsel %vm74_vm0, %v67_v1, 0.0  ;;  %s2150_s3 = smov 50   ;;  %s2151_s8 = smov 51  }
  0x46   :  { %v76_v7 = vrot.slane %v75_v5, 4  ;;  %v90_v8 = vrot.slane %v89_v6, 4  ;;  %v103_v9 = vsel %vm74_vm0, %v66_v0, -inf  ;;  %v117_v10 = vsel %vm74_vm0, %v67_v1, -inf  ;;  %s2152_s9 = smov 49   ;;  %s2153_s10 = smov 48  }
  0x47   :  { %v82_v11 = vsel %vm74_vm0, %v70_v3, 0.0  ;;  %v96_v12 = vsel %vm74_vm0, %v71_v4, 0.0  ;;  %v104_v13 = vrot.slane %v103_v9, 4  ;;  %v110_v14 = vsel %vm74_vm0, %v70_v3, -inf  ;;  %s2154_s11 = smov 47   ;;  %s2155_s12 = smov 46  }
  0x48   :  { %v77_v15 = vadd.f32 %v76_v7, %v75_v5  ;;  %v83_v16 = vrot.slane %v82_v11, 4  ;;  %v91_v17 = vadd.f32 %v90_v8, %v89_v6  ;;  %v97_v18 = vrot.slane %v96_v12, 4  ;;  %s2156_s2 = smov 45   ;;  %s2157_s13 = smov 35  }
  0x49   :  { %v105_v19 = vmax.f32 %v103_v9, %v104_v13  ;;  %v111_v20 = vrot.slane %v110_v14, 4  ;;  %v118_v21 = vrot.slane %v117_v10, 4  ;;  %v124_v22 = vsel %vm74_vm0, %v71_v4, -inf  ;;  %s2158_s14 = smov 34   ;;  %s2159_s15 = smov 33  }
  0x4a   :  { %v78_v23 = vrot.slane %v77_v15, 2  ;;  %v84_v24 = vadd.f32 %v83_v16, %v82_v11  ;;  %v92_v25 = vrot.slane %v91_v17, 2  ;;  %v98_v26 = vadd.f32 %v97_v18, %v96_v12  ;;  %s2160_s16 = smov 32   ;;  %s2161_s17 = smov 31  }
  0x4b   :  { %v106_v27 = vrot.slane %v105_v19, 2  ;;  %v112_v28 = vmax.f32 %v110_v14, %v111_v20  ;;  %v119_v29 = vmax.f32 %v117_v10, %v118_v21  ;;  %v125_v30 = vrot.slane %v124_v22, 4  ;;  %s2162_s19 = smov 30   ;;  %s2163_s20 = smov 29  }
  0x4c   :  { %v79_v31 = vadd.f32 %v78_v23, %v77_v15  ;;  %v85_v32 = vrot.slane %v84_v24, 2  ;;  %v93_v33 = vadd.f32 %v92_v25, %v91_v17  ;;  %v99_v34 = vrot.slane %v98_v26, 2  ;;  %s2164_s0 = smov 19   ;;  %s2165_s21 = smov 18  }
  0x4d   :  { %v107_v35 = vmax.f32 %v105_v19, %v106_v27  ;;  %v113_v36 = vrot.slane %v112_v28, 2  ;;  %v120_v37 = vrot.slane %v119_v29, 2  ;;  %v126_v38 = vmax.f32 %v124_v22, %v125_v30  ;;  %s2166_s22 = smov 17   ;;  %s2167_s23 = smov 16  }
  0x4e   :  { %v80_v39 = vrot.slane %v79_v31, 1  ;;  %v86_v40 = vadd.f32 %v85_v32, %v84_v24  ;;  %v94_v41 = vrot.slane %v93_v33, 1  ;;  %v100_v42 = vadd.f32 %v99_v34, %v98_v26  ;;  %s2168_s24 = smov 3   ;;  %s2169_s25 = smov 15  }
  0x4f   :  { %v108_v43 = vrot.slane %v107_v35, 1  ;;  %v114_v44 = vmax.f32 %v112_v28, %v113_v36  ;;  %v121_v45 = vmax.f32 %v119_v29, %v120_v37  ;;  %v127_v46 = vrot.slane %v126_v38, 2  ;;  %s2170_s26 = smov 2   ;;  %s2171_s27 = smov 1  }
  0x50   :  { %v81_v47 = vadd.f32 %v80_v39, %v79_v31  ;;  %v87_v48 = vrot.slane %v86_v40, 1  ;;  %v95_v49 = vadd.f32 %v94_v41, %v93_v33  ;;  %v101_v50 = vrot.slane %v100_v42, 1  ;;  %s2172_s28 = smov 115   ;;  %s2173_s29 = smov 114  }
  0x51   :  { %v109_v51 = vmax.f32 %v107_v35, %v108_v43  ;;  %v115_v52 = vrot.slane %v114_v44, 1  ;;  %v122_v53 = vrot.slane %v121_v45, 1  ;;  %v128_v54 = vmax.f32 %v126_v38, %v127_v46  ;;  %s2174_s30 = smov 113   ;;  %s2340_s5 = sld [smem:[#allocation4 + $0x1]] }
  0x52   :  { %v88_v55 = vadd.f32 %v87_v48, %v86_v40  ;;  %v102_v56 = vadd.f32 %v101_v50, %v100_v42  ;;  %v141_v58 = vunpack.c.l.s4 %v2149_v57  ;;  %v2281_v59 = vshrl.u32 %v143_v2, 7  ;;  %s2342_s1 = sld [smem:[#allocation4 + $0x32]]  ;;  %s2346_s6 = sld [smem:[#allocation4 + $0x33]]  ;;  %v345_v28 = vld [vmem:[#allocation9 + $0x1] ss:$8 sm:$0x3] }
  0x53   :  { %v116_v60 = vmax.f32 %v114_v44, %v115_v52  ;;  %v123_v61 = vmax.f32 %v121_v45, %v122_v53  ;;  %v129_v62 = vrot.slane %v128_v54, 1  ;;  %vm162_vm2 = vcmask 1043459   ;;  %s2344_s18 = sld [smem:[#allocation4 + $0x2]]  ;;  %s2348_s7 = sld [smem:[#allocation4 + $0x3]] }
  0x54   :  { %v139_v63 = vcombine.low %v81_v47, %v88_v55  ;;  %v142_v0 = vunpack.c.0.s8 %v141_v58  ;;  %v147_v1 = vcombine.low %v95_v49, %v102_v56  ;;  %vm164_vm3 = vcmask 1045509   ;;  %v385_v31 = vld [vmem:[#allocation9 + $0x2] ss:$8 sm:$0x3]  ;;  %s2178_s4 = smov 127  }
  0x55   :  { %v130_v3 = vmax.f32 %v128_v54, %v129_v62  ;;  %v174_v4 = vcombine.low %v109_v51, %v116_v60  ;;  %vm166_vm4 = vcmask 1047559   ;;  %vm299_vm5 = vcmask 1041408   ;;  %v465_v33 = vld [vmem:[#allocation9 + $0x4] ss:$8 sm:$0x3] }
  0x56   :  { %v145_v5 = vsub.s32 %v142_v0, %v2281_v59  ;;  %v2373_v29 = vand.u32 127, %v143_v2  ;;  %v2378_v30 = vsub.s32 0, %v2281_v59  ;;  %v2385_v32 = vsub.s32 1, %v2281_v59  ;;  %v425_v2 = vld [vmem:[#allocation9 + $0x3] ss:$8 sm:$0x3] }
  0x57   :  { %v182_v6 = vcombine.low %v123_v61, %v130_v3  ;;  %v505_v34 = vld [vmem:[#allocation9 + $0x5] ss:$8 sm:$0x3]  ;;  %v354_v35 = vstv %s2340_s5  ;;  %v545_v38 = vld [vmem:[#allocation9 + $0x6] ss:$8 sm:$0x3] }
  0x58   :  { %v146_v7 = vrot.slane %v139_v63, %v145_v5  ;;  %v154_v8 = vrot.slane %v147_v1, %v145_v5  ;;  %v181_v9 = vrot.slane %v174_v4, %v145_v5  ;;  %vm350_vm6 = vcmp.lt.s32.totalorder %v2373_v29, 50  ;;  %v303_v55 = vld [vmem:[#allocation9] ss:$8 sm:$0x3]  ;;  %s2181_s5 = smov 83  }
  0x59   :  { %v189_v10 = vrot.slane %v182_v6, %v145_v5  ;;  %v358_v36 = vstv %s2342_s1  ;;  %v2405_v37 = vrot.slane %v345_v28, %v2378_v30  ;;  %v2412_v39 = vrot.slane %v345_v28, %v2385_v32  ;;  %v2478_v3 = vld [vmem:[#allocation8] ss:$8 sm:$0x3]  ;;  %s2544_s1 = sld [smem:[#allocation4 + $0x48]] }
  0x5a   :  { %v159_v11 = vrot.slane %v154_v8, 7  ;;  %v394_v40 = vstv %s2344_s18  ;;  %v398_v41 = vstv %s2346_s6  ;;  %v2417_v42 = vrot.slane %v385_v31, %v2378_v30  ;;  %v2486_v8 = vld [vmem:[#allocation8 + $0x1] ss:$8 sm:$0x3]  ;;  %s2182_s18 = smov 82   ;;  %s2599_s6 = sld [smem:[#allocation4 + $0x12]] }
  0x5b   :  { %v192_v12 = vrot.slane %v189_v10, 7  ;;  %v2424_v43 = vrot.slane %v385_v31, %v2385_v32  ;;  %v434_v44 = vstv %s2348_s7  ;;  %v2429_v46 = vrot.slane %v425_v2, %v2378_v30  ;;  %s2184_s7 = smov 126  }
  0x5c   :  { %v161_v13 = vsel %vm160_vm1, %v159_v11, %v146_v7  ;;  %v2436_v47 = vrot.slane %v425_v2, %v2385_v32  ;;  %v2441_v50 = vrot.slane %v465_v33, %v2378_v30  ;;  %vm390_vm7 = vcmp.lt.s32.totalorder %v2373_v29, 49 }
  0x5d   :  { %v163_v14 = vsel %vm162_vm2, %v159_v11, %v161_v13  ;;  %v193_v15 = vsel %vm160_vm1, %v192_v12, %v181_v9  ;;  %v2449_v51 = vrot.slane %v465_v33, %v2385_v32  ;;  %v2454_v54 = vrot.slane %v505_v34, %v2378_v30 }
  0x5e   :  { %v165_v16 = vsel %vm164_vm3, %v159_v11, %v163_v14  ;;  %v194_v17 = vsel %vm162_vm2, %v192_v12, %v193_v15  ;;  %v2459_v56 = vrot.slane %v505_v34, %v2385_v32  ;;  %v2464_v59 = vrot.slane %v545_v38, %v2378_v30 }
  0x5f   :  { %v167_v18 = vsel %vm166_vm4, %v159_v11, %v165_v16  ;;  %v195_v19 = vsel %vm164_vm3, %v192_v12, %v194_v17  ;;  %v2473_v62 = vrot.slane %v545_v38, %v2385_v32  ;;  %vm430_vm8 = vcmp.lt.s32.totalorder %v2373_v29, 48 }
  0x60   :  { %169 = vst [vmem:[#allocation2] sm:$0xf] %v167_v18  ;;  %v196_v20 = vsel %vm166_vm4, %v192_v12, %v195_v19  ;;  %v2494_v9 = vrot.slane %v303_v55, %v2378_v30  ;;  %v2497_v10 = vrot.slane %v303_v55, %v2385_v32  ;;  %vm470_vm9 = vcmp.lt.s32.totalorder %v2373_v29, 47  ;;  %3751 = sst [smem:[#allocation33_spill]] %s2599_s6 }
  0x61   :  { %198 = vst [vmem:[#allocation3] sm:$0xf] %v196_v20  ;;  %vm510_vm10 = vcmp.lt.s32.totalorder %v2373_v29, 46  ;;  %vm550_vm11 = vcmp.lt.s32.totalorder %v2373_v29, 45  ;;  %vm605_vm12 = vcmp.lt.s32.totalorder %v2373_v29, 35  ;;  %vm632_vm13 = vcmp.lt.s32.totalorder %v2373_v29, 34 }
  0x62   :  { %vm659_vm14 = vcmp.lt.s32.totalorder %v2373_v29, 33  ;;  %vm686_vm15 = vcmp.lt.s32.totalorder %v2373_v29, 32  ;;  %vm310_vm0 = vcmp.lt.s32.totalorder %v2373_v29, 51  ;;  %vm713_vm1 = vcmp.lt.s32.totalorder %v2373_v29, 31 }
  0x63   :  { %vm740_vm2 = vcmp.lt.s32.totalorder %v2373_v29, 30  ;;  %vm767_vm3 = vcmp.lt.s32.totalorder %v2373_v29, 29  ;;  %vm811_vm4 = vcmp.lt.s32.totalorder %v2373_v29, 19 }
  0x67   :  { %v1869_v22 = vld.sshfl [vmem:[#allocation2] sm:$0x33 pattern:$0x76325410] }
  0x68   :  { %v2028_v21 = vld [vmem:[#allocation3] ss:$0 sps:$4 sm:$0xff]   ;;  %v284_v24 = vcombine.high %v1869_v22, %v1869_v22 }
  0x69   :  { %v295_v23 = vrot.slane %v2028_v21, %v145_v5 }
  0x6b   :  { %v2284_v25 = vsel %vm299_vm5, %v1869_v22, %v295_v23  ;;  %v296_v26 = vcombine.high %v295_v23, %v295_v23 }
  0x6c   :  { %346 = vrot.lane.b32.xlu1 %v2284_v25, %s2150_s3  ;;  %304 = vrot.lane.b32.xlu0 %v2284_v25, %s2151_s8 }
  0x6d   :  { %v2289_v27 = vsel %vm299_vm5, %v284_v24, %v296_v26  ;;  %vm838_vm5 = vcmp.lt.s32.totalorder %v2373_v29, 18 }
  0x70   :  { %386 = vrot.lane.b32.xlu0 %v2284_v25, %s2152_s9  ;;  %348 = vrot.lane.b32.xlu1 %v2289_v27, %s2150_s3  ;;  %s2350_s3 = sld [smem:[#allocation4 + $0x34]] }
  0x74   :  { %426 = vrot.lane.b32.xlu0 %v2284_v25, %s2153_s10  ;;  %388 = vrot.lane.b32.xlu1 %v2289_v27, %s2152_s9  ;;  %s2175_s9 = smov 99  }
  0x76   :  { %v438_v45 = vstv %s2350_s3  ;;  %s2183_s3 = smov 13  }
  0x78   :  { %466 = vrot.lane.b32.xlu0 %v2284_v25, %s2154_s11  ;;  %428 = vrot.lane.b32.xlu1 %v2289_v27, %s2153_s10  ;;  %s2356_s10 = sld [smem:[#allocation4 + $0x35]] }
  0x7c   :  { %506 = vrot.lane.b32.xlu0 %v2284_v25, %s2155_s12  ;;  %468 = vrot.lane.b32.xlu1 %v2289_v27, %s2154_s11  ;;  %s2358_s11 = sld [smem:[#allocation4 + $0x5]] }
  0x7e   :  { %v478_v49 = vstv %s2356_s10  ;;  %s2716_s10 = sld [smem:[#allocation4 + $0x24]] }
  0x80   :  { %546 = vrot.lane.b32.xlu0 %v2284_v25, %s2156_s2  ;;  %508 = vrot.lane.b32.xlu1 %v2289_v27, %s2155_s12  ;;  %s2360_s12 = sld [smem:[#allocation4 + $0x36]] }
  0x82   :  { %3736 = sst [smem:[#allocation18_spill]] %s2358_s11  ;;  %v514_v52 = vstv %s2358_s11  ;;  %s2468_s11 = sld [smem:[#allocation4 + $0x10]] }
  0x84   :  { %601 = vrot.lane.b32.xlu0 %v2284_v25, %s2157_s13  ;;  %548 = vrot.lane.b32.xlu1 %v2289_v27, %s2156_s2  ;;  %s2362_s2 = sld [smem:[#allocation4 + $0x6]] }
  0x86   :  { %v518_v53 = vstv %s2360_s12  ;;  %s2186_s12 = smov 96  }
  0x88   :  { %628 = vrot.lane.b32.xlu0 %v2284_v25, %s2158_s14  ;;  %603 = vrot.lane.b32.xlu1 %v2289_v27, %s2157_s13  ;;  %s2364_s13 = sld [smem:[#allocation4 + $0x37]]  ;;  %3747 = sst [smem:[#allocation29_spill]] %s2468_s11 }
  0x89   :  { %s2573_s11 = sld [smem:[#allocation4 + $0x18]] }
  0x8a   :  { %3737 = sst [smem:[#allocation19_spill]] %s2362_s2  ;;  %v554_v57 = vstv %s2362_s2  ;;  %s2480_s2 = sld [smem:[#allocation4 + $0x41]] }
  0x8c   :  { %655 = vrot.lane.b32.xlu0 %v2284_v25, %s2159_s15  ;;  %630 = vrot.lane.b32.xlu1 %v2289_v27, %s2158_s14  ;;  %s2366_s14 = sld [smem:[#allocation4 + $0x7]] }
  0x8e   :  { %3738 = sst [smem:[#allocation20_spill]] %s2364_s13  ;;  %v558_v58 = vstv %s2364_s13  ;;  %s2488_s13 = sld [smem:[#allocation4 + $0x11]] }
  0x90   :  { %682 = vrot.lane.b32.xlu0 %v2284_v25, %s2160_s16  ;;  %657 = vrot.lane.b32.xlu1 %v2289_v27, %s2159_s15  ;;  %s2368_s15 = sld [smem:[#allocation4 + $0x38]] }
  0x92   :  { %3739 = sst [smem:[#allocation21_spill]] %s2366_s14  ;;  %v609_v63 = vstv %s2366_s14  ;;  %s2179_s14 = smov 112  }
  0x94   :  { %684 = vrot.lane.b32.xlu1 %v2289_v27, %s2160_s16  ;;  %306 = vrot.lane.b32.xlu0 %v2289_v27, %s2151_s8  ;;  %s2352_s8 = sld [smem:[#allocation4 + $0x4]]  ;;  %s2370_s16 = sld [smem:[#allocation4 + $0x8]] }
  0x95   :  { %3748 = sst [smem:[#allocation30_spill]] %s2488_s13 }
  0x96   :  { %v613_v0 = vstv %s2368_s15  ;;  %s2571_s13 = sld [smem:[#allocation4 + $0x4d]]  ;;  %s2724_s15 = sld [smem:[#allocation4 + $0x13]] }
  0x98   :  { %711 = vrot.lane.b32.xlu1 %v2289_v27, %s2161_s17  ;;  %709 = vrot.lane.b32.xlu0 %v2284_v25, %s2161_s17  ;;  %s2176_s17 = smov 98  }
  0x9a   :  { %3735 = sst [smem:[#allocation17_spill]] %s2352_s8  ;;  %v474_v48 = vstv %s2352_s8  ;;  %s2456_s8 = sld [smem:[#allocation4 + $0xf]]  ;;  %v636_v1 = vstv %s2370_s16 }
  0x9b   :  { %s2188_s16 = smov 125  }
  0x9c   :  { %738 = vrot.lane.b32.xlu1 %v2289_v27, %s2162_s19  ;;  %736 = vrot.lane.b32.xlu0 %v2284_v25, %s2162_s19  ;;  %s2380_s19 = sld [smem:[#allocation4 + $0x39]] }
  0xa0   :  { %765 = vrot.lane.b32.xlu1 %v2289_v27, %s2163_s20  ;;  %763 = vrot.lane.b32.xlu0 %v2284_v25, %s2163_s20  ;;  %s2382_s20 = sld [smem:[#allocation4 + $0x9]] }
  0xa2   :  { %v640_v4 = vstv %s2380_s19  ;;  %s2194_s19 = smov 79  }
  0xa4   :  { %809 = vrot.lane.b32.xlu1 %v2289_v27, %s2164_s0  ;;  %807 = vrot.lane.b32.xlu0 %v2284_v25, %s2164_s0  ;;  %s2387_s0 = sld [smem:[#allocation4 + $0x3a]] }
  0xa6   :  { %3740 = sst [smem:[#allocation22_spill]] %s2382_s20  ;;  %v663_v5 = vstv %s2382_s20 }
  0xa7   :  { %s2503_s20 = sld [smem:[#allocation4 + $0x15]] }
  0xa8   :  { %836 = vrot.lane.b32.xlu1 %v2289_v27, %s2165_s21  ;;  %834 = vrot.lane.b32.xlu0 %v2284_v25, %s2165_s21  ;;  %s2389_s21 = sld [smem:[#allocation4 + $0xa]] }
  0xaa   :  { %3741 = sst [smem:[#allocation23_spill]] %s2387_s0  ;;  %v667_v6 = vstv %s2387_s0 }
  0xab   :  { %s2511_s0 = sld [smem:[#allocation4 + $0x16]] }
  0xac   :  { %863 = vrot.lane.b32.xlu1 %v2289_v27, %s2166_s22  ;;  %861 = vrot.lane.b32.xlu0 %v2284_v25, %s2166_s22  ;;  %s2391_s22 = sld [smem:[#allocation4 + $0x3b]] }
  0xae   :  { %3742 = sst [smem:[#allocation24_spill]] %s2389_s21  ;;  %v690_v7 = vstv %s2389_s21  ;;  %s2501_s21 = sld [smem:[#allocation4 + $0x42]] }
  0xb0   :  { %890 = vrot.lane.b32.xlu1 %v2289_v27, %s2167_s23  ;;  %888 = vrot.lane.b32.xlu0 %v2284_v25, %s2167_s23  ;;  %s2393_s23 = sld [smem:[#allocation4]] }
  0xb2   :  { %v694_v11 = vstv %s2391_s22  ;;  %s2190_s22 = smov 95  }
  0xb4   :  { %1013 = vrot.lane.b32.xlu1 %v2284_v25, %s2168_s24  ;;  %915 = vrot.lane.b32.xlu0 %v2284_v25, %s2169_s25 }
  0xb8   :  { %1040 = vrot.lane.b32.xlu1 %v2284_v25, %s2170_s26  ;;  %1015 = vrot.lane.b32.xlu0 %v2289_v27, %s2168_s24  ;;  %s2395_s24 = sld [smem:[#allocation4 + $0x31]] }
  0xbc   :  { %1067 = vrot.lane.b32.xlu1 %v2284_v25, %s2171_s27  ;;  %1042 = vrot.lane.b32.xlu0 %v2289_v27, %s2170_s26  ;;  %s2177_s26 = smov 14  }
  0xc0   :  { %1212 = vrot.lane.b32.xlu1 %v2284_v25, %s2172_s28  ;;  %1069 = vrot.lane.b32.xlu0 %v2289_v27, %s2171_s27  ;;  %s2407_s27 = sld [smem:[#allocation4 + $0x3c]] }
  0xc4   :  { %1239 = vrot.lane.b32.xlu1 %v2284_v25, %s2173_s29  ;;  %1214 = vrot.lane.b32.xlu0 %v2289_v27, %s2172_s28  ;;  %s2409_s28 = sld [smem:[#allocation4 + $0xc]] }
  0xc8   :  { %917 = vrot.lane.b32.xlu1 %v2289_v27, %s2169_s25  ;;  %1241 = vrot.lane.b32.xlu0 %v2289_v27, %s2173_s29  ;;  %s2397_s25 = sld [smem:[#allocation4 + $0xb]]  ;;  %s2419_s29 = sld [smem:[#allocation4 + $0x3d]] }
  0xcc   :  { %1268 = vrot.lane.b32.xlu1 %v2289_v27, %s2174_s30  ;;  %1266 = vrot.lane.b32.xlu0 %v2284_v25, %s2174_s30  ;;  %s2421_s30 = sld [smem:[#allocation4 + $0xd]] }
  0xd0   :  { %1420 = vrot.lane.b32.xlu1 %v2289_v27, %s2175_s9  ;;  %1418 = vrot.lane.b32.xlu0 %v2284_v25, %s2175_s9  ;;  %s2431_s9 = sld [smem:[#allocation4 + $0x3e]] }
  0xd2   :  { %3743 = sst [smem:[#allocation25_spill]] %s2421_s30  ;;  %s2546_s30 = sld [smem:[#allocation4 + $0x49]] }
  0xd4   :  { %1447 = vrot.lane.b32.xlu1 %v2289_v27, %s2176_s17  ;;  %1445 = vrot.lane.b32.xlu0 %v2284_v25, %s2176_s17  ;;  %s2433_s17 = sld [smem:[#allocation4 + $0xe]] }
  0xd6   :  { %3744 = sst [smem:[#allocation26_spill]] %s2431_s9  ;;  %s2534_s9 = sld [smem:[#allocation4 + $0x47]] }
  0xd8   :  { %944 = vrot.lane.b32.xlu1 %v2289_v27, %s2177_s26  ;;  %942 = vrot.lane.b32.xlu0 %v2284_v25, %s2177_s26  ;;  %s2443_s26 = sld [smem:[#allocation4 + $0x3f]] }
  0xda   :  { %3745 = sst [smem:[#allocation27_spill]] %s2433_s17  ;;  %s2180_s17 = smov 97  }
  0xdc   :  { %1116 = vrot.lane.b32.xlu1 %v2289_v27, %s2178_s4  ;;  %1114 = vrot.lane.b32.xlu0 %v2284_v25, %s2178_s4  ;;  %s2466_s4 = sld [smem:[#allocation4 + $0x40]] }
  0xde   :  { %3746 = sst [smem:[#allocation28_spill]] %s2443_s26  ;;  %v347_v60 = vpop.permute.xlu1 %346  ;;  %v2470_v61 = vpop.permute.xlu0 %304  ;;  %s2536_s26 = sld [smem:[#allocation4 + $0x17]] }
  0xe0   :  { %1295 = vrot.lane.b32.xlu1 %v2289_v27, %s2179_s14  ;;  %1293 = vrot.lane.b32.xlu0 %v2284_v25, %s2179_s14  ;;  %s2509_s14 = sld [smem:[#allocation4 + $0x46]] }
  0xe2   :  { %v387_v17 = vpop.permute.xlu0 %386  ;;  %v349_v18 = vpop.permute.xlu1 %348 }
  0xe3   :  { %v351_v23 = vsel %vm350_vm6, %v347_v60, %v349_v18  ;;  %v352_v24 = vsel %vm350_vm6, %v349_v18, %v347_v60  ;;  %vm865_vm6 = vcmp.lt.s32.totalorder %v2373_v29, 17 }
  0xe4   :  { %v359_v31 = vmul.f32 %v358_v36, %v352_v24  ;;  %v360_v2 = vmul.f32 %v358_v36, %v351_v23  ;;  %1474 = vrot.lane.b32.xlu1 %v2289_v27, %s2180_s17  ;;  %3749 = sst [smem:[#allocation31_spill]] %s2536_s26  ;;  %1472 = vrot.lane.b32.xlu0 %v2284_v25, %s2180_s17  ;;  %v355_v18 = vmul.f32 %v354_v35, %v352_v24  ;;  %s2562_s17 = sld [smem:[#allocation4 + $0x1c]] }
  0xe5   :  { %v356_v34 = vmul.f32 %v354_v35, %v351_v23  ;;  %s2632_s26 = sld [smem:[#allocation4 + $0x4e]] }
  0xe6   :  { %v363_v33 = vrot.slane %v359_v31, 2  ;;  %v364_v26 = vrot.slane %v360_v2, 2  ;;  %v427_v28 = vpop.permute.xlu0 %426  ;;  %v389_v22 = vpop.permute.xlu1 %388 }
  0xe7   :  { %v391_v60 = vsel %vm390_vm7, %v387_v17, %v389_v22  ;;  %v392_v36 = vsel %vm390_vm7, %v389_v22, %v387_v17  ;;  %vm892_vm7 = vcmp.lt.s32.totalorder %v2373_v29, 16 }
  0xe8   :  { %v367_v24 = vadd.f32 %v363_v33, %v355_v18  ;;  %v368_v21 = vadd.f32 %v364_v26, %v356_v34  ;;  %1626 = vrot.lane.b32.xlu1 %v2289_v27, %s2181_s5  ;;  %v399_v31 = vmul.f32 %v398_v41, %v392_v36  ;;  %v400_v2 = vmul.f32 %v398_v41, %v391_v60 }
  0xe9   :  { %1624 = vrot.lane.b32.xlu0 %v2284_v25, %s2181_s5  ;;  %v395_v41 = vmul.f32 %v394_v40, %v392_v36  ;;  %v396_v34 = vmul.f32 %v394_v40, %v391_v60  ;;  %s2601_s5 = sld [smem:[#allocation4 + $0x43]] }
  0xea   :  { %3750 = sst [smem:[#allocation32_spill]] %s2562_s17  ;;  %v2576_v26 = vmul.f32 %v2405_v37, %v367_v24  ;;  %v2579_v33 = vmul.f32 %v2412_v39, %v368_v21  ;;  %v467_v18 = vpop.permute.xlu0 %466  ;;  %v429_v23 = vpop.permute.xlu1 %428  ;;  %v403_v22 = vrot.slane %v399_v31, 2  ;;  %v404_v17 = vrot.slane %v400_v2, 2  ;;  %s2690_s17 = sld [smem:[#allocation4 + $0x54]] }
  0xeb   :  { %v431_v38 = vsel %vm430_vm8, %v427_v28, %v429_v23  ;;  %v432_v24 = vsel %vm430_vm8, %v429_v23, %v427_v28  ;;  %v1099_v28 = vstv %s2546_s30  ;;  %s3780_s30 = sld [smem:[#allocation28_spill]]  ;;  %vm1017_vm8 = vcmp.lt.s32.totalorder %v2373_v29, 3 }
  0xec   :  { %v439_v21 = vmul.f32 %v438_v45, %v432_v24  ;;  %v440_v36 = vmul.f32 %v438_v45, %v431_v38  ;;  %1653 = vrot.lane.b32.xlu1 %v2289_v27, %s2182_s18  ;;  %v407_v31 = vadd.f32 %v403_v22, %v395_v41  ;;  %v408_v2 = vadd.f32 %v404_v17, %v396_v34 }
  0xed   :  { %1651 = vrot.lane.b32.xlu0 %v2284_v25, %s2182_s18  ;;  %v435_v45 = vmul.f32 %v434_v44, %v432_v24  ;;  %v436_v23 = vmul.f32 %v434_v44, %v431_v38  ;;  %s2621_s18 = sld [smem:[#allocation4 + $0x1d]] }
  0xee   :  { %v443_v55 = vrot.slane %v439_v21, 2  ;;  %v444_v40 = vrot.slane %v440_v36, 2  ;;  %v507_v22 = vpop.permute.xlu0 %506  ;;  %v469_v17 = vpop.permute.xlu1 %468  ;;  %v2609_v41 = vmul.f32 %v2417_v42, %v407_v31  ;;  %v2612_v34 = vmul.f32 %v2424_v43, %v408_v2 }
  0xef   :  { %3752 = sst [smem:[#allocation34_spill]] %s2601_s5  ;;  %v471_v24 = vsel %vm470_vm9, %v467_v18, %v469_v17  ;;  %v472_v44 = vsel %vm470_vm9, %v469_v17, %v467_v18  ;;  %v1100_v31 = vmul.f32 %v1099_v28, %v2284_v25  ;;  %vm1044_vm9 = vcmp.lt.s32.totalorder %v2373_v29, 2 }
  0xf0   :  { %v447_v38 = vadd.f32 %v443_v55, %v435_v45  ;;  %v448_v21 = vadd.f32 %v444_v40, %v436_v23  ;;  %971 = vrot.lane.b32.xlu1 %v2289_v27, %s2183_s3  ;;  %v479_v2 = vmul.f32 %v478_v49, %v472_v44  ;;  %v480_v18 = vmul.f32 %v478_v49, %v471_v24 }
  0xf1   :  { %969 = vrot.lane.b32.xlu0 %v2284_v25, %s2183_s3  ;;  %v1095_v40 = vstv %s2573_s11  ;;  %v475_v17 = vmul.f32 %v474_v48, %v472_v44  ;;  %v476_v36 = vmul.f32 %v474_v48, %v471_v24  ;;  %s2655_s3 = sld [smem:[#allocation4 + $0x1e]]  ;;  %v1104_v24 = vrot.slane %v1100_v31, 2  ;;  %s2187_s11 = smov 81  }
  0xf2   :  { %v2636_v45 = vmul.f32 %v2429_v46, %v447_v38  ;;  %v2639_v23 = vmul.f32 %v2436_v47, %v448_v21  ;;  %v547_v60 = vpop.permute.xlu0 %546  ;;  %v509_v49 = vpop.permute.xlu1 %508  ;;  %v483_v35 = vrot.slane %v479_v2, 2  ;;  %v484_v55 = vrot.slane %v480_v18, 2 }
  0xf3   :  { %v511_v20 = vsel %vm510_vm10, %v507_v22, %v509_v49  ;;  %v512_v38 = vsel %vm510_vm10, %v509_v49, %v507_v22  ;;  %v1096_v48 = vmul.f32 %v1095_v40, %v2284_v25  ;;  %v923_v22 = vstv %s2599_s6  ;;  %s2682_s6 = sld [smem:[#allocation4 + $0x23]] }
  0xf4   :  { %v519_v21 = vmul.f32 %v518_v53, %v512_v38  ;;  %v520_v44 = vmul.f32 %v518_v53, %v511_v20  ;;  %1143 = vrot.lane.b32.xlu1 %v2289_v27, %s2184_s7  ;;  %v487_v2 = vadd.f32 %v483_v35, %v475_v17  ;;  %v488_v18 = vadd.f32 %v484_v55, %v476_v36 }
  0xf5   :  { %1141 = vrot.lane.b32.xlu0 %v2284_v25, %s2184_s7  ;;  %v927_v49 = vstv %s2601_s5  ;;  %v515_v53 = vmul.f32 %v514_v52, %v512_v38  ;;  %v516_v19 = vmul.f32 %v514_v52, %v511_v20  ;;  %s2185_s7 = smov 111   ;;  %v1247_v55 = vstv %s2621_s18  ;;  %s2680_s5 = sld [smem:[#allocation4 + $0x4f]] }
  0xf6   :  { %v523_v16 = vrot.slane %v519_v21, 2  ;;  %v524_v15 = vrot.slane %v520_v44, 2  ;;  %v602_v14 = vpop.permute.xlu0 %601  ;;  %v549_v13 = vpop.permute.xlu1 %548  ;;  %v2668_v12 = vmul.f32 %v2441_v50, %v487_v2  ;;  %v2671_v35 = vmul.f32 %v2449_v51, %v488_v18  ;;  %s3228_s18 = sld [smem:[#allocation4 + $0x2c]] }
  0xf7   :  { %v551_v36 = vsel %vm550_vm11, %v547_v60, %v549_v13  ;;  %v552_v52 = vsel %vm550_vm11, %v549_v13, %v547_v60  ;;  %v1108_v17 = vadd.f32 %v1104_v24, %v1096_v48  ;;  %vm1071_vm10 = vcmp.lt.s32.totalorder %v2373_v29, 1 }
  0xf8   :  { %v527_v20 = vadd.f32 %v523_v16, %v515_v53  ;;  %v528_v31 = vadd.f32 %v524_v15, %v516_v19  ;;  %1322 = vrot.lane.b32.xlu1 %v2289_v27, %s2185_s7  ;;  %v559_v38 = vmul.f32 %v558_v58, %v552_v52  ;;  %v560_v13 = vmul.f32 %v558_v58, %v551_v36 }
  0xf9   :  { %1320 = vrot.lane.b32.xlu0 %v2284_v25, %s2185_s7  ;;  %v1101_v16 = vmul.f32 %v1099_v28, %v2289_v27  ;;  %v555_v21 = vmul.f32 %v554_v57, %v552_v52  ;;  %v556_v58 = vmul.f32 %v554_v57, %v551_v36  ;;  %s2718_s7 = sld [smem:[#allocation4 + $0x55]]  ;;  %v2721_v36 = vmul.f32 %v1108_v17, %v2429_v46 }
  0xfa   :  { %v2696_v19 = vmul.f32 %v2454_v54, %v527_v20  ;;  %v2699_v60 = vmul.f32 %v2459_v56, %v528_v31  ;;  %v629_v44 = vpop.permute.xlu0 %628  ;;  %v604_v48 = vpop.permute.xlu1 %603  ;;  %v563_v24 = vrot.slane %v559_v38, 2  ;;  %v564_v2 = vrot.slane %v560_v13, 2 }
  0xfb   :  { %v606_v18 = vsel %vm605_vm12, %v602_v14, %v604_v48  ;;  %v607_v28 = vsel %vm605_vm12, %v604_v48, %v602_v14  ;;  %v1105_v31 = vrot.slane %v1101_v16, 2  ;;  %vm1216_vm11 = vcmp.lt.s32.totalorder %v2373_v29, 115 }
  0xfc   :  { %v614_v53 = vmul.f32 %v613_v0, %v607_v28  ;;  %v615_v20 = vmul.f32 %v613_v0, %v606_v18  ;;  %1501 = vrot.lane.b32.xlu1 %v2289_v27, %s2186_s12  ;;  %v567_v14 = vadd.f32 %v563_v24, %v555_v21  ;;  %v568_v52 = vadd.f32 %v564_v2, %v556_v58 }
  0xfd   :  { %1499 = vrot.lane.b32.xlu0 %v2284_v25, %s2186_s12  ;;  %v1097_v0 = vmul.f32 %v1095_v40, %v2289_v27  ;;  %v610_v38 = vmul.f32 %v609_v63, %v607_v28  ;;  %v611_v13 = vmul.f32 %v609_v63, %v606_v18  ;;  %s2891_s12 = sld [smem:[#allocation4 + $0x19]]  ;;  %vm919_vm12 = vcmp.lt.s32.totalorder %v2373_v29, 15 }
  0xfe   :  { %v618_v48 = vrot.slane %v614_v53, 2  ;;  %v619_v17 = vrot.slane %v615_v20, 2  ;;  %v656_v21 = vpop.permute.xlu0 %655  ;;  %v631_v58 = vpop.permute.xlu1 %630  ;;  %v2734_v24 = vmul.f32 %v2464_v59, %v567_v14  ;;  %v2737_v2 = vmul.f32 %v2473_v62, %v568_v52 }
  0xff   :  { %v633_v40 = vsel %vm632_vm13, %v629_v44, %v631_v58  ;;  %v634_v63 = vsel %vm632_vm13, %v631_v58, %v629_v44  ;;  %v1109_v44 = vadd.f32 %v1105_v31, %v1097_v0  ;;  %vm1243_vm13 = vcmp.lt.s32.totalorder %v2373_v29, 114 }
 0x100   :  { %v622_v16 = vadd.f32 %v618_v48, %v610_v38  ;;  %v623_v18 = vadd.f32 %v619_v17, %v611_v13  ;;  %1680 = vrot.lane.b32.xlu1 %v2289_v27, %s2187_s11  ;;  %v641_v20 = vmul.f32 %v640_v4, %v634_v63  ;;  %v642_v14 = vmul.f32 %v640_v4, %v633_v40 }
 0x101   :  { %1678 = vrot.lane.b32.xlu0 %v2284_v25, %s2187_s11  ;;  %v637_v13 = vmul.f32 %v636_v1, %v634_v63  ;;  %v638_v48 = vmul.f32 %v636_v1, %v633_v40  ;;  %s2189_s11 = smov 110  }
 0x102   :  { %v624_v58 = vmul.f32 %v622_v16, %v2494_v9  ;;  %v625_v38 = vmul.f32 %v623_v18, %v2497_v10  ;;  %v683_v17 = vpop.permute.xlu0 %682  ;;  %v658_v53 = vpop.permute.xlu1 %657  ;;  %v645_v4 = vrot.slane %v641_v20, 2  ;;  %v646_v28 = vrot.slane %v642_v14, 2 }
 0x103   :  { %v660_v0 = vsel %vm659_vm14, %v656_v21, %v658_v53  ;;  %v661_v31 = vsel %vm659_vm14, %v658_v53, %v656_v21  ;;  %v2775_v21 = vmul.f32 %v1109_v44, %v2436_v47  ;;  %vm1270_vm14 = vcmp.lt.s32.totalorder %v2373_v29, 113 }
 0x104   :  { %v668_v16 = vmul.f32 %v667_v6, %v661_v31  ;;  %v669_v63 = vmul.f32 %v667_v6, %v660_v0  ;;  %1170 = vrot.lane.b32.xlu1 %v2289_v27, %s2188_s16  ;;  %v649_v18 = vadd.f32 %v645_v4, %v637_v13  ;;  %v650_v20 = vadd.f32 %v646_v28, %v638_v48 }
 0x105   :  { %1168 = vrot.lane.b32.xlu0 %v2284_v25, %s2188_s16  ;;  %v664_v53 = vmul.f32 %v663_v5, %v661_v31  ;;  %v665_v6 = vmul.f32 %v663_v5, %v660_v0  ;;  %s2889_s16 = sld [smem:[#allocation4 + $0x44]] }
 0x106   :  { %v672_v52 = vrot.slane %v668_v16, 2  ;;  %v673_v1 = vrot.slane %v669_v63, 2  ;;  %v685_v13 = vpop.permute.xlu1 %684  ;;  %v307_v28 = vpop.permute.xlu0 %306  ;;  %v651_v48 = vmul.f32 %v649_v18, %v2405_v37  ;;  %v652_v4 = vmul.f32 %v650_v20, %v2412_v39 }
 0x107   :  { %v687_v14 = vsel %vm686_vm15, %v683_v17, %v685_v13  ;;  %v688_v44 = vsel %vm686_vm15, %v685_v13, %v683_v17  ;;  %v311_v17 = vsel %vm310_vm0, %v2470_v61, %v307_v28  ;;  %vm1422_vm15 = vcmp.lt.s32.totalorder %v2373_v29, 99 }
 0x108   :  { %v676_v40 = vadd.f32 %v672_v52, %v664_v53  ;;  %v677_v31 = vadd.f32 %v673_v1, %v665_v6  ;;  %v691_v5 = vmul.f32 %v690_v7, %v688_v44  ;;  %v692_v0 = vmul.f32 %v690_v7, %v687_v14  ;;  %1349 = vrot.lane.b32.xlu1 %v2289_v27, %s2189_s11 }
 0x109   :  { %v653_v16 = vadd.f32 %v651_v48, %v624_v58  ;;  %v654_v63 = vadd.f32 %v652_v4, %v625_v38  ;;  %v695_v18 = vmul.f32 %v694_v11, %v688_v44  ;;  %v696_v20 = vmul.f32 %v694_v11, %v687_v14  ;;  %1347 = vrot.lane.b32.xlu0 %v2284_v25, %s2189_s11  ;;  %s2195_s11 = smov 93  }
 0x10a   :  { %v678_v52 = vmul.f32 %v676_v40, %v2417_v42  ;;  %v679_v7 = vmul.f32 %v677_v31, %v2424_v43  ;;  %v312_v58 = vsel %vm310_vm0, %v307_v28, %v2470_v61  ;;  %v712_v38 = vpop.permute.xlu1 %711  ;;  %v710_v1 = vpop.permute.xlu0 %709  ;;  %v3761_v53 = vstv %s2393_s23  ;;  %s2191_s23 = smov 80  }
 0x10b   :  { %v699_v11 = vrot.slane %v695_v18, 2  ;;  %v700_v14 = vrot.slane %v696_v20, 2  ;;  %v315_v6 = vmul.f32 %v3761_v53, %v312_v58  ;;  %v3762_v13 = vmov %v3761_v53 }
 0x10c   :  { %v316_v40 = vmul.f32 %v3762_v13, %v311_v17  ;;  %v680_v48 = vadd.f32 %v678_v52, %v653_v16  ;;  %v681_v4 = vadd.f32 %v679_v7, %v654_v63  ;;  %v3763_v44 = vstv %s2395_s24  ;;  %1528 = vrot.lane.b32.xlu1 %v2289_v27, %s2190_s22  ;;  %s3772_s24 = sld [smem:[#allocation25_spill]] }
 0x10d   :  { %v319_v31 = vmul.f32 %v3763_v44, %v312_v58  ;;  %v3764_v57 = vmov %v3763_v44  ;;  %v703_v61 = vadd.f32 %v699_v11, %v691_v5  ;;  %v704_v28 = vadd.f32 %v700_v14, %v692_v0  ;;  %1526 = vrot.lane.b32.xlu0 %v2284_v25, %s2190_s22  ;;  %s2918_s22 = sld [smem:[#allocation4 + $0x4a]] }
 0x10e   :  { %v320_v15 = vmul.f32 %v3764_v57, %v311_v17  ;;  %v714_v18 = vsel %vm713_vm1, %v710_v1, %v712_v38  ;;  %v715_v20 = vsel %vm713_vm1, %v712_v38, %v710_v1  ;;  %v3765_v52 = vstv %s2397_s25  ;;  %v739_v58 = vpop.permute.xlu1 %738  ;;  %v737_v53 = vpop.permute.xlu0 %736  ;;  %s2192_s25 = smov 109  }
 0x10f   :  { %v323_v16 = vrot.slane %v319_v31, 2  ;;  %v718_v7 = vmul.f32 %v3765_v52, %v715_v20  ;;  %v3766_v57 = vmov %v3765_v52  ;;  %v705_v5 = vmul.f32 %v703_v61, %v2429_v46 }
 0x110   :  { %v324_v63 = vrot.slane %v320_v15, 2  ;;  %v719_v17 = vmul.f32 %v3766_v57, %v714_v18  ;;  %v706_v0 = vmul.f32 %v704_v28, %v2436_v47  ;;  %v3767_v11 = vstv %s2407_s27  ;;  %1707 = vrot.lane.b32.xlu1 %v2289_v27, %s2191_s23  ;;  %s3774_s27 = sld [smem:[#allocation26_spill]] }
 0x111   :  { %v722_v14 = vmul.f32 %v3767_v11, %v715_v20  ;;  %v3768_v38 = vmov %v3767_v11  ;;  %v327_v13 = vadd.f32 %v323_v16, %v315_v6  ;;  %v741_v44 = vsel %vm740_vm2, %v737_v53, %v739_v58  ;;  %1705 = vrot.lane.b32.xlu0 %v2284_v25, %s2191_s23  ;;  %s2920_s23 = sld [smem:[#allocation4 + $0x1f]] }
 0x112   :  { %v723_v1 = vmul.f32 %v3768_v38, %v714_v18  ;;  %v328_v15 = vadd.f32 %v324_v63, %v316_v40  ;;  %v742_v31 = vsel %vm740_vm2, %v739_v58, %v737_v53  ;;  %v707_v61 = vadd.f32 %v705_v5, %v680_v48  ;;  %v766_v58 = vpop.permute.xlu1 %765  ;;  %v764_v53 = vpop.permute.xlu0 %763 }
 0x113   :  { %v708_v28 = vadd.f32 %v706_v0, %v681_v4  ;;  %v726_v52 = vrot.slane %v722_v14, 2  ;;  %v340_v6 = vmul.f32 %v2494_v9, %v327_v13  ;;  %v3769_v18 = vstv %s2409_s28  ;;  %s3779_s28 = sld [smem:[#allocation27_spill]] }
 0x114   :  { %v727_v20 = vrot.slane %v723_v1, 2  ;;  %v341_v40 = vmul.f32 %v2497_v10, %v328_v15  ;;  %v745_v16 = vmul.f32 %v3769_v18, %v742_v31  ;;  %v3770_v63 = vmov %v3769_v18  ;;  %1376 = vrot.lane.b32.xlu1 %v2289_v27, %s2192_s25 }
 0x115   :  { %v746_v57 = vmul.f32 %v3770_v63, %v741_v44  ;;  %v730_v11 = vadd.f32 %v726_v52, %v718_v7  ;;  %v3771_v48 = vstv %s2419_s29  ;;  %v382_v14 = vadd.f32 %v2576_v26, %v340_v6  ;;  %1374 = vrot.lane.b32.xlu0 %v2284_v25, %s2192_s25  ;;  %s2193_s29 = smov 94   ;;  %s2949_s25 = sld [smem:[#allocation4 + $0x25]] }
 0x116   :  { %v731_v38 = vadd.f32 %v727_v20, %v719_v17  ;;  %v749_v4 = vmul.f32 %v3771_v48, %v742_v31  ;;  %v3773_v5 = vmov %v3771_v48  ;;  %v383_v1 = vadd.f32 %v2579_v33, %v341_v40  ;;  %v810_v18 = vpop.permute.xlu1 %809  ;;  %v808_v63 = vpop.permute.xlu0 %807 }
 0x117   :  { %v750_v0 = vmul.f32 %v3773_v5, %v741_v44  ;;  %v768_v13 = vsel %vm767_vm3, %v764_v53, %v766_v58  ;;  %v769_v15 = vsel %vm767_vm3, %v766_v58, %v764_v53  ;;  %v732_v7 = vmul.f32 %v730_v11, %v2441_v50 }
 0x118   :  { %v733_v17 = vmul.f32 %v731_v38, %v2449_v51  ;;  %v753_v31 = vrot.slane %v749_v4, 2  ;;  %v422_v26 = vadd.f32 %v2609_v41, %v382_v14  ;;  %v423_v33 = vadd.f32 %v2612_v34, %v383_v1  ;;  %1555 = vrot.lane.b32.xlu1 %v2289_v27, %s2193_s29 }
 0x119   :  { %v754_v44 = vrot.slane %v750_v0, 2  ;;  %v3775_v52 = vstv %s3772_s24  ;;  %v734_v58 = vadd.f32 %v732_v7, %v707_v61  ;;  %v3777_v5 = vstv %s3774_s27  ;;  %1553 = vrot.lane.b32.xlu0 %v2284_v25, %s2193_s29  ;;  %s2947_s24 = sld [smem:[#allocation4 + $0x50]]  ;;  %s2197_s27 = smov 77  }
 0x11a   :  { %v772_v20 = vmul.f32 %v3775_v52, %v769_v15  ;;  %v3776_v6 = vmov %v3775_v52  ;;  %v735_v53 = vadd.f32 %v733_v17, %v708_v28  ;;  %v757_v11 = vadd.f32 %v753_v31, %v745_v16  ;;  %s2977_s29 = sld [smem:[#allocation4 + $0x2a]] }
 0x11b   :  { %v773_v40 = vmul.f32 %v3776_v6, %v768_v13  ;;  %v758_v38 = vadd.f32 %v754_v44, %v746_v57  ;;  %v462_v48 = vadd.f32 %v2636_v45, %v422_v26  ;;  %v463_v4 = vadd.f32 %v2639_v23, %v423_v33 }
 0x11c   :  { %v776_v41 = vmul.f32 %v3777_v5, %v769_v15  ;;  %v3778_v0 = vmov %v3777_v5  ;;  %v759_v61 = vmul.f32 %v757_v11, %v2454_v54  ;;  %v812_v16 = vsel %vm811_vm4, %v808_v63, %v810_v18  ;;  %v835_v15 = vpop.permute.xlu0 %834  ;;  %1734 = vrot.lane.b32.xlu1 %v2289_v27, %s2194_s19 }
 0x11d   :  { %v777_v34 = vmul.f32 %v3778_v0, %v768_v13  ;;  %v760_v28 = vmul.f32 %v758_v38, %v2459_v56  ;;  %v813_v45 = vsel %vm811_vm4, %v810_v18, %v808_v63  ;;  %v502_v23 = vadd.f32 %v2668_v12, %v462_v48  ;;  %v837_v13 = vpop.permute.xlu1 %836  ;;  %1732 = vrot.lane.b32.xlu0 %v2284_v25, %s2194_s19  ;;  %s2998_s19 = sld [smem:[#allocation4 + $0x5c]] }
 0x11e   :  { %v503_v57 = vadd.f32 %v2671_v35, %v463_v4  ;;  %v780_v14 = vrot.slane %v776_v41, 2  ;;  %v761_v7 = vadd.f32 %v759_v61, %v734_v58  ;;  %v3781_v31 = vstv %s3779_s28  ;;  %s2975_s28 = sld [smem:[#allocation4 + $0x56]] }
 0x11f   :  { %v781_v1 = vrot.slane %v777_v34, 2  ;;  %v762_v17 = vadd.f32 %v760_v28, %v735_v53  ;;  %v816_v44 = vmul.f32 %v3781_v31, %v813_v45  ;;  %v3782_v26 = vmov %v3781_v31 }
 0x120   :  { %v817_v33 = vmul.f32 %v3782_v26, %v812_v16  ;;  %v542_v52 = vadd.f32 %v2696_v19, %v502_v23  ;;  %v543_v12 = vadd.f32 %v2699_v60, %v503_v57  ;;  %v784_v6 = vadd.f32 %v780_v14, %v772_v20  ;;  %v862_v4 = vpop.permute.xlu0 %861  ;;  %1582 = vrot.lane.b32.xlu1 %v2289_v27, %s2195_s11 }
 0x121   :  { %v785_v35 = vadd.f32 %v781_v1, %v773_v40  ;;  %v3783_v18 = vstv %s3780_s30  ;;  %v839_v19 = vsel %vm838_vm5, %v835_v15, %v837_v13  ;;  %v840_v60 = vsel %vm838_vm5, %v837_v13, %v835_v15  ;;  %v864_v48 = vpop.permute.xlu1 %863  ;;  %1580 = vrot.lane.b32.xlu0 %v2284_v25, %s2195_s11  ;;  %s2987_s30 = sld [smem:[#allocation4 + $0x2b]]  ;;  %s3004_s11 = sld [smem:[#allocation4 + $0x14]] }
 0x122   :  { %v820_v63 = vmul.f32 %v3783_v18, %v813_v45  ;;  %v3784_v58 = vmov %v3783_v18  ;;  %v582_v20 = vadd.f32 %v2734_v24, %v542_v52  ;;  %v583_v40 = vadd.f32 %v2737_v2, %v543_v12 }
 0x123   :  { %v821_v53 = vmul.f32 %v3784_v58, %v812_v16  ;;  %v786_v11 = vmul.f32 %v784_v6, %v2464_v59  ;;  %v787_v38 = vmul.f32 %v785_v35, %v2473_v62  ;;  %v3785_v0 = vstv %s2456_s8  ;;  %s3793_s8 = sld [smem:[#allocation29_spill]] }
 0x124   :  { %v824_v5 = vrot.slane %v820_v63, 2  ;;  %v843_v34 = vmul.f32 %v3785_v0, %v840_v60  ;;  %v3786_v61 = vmov %v3785_v0  ;;  %v3787_v16 = vrot.slane %v2478_v3, %v2378_v30  ;;  %v889_v6 = vpop.permute.xlu0 %888 }
 0x125   :  { %v825_v41 = vrot.slane %v821_v53, 2  ;;  %v844_v28 = vmul.f32 %v3786_v61, %v839_v19  ;;  %v3788_v2 = vrot.slane %v2478_v3, %v2385_v32  ;;  %v788_v23 = vadd.f32 %v786_v11, %v761_v7  ;;  %v891_v12 = vpop.permute.xlu1 %890 }
 0x126   :  { %v595_v24 = vmul.f32 %v3787_v16, %v582_v20  ;;  %v789_v57 = vadd.f32 %v787_v38, %v762_v17  ;;  %v828_v14 = vadd.f32 %v824_v5, %v816_v44  ;;  %v3789_v13 = vstv %s2466_s4  ;;  %s2196_s4 = smov 78  }
 0x127   :  { %v596_v45 = vmul.f32 %v3788_v2, %v583_v40  ;;  %v829_v1 = vadd.f32 %v825_v41, %v817_v33  ;;  %v847_v15 = vmul.f32 %v3789_v13, %v840_v60  ;;  %v3790_v31 = vmov %v3789_v13  ;;  %1761 = vrot.lane.b32.xlu1 %v2289_v27, %s2196_s4 }
 0x128   :  { %v848_v26 = vmul.f32 %v3790_v31, %v839_v19  ;;  %v3791_v3 = vrot.slane %v2486_v8, %v2378_v30  ;;  %v3792_v17 = vrot.slane %v2486_v8, %v2385_v32  ;;  %v866_v44 = vsel %vm865_vm6, %v862_v4, %v864_v48  ;;  %1759 = vrot.lane.b32.xlu0 %v2284_v25, %s2196_s4  ;;  %s3317_s4 = sld [smem:[#allocation4 + $0x5e]] }
 0x129   :  { %v867_v33 = vsel %vm865_vm6, %v864_v48, %v862_v4  ;;  %v830_v35 = vmul.f32 %v828_v14, %v2494_v9  ;;  %v831_v18 = vmul.f32 %v829_v1, %v2497_v10  ;;  %v851_v63 = vrot.slane %v847_v15, 2 }
 0x12a   :  { %v801_v7 = vmul.f32 %v3791_v3, %v788_v23  ;;  %v802_v52 = vmul.f32 %v3792_v17, %v789_v57  ;;  %v852_v58 = vrot.slane %v848_v26, 2  ;;  %v954_v19 = vstv %s2889_s16  ;;  %s3277_s16 = sld [smem:[#allocation4 + $0x52]] }
 0x12b   :  { %v1122_v60 = vstv %s2891_s12  ;;  %v855_v20 = vadd.f32 %v851_v63, %v843_v34  ;;  %v3794_v11 = vstv %s2480_s2  ;;  %v3796_v5 = vstv %s3793_s8  ;;  %s3798_s2 = sld [smem:[#allocation30_spill]]  ;;  %1788 = vrot.lane.b32.xlu1 %v2289_v27, %s2197_s27  ;;  %s3279_s12 = sld [smem:[#allocation4 + $0x27]] }
 0x12c   :  { %v2939_v8 = vadd.f32 %v801_v7, %v595_v24  ;;  %v2941_v53 = vadd.f32 %v802_v52, %v596_v45  ;;  %v856_v40 = vadd.f32 %v852_v58, %v844_v28  ;;  %v874_v38 = vmul.f32 %v3794_v11, %v867_v33  ;;  %v1014_v24 = vpop.permute.xlu1 %1013  ;;  %v2964_v28 = vpop.permute.xlu0 %915  ;;  %1786 = vrot.lane.b32.xlu0 %v2284_v25, %s2197_s27  ;;  %s3012_s8 = sld [smem:[#allocation4 + $0x45]]  ;;  %s3414_s27 = sld [smem:[#allocation4 + $0x59]] }
 0x12d   :  { %v3795_v48 = vmov %v3794_v11  ;;  %v870_v41 = vmul.f32 %v3796_v5, %v867_v33  ;;  %v3797_v0 = vmov %v3796_v5  ;;  %v893_v16 = vsel %vm892_vm7, %v889_v6, %v891_v12 }
 0x12e   :  { %v875_v4 = vmul.f32 %v3795_v48, %v866_v44  ;;  %v871_v61 = vmul.f32 %v3797_v0, %v866_v44  ;;  %v894_v34 = vsel %vm892_vm7, %v891_v12, %v889_v6  ;;  %v857_v2 = vmul.f32 %v855_v20, %v2405_v37 }
 0x12f   :  { %v858_v45 = vmul.f32 %v856_v40, %v2412_v39  ;;  %v878_v23 = vrot.slane %v874_v38, 2  ;;  %v3799_v14 = vstv %s2501_s21  ;;  %v1126_v31 = vstv %s2918_s22  ;;  %s2985_s21 = sld [smem:[#allocation4 + $0x5b]]  ;;  %s3298_s22 = sld [smem:[#allocation4 + $0x58]] }
 0x130   :  { %v879_v57 = vrot.slane %v875_v4, 2  ;;  %v901_v1 = vmul.f32 %v3799_v14, %v894_v34  ;;  %v3800_v13 = vmov %v3799_v14  ;;  %v1301_v26 = vstv %s2920_s23  ;;  %v1041_v58 = vpop.permute.xlu1 %1040  ;;  %v1016_v20 = vpop.permute.xlu0 %1015  ;;  %s3300_s23 = sld [smem:[#allocation4 + $0x2d]] }
 0x131   :  { %v902_v15 = vmul.f32 %v3800_v13, %v893_v16  ;;  %v859_v3 = vadd.f32 %v857_v2, %v830_v35  ;;  %v860_v7 = vadd.f32 %v858_v45, %v831_v18  ;;  %v882_v17 = vadd.f32 %v878_v23, %v870_v41 }
 0x132   :  { %v883_v52 = vadd.f32 %v879_v57, %v871_v61  ;;  %v3801_v44 = vstv %s3798_s2  ;;  %v905_v6 = vrot.slane %v901_v1, 2  ;;  %v1018_v18 = vsel %vm1017_vm8, %v1014_v24, %v1016_v20  ;;  %s3380_s2 = sld [smem:[#allocation4 + $0x28]] }
 0x133   :  { %v897_v33 = vmul.f32 %v3801_v44, %v894_v34  ;;  %v3802_v12 = vmov %v3801_v44  ;;  %v906_v63 = vrot.slane %v902_v15, 2  ;;  %v884_v25 = vmul.f32 %v882_v17, %v2417_v42 }
 0x134   :  { %v898_v27 = vmul.f32 %v3802_v12, %v893_v16  ;;  %v885_v35 = vmul.f32 %v883_v52, %v2424_v43  ;;  %v1019_v40 = vsel %vm1017_vm8, %v1016_v20, %v1014_v24  ;;  %v1305_v48 = vstv %s2947_s24  ;;  %v1068_v1 = vpop.permute.xlu1 %1067  ;;  %v1043_v13 = vpop.permute.xlu0 %1042  ;;  %s3319_s24 = sld [smem:[#allocation4 + $0x22]] }
 0x135   :  { %v909_v11 = vadd.f32 %v905_v6, %v897_v33  ;;  %v1480_v4 = vstv %s2949_s25  ;;  %v886_v5 = vadd.f32 %v884_v25, %v859_v3  ;;  %v3803_v0 = vstv %s2509_s14  ;;  %s3014_s14 = sld [smem:[#allocation4 + $0x1a]]  ;;  %s3344_s25 = sld [smem:[#allocation4 + $0x53]] }
 0x136   :  { %v910_v38 = vadd.f32 %v906_v63, %v898_v27  ;;  %v887_v41 = vadd.f32 %v885_v35, %v860_v7  ;;  %v1026_v61 = vmul.f32 %v3803_v0, %v1019_v40  ;;  %v3804_v16 = vmov %v3803_v0 }
 0x137   :  { %v1027_v34 = vmul.f32 %v3804_v16, %v1018_v18  ;;  %v911_v2 = vmul.f32 %v909_v11, %v2429_v46  ;;  %v3805_v45 = vstv %s2503_s20  ;;  %v1045_v7 = vsel %vm1044_vm9, %v1041_v58, %v1043_v13  ;;  %s3811_s20 = sld [smem:[#allocation31_spill]] }
 0x138   :  { %v912_v24 = vmul.f32 %v910_v38, %v2436_v47  ;;  %v1022_v23 = vmul.f32 %v3805_v45, %v1019_v40  ;;  %v3806_v57 = vmov %v3805_v45  ;;  %v1030_v15 = vrot.slane %v1026_v61, 2 }
 0x139   :  { %v1023_v14 = vmul.f32 %v3806_v57, %v1018_v18  ;;  %v1031_v3 = vrot.slane %v1027_v34, 2  ;;  %v1046_v17 = vsel %vm1044_vm9, %v1043_v13, %v1041_v58  ;;  %v3020_v52 = vadd.f32 %v911_v2, %v886_v5  ;;  %v3031_v18 = vld [vmem:[#allocation8 + $0x2] ss:$8 sm:$0x3]  ;;  %v1213_v5 = vpop.permute.xlu1 %1212 }
 0x13a   :  { %v3022_v44 = vadd.f32 %v912_v24, %v887_v41  ;;  %v1484_v33 = vstv %s2975_s28  ;;  %v1632_v12 = vstv %s2977_s29  ;;  %v1034_v27 = vadd.f32 %v1030_v15, %v1022_v23  ;;  %v1070_v41 = vpop.permute.xlu0 %1069  ;;  %s3416_s28 = sld [smem:[#allocation4 + $0x2e]]  ;;  %s3453_s29 = sld [smem:[#allocation4 + $0x5f]] }
 0x13b   :  { %v1035_v6 = vadd.f32 %v1031_v3, %v1023_v14  ;;  %v3807_v63 = vstv %s2534_s9  ;;  %v3809_v40 = vstv %s2511_s0  ;;  %v1636_v0 = vstv %s2985_s21  ;;  %s3814_s0 = sld [smem:[#allocation32_spill]]  ;;  %s3455_s21 = sld [smem:[#allocation4 + $0x29]] }
 0x13c   :  { %v1053_v20 = vmul.f32 %v3807_v63, %v1046_v17  ;;  %v3808_v25 = vmov %v3807_v63  ;;  %v1049_v58 = vmul.f32 %v3809_v40, %v1046_v17  ;;  %v3810_v11 = vmov %v3809_v40 }
 0x13d   :  { %v1054_v35 = vmul.f32 %v3808_v25, %v1045_v7  ;;  %v1050_v38 = vmul.f32 %v3810_v11, %v1045_v7  ;;  %v1036_v16 = vmul.f32 %v1034_v27, %v2494_v9  ;;  %v1037_v34 = vmul.f32 %v1035_v6, %v2497_v10 }
 0x13e   :  { %v1057_v2 = vrot.slane %v1053_v20, 2  ;;  %v1072_v45 = vsel %vm1071_vm10, %v1068_v1, %v1070_v41  ;;  %v1073_v23 = vsel %vm1071_vm10, %v1070_v41, %v1068_v1  ;;  %v3812_v17 = vstv %s2544_s1  ;;  %v1240_v20 = vpop.permute.xlu1 %1239  ;;  %v1215_v1 = vpop.permute.xlu0 %1214 }
 0x13f   :  { %v1058_v24 = vrot.slane %v1054_v35, 2  ;;  %v1080_v27 = vmul.f32 %v3812_v17, %v1073_v23  ;;  %v3813_v6 = vmov %v3812_v17  ;;  %v1217_v11 = vsel %vm1216_vm11, %v1213_v5, %v1215_v1 }
 0x140   :  { %v1061_v13 = vadd.f32 %v1057_v2, %v1049_v58  ;;  %v1081_v63 = vmul.f32 %v3813_v6, %v1072_v45  ;;  %v3815_v41 = vstv %s3811_s20  ;;  %v3817_v3 = vstv %s2571_s13  ;;  %s3172_s13 = sld [smem:[#allocation4 + $0x4b]]  ;;  %s2198_s20 = smov [#allocation12]  }
 0x141   :  { %v1062_v15 = vadd.f32 %v1058_v24, %v1050_v38  ;;  %v1218_v38 = vsel %vm1216_vm11, %v1215_v1, %v1213_v5  ;;  %v1076_v2 = vmul.f32 %v3815_v41, %v1073_v23  ;;  %v3816_v24 = vmov %v3815_v41 }
 0x142   :  { %v1063_v40 = vmul.f32 %v1061_v13, %v2405_v37  ;;  %v1077_v17 = vmul.f32 %v3816_v24, %v1072_v45  ;;  %v1084_v6 = vrot.slane %v1080_v27, 2  ;;  %v1085_v7 = vrot.slane %v1081_v63, 2  ;;  %v918_v27 = vpop.permute.xlu1 %917  ;;  %v1242_v63 = vpop.permute.xlu0 %1241 }
 0x143   :  { %v1064_v58 = vmul.f32 %v1062_v15, %v2412_v39  ;;  %v1225_v13 = vmul.f32 %v3817_v3, %v1217_v11  ;;  %v3819_v25 = vmov %v3817_v3  ;;  %v3821_v5 = vstv %s3814_s0  ;;  %s1858_s0 = sshll.u32 %s2198_s20, 4  ;;  %s1859_s0 = int_to_ptr.vmem [resolvable:$true] %s1858_s0 }
 0x144   :  { %v1065_v14 = vadd.f32 %v1063_v40, %v1036_v16  ;;  %v1226_v15 = vmul.f32 %v3819_v25, %v1218_v38  ;;  %v1088_v61 = vadd.f32 %v1084_v6, %v1076_v2  ;;  %v1089_v57 = vadd.f32 %v1085_v7, %v1077_v17  ;;  %s2113_s9 = scalar_lea.vmem %s1859_s0, 64  ;;  %p2118_p0 = scmp.lt.s32.totalorder %s1859_s0, %s1859_s0 }
 0x145   :  { %v1066_v35 = vadd.f32 %v1064_v58, %v1037_v34  ;;  %v1221_v23 = vmul.f32 %v3821_v5, %v1217_v11  ;;  %v3822_v1 = vmov %v3821_v5  ;;  %v1229_v16 = vrot.slane %v1225_v13, 2  ;;  %p2114_p13 = scmp.ne.s32.totalorder %s1859_s0, %s2113_s9  ;;  %p2119_p1 = scmp.lt.s32.totalorder %s2113_s9, %s2113_s9 }
 0x146   :  { %v1222_v45 = vmul.f32 %v3822_v1, %v1218_v38  ;;  %v1230_v34 = vrot.slane %v1226_v15, 2  ;;  %v920_v3 = vsel %vm919_vm12, %v2964_v28, %v918_v27  ;;  %v921_v25 = vsel %vm919_vm12, %v918_v27, %v2964_v28  ;;  %v1269_v17 = vpop.permute.xlu1 %1268  ;;  %v1267_v6 = vpop.permute.xlu0 %1266 }
 0x147   :  { %v1090_v40 = vmul.f32 %v1088_v61, %v2417_v42  ;;  %v1091_v7 = vmul.f32 %v1089_v57, %v2424_v43  ;;  %v924_v58 = vmul.f32 %v923_v22, %v921_v25  ;;  %v925_v11 = vmul.f32 %v923_v22, %v920_v3  ;;  %p2120_p2 = por %p2119_p1, %p2118_p0 }
 0x148   :  { %v1233_v38 = vadd.f32 %v1229_v16, %v1221_v23  ;;  %v1234_v41 = vadd.f32 %v1230_v34, %v1222_v45  ;;  %v928_v2 = vmul.f32 %v927_v49, %v921_v25  ;;  %v929_v24 = vmul.f32 %v927_v49, %v920_v3 }
 0x149   :  { %vm1449_vm0 = vcmp.lt.s32.totalorder %v2373_v29, 98  ;;  %v3095_v28 = vadd.f32 %v1090_v40, %v1065_v14  ;;  %v3097_v61 = vadd.f32 %v1091_v7, %v1066_v35  ;;  %v1244_v57 = vsel %vm1243_vm13, %v1240_v20, %v1242_v63  ;;  %p2121_p3 = pnand %p2120_p2, %p2114_p13 }
 0x14a   :  { %v1245_v22 = vsel %vm1243_vm13, %v1242_v63, %v1240_v20  ;;  %v1235_v13 = vmul.f32 %v1233_v38, %v2494_v9  ;;  %v1236_v49 = vmul.f32 %v1234_v41, %v2497_v10  ;;  %v932_v15 = vrot.slane %v928_v2, 2  ;;  %v1421_v41 = vpop.permute.xlu1 %1420  ;;  %v1419_v2 = vpop.permute.xlu0 %1418 }
 0x14b   :  { %v933_v5 = vrot.slane %v929_v24, 2  ;;  %v1248_v14 = vmul.f32 %v1247_v55, %v1244_v57  ;;  %v1249_v35 = vmul.f32 %v1247_v55, %v1245_v22  ;;  %v3823_v23 = vstv %s2632_s26  ;;  %s3174_s26 = sld [smem:[#allocation4 + $0x20]] }
 0x14c   :  { %v1252_v1 = vmul.f32 %v3823_v23, %v1244_v57  ;;  %v3824_v45 = vmov %v3823_v23  ;;  %v936_v27 = vadd.f32 %v932_v15, %v924_v58  ;;  %v1271_v16 = vsel %vm1270_vm14, %v1267_v6, %v1269_v17 }
 0x14d   :  { %v1253_v20 = vmul.f32 %v3824_v45, %v1245_v22  ;;  %v937_v63 = vadd.f32 %v933_v5, %v925_v11  ;;  %v1272_v34 = vsel %vm1270_vm14, %v1269_v17, %v1267_v6  ;;  %vm946_vm1 = vcmp.lt.s32.totalorder %v2373_v29, 14 }
 0x14e   :  { %v1256_v3 = vrot.slane %v1252_v1, 2  ;;  %v3825_v40 = vstv %s2655_s3  ;;  %v938_v58 = vmul.f32 %v936_v27, %v2441_v50  ;;  %v3827_v24 = vstv %s2680_s5  ;;  %s3214_s5 = sld [smem:[#allocation4 + $0x57]]  ;;  %s3230_s3 = sld [smem:[#allocation4 + $0x5d]] }
 0x14f   :  { %v1257_v25 = vrot.slane %v1253_v20, 2  ;;  %v1275_v55 = vmul.f32 %v3825_v40, %v1271_v16  ;;  %v3826_v7 = vmov %v3825_v40  ;;  %v939_v11 = vmul.f32 %v937_v63, %v2449_v51  ;;  %v1446_v40 = vpop.permute.xlu0 %1445 }
 0x150   :  { %v1276_v38 = vmul.f32 %v3826_v7, %v1272_v34  ;;  %v1279_v57 = vmul.f32 %v3827_v24, %v1271_v16  ;;  %v3828_v22 = vmov %v3827_v24  ;;  %v1260_v6 = vadd.f32 %v1256_v3, %v1248_v14 }
 0x151   :  { %v1280_v17 = vmul.f32 %v3828_v22, %v1272_v34  ;;  %v1261_v15 = vadd.f32 %v1257_v25, %v1249_v35  ;;  %v1423_v5 = vsel %vm1422_vm15, %v1419_v2, %v1421_v41  ;;  %v1424_v23 = vsel %vm1422_vm15, %v1421_v41, %v1419_v2  ;;  %v1448_v25 = vpop.permute.xlu1 %1447 }
 0x152   :  { %vm1118_vm2 = vcmp.lt.s32.totalorder %v2373_v29, 127  ;;  %v3134_v1 = vadd.f32 %v938_v58, %v3020_v52  ;;  %v3137_v45 = vadd.f32 %v939_v11, %v3022_v44  ;;  %v1283_v20 = vrot.slane %v1279_v57, 2 }
 0x153   :  { %v1284_v27 = vrot.slane %v1280_v17, 2  ;;  %v1262_v14 = vmul.f32 %v1260_v6, %v2405_v37  ;;  %v1263_v35 = vmul.f32 %v1261_v15, %v2412_v39  ;;  %v3829_v63 = vstv %s2682_s6  ;;  %s3199_s6 = sld [smem:[#allocation4 + $0x26]] }
 0x154   :  { %v1427_v16 = vmul.f32 %v3829_v63, %v1423_v5  ;;  %v3830_v34 = vmov %v3829_v63  ;;  %v1287_v52 = vadd.f32 %v1283_v20, %v1275_v55  ;;  %v3831_v44 = vstv %s2690_s17  ;;  %v943_v63 = vpop.permute.xlu0 %942  ;;  %s3197_s17 = sld [smem:[#allocation4 + $0x51]] }
 0x155   :  { %v1428_v3 = vmul.f32 %v3830_v34, %v1424_v23  ;;  %v1288_v7 = vadd.f32 %v1284_v27, %v1276_v38  ;;  %v1431_v41 = vmul.f32 %v3831_v44, %v1423_v5  ;;  %v3832_v2 = vmov %v3831_v44 }
 0x156   :  { %v1432_v58 = vmul.f32 %v3832_v2, %v1424_v23  ;;  %v1264_v11 = vadd.f32 %v1262_v14, %v1235_v13  ;;  %v1265_v24 = vadd.f32 %v1263_v35, %v1236_v49  ;;  %v1450_v57 = vsel %vm1449_vm0, %v1446_v40, %v1448_v25  ;;  %v945_v35 = vpop.permute.xlu1 %944 }
 0x157   :  { %v1451_v22 = vsel %vm1449_vm0, %v1448_v25, %v1446_v40  ;;  %vm1297_vm3 = vcmp.lt.s32.totalorder %v2373_v29, 112  ;;  %v1289_v17 = vmul.f32 %v1287_v52, %v2417_v42  ;;  %v1290_v55 = vmul.f32 %v1288_v7, %v2424_v43 }
 0x158   :  { %v1435_v6 = vrot.slane %v1431_v41, 2  ;;  %v1436_v38 = vrot.slane %v1432_v58, 2  ;;  %v3833_v15 = vstv %s2716_s10  ;;  %v3835_v13 = vstv %s2718_s7  ;;  %s3247_s10 = sld [smem:[#allocation4 + $0x1b]]  ;;  %s3249_s7 = sld [smem:[#allocation4 + $0x4c]] }
 0x159   :  { %v1454_v5 = vmul.f32 %v3833_v15, %v1450_v57  ;;  %v3834_v20 = vmov %v3833_v15  ;;  %v1458_v49 = vmul.f32 %v3835_v13, %v1450_v57  ;;  %v3836_v27 = vmov %v3835_v13  ;;  %v1115_v15 = vpop.permute.xlu0 %1114 }
 0x15a   :  { %v1455_v23 = vmul.f32 %v3834_v20, %v1451_v22  ;;  %v1459_v14 = vmul.f32 %v3836_v27, %v1451_v22  ;;  %v3164_v34 = vadd.f32 %v1289_v17, %v1264_v11  ;;  %v3166_v25 = vadd.f32 %v1290_v55, %v1265_v24 }
 0x15b   :  { %v1439_v40 = vadd.f32 %v1435_v6, %v1427_v16  ;;  %v1440_v52 = vadd.f32 %v1436_v38, %v1428_v3  ;;  %v1462_v7 = vrot.slane %v1458_v49, 2  ;;  %v947_v41 = vsel %vm946_vm1, %v943_v63, %v945_v35  ;;  %v1117_v38 = vpop.permute.xlu1 %1116 }
 0x15c   :  { %v1463_v44 = vrot.slane %v1459_v14, 2  ;;  %v948_v2 = vsel %vm946_vm1, %v945_v35, %v943_v63  ;;  %v3837_v24 = vstv %s2724_s15  ;;  %vm1476_vm4 = vcmp.lt.s32.totalorder %v2373_v29, 97  ;;  %s3262_s15 = sld [smem:[#allocation4 + $0x21]] }
 0x15d   :  { %v1441_v58 = vmul.f32 %v1439_v40, %v2494_v9  ;;  %v1442_v11 = vmul.f32 %v1440_v52, %v2497_v10  ;;  %v951_v16 = vmul.f32 %v3837_v24, %v948_v2  ;;  %v3838_v57 = vmov %v3837_v24 }
 0x15e   :  { %v952_v3 = vmul.f32 %v3838_v57, %v947_v41  ;;  %v1466_v22 = vadd.f32 %v1462_v7, %v1454_v5  ;;  %v1467_v17 = vadd.f32 %v1463_v44, %v1455_v23  ;;  %v955_v55 = vmul.f32 %v954_v19, %v948_v2  ;;  %v1294_v44 = vpop.permute.xlu0 %1293 }
 0x15f   :  { %v956_v6 = vmul.f32 %v954_v19, %v947_v41  ;;  %v1112_v20 = vadd.f32 %v2721_v36, %v3095_v28  ;;  %v1113_v13 = vadd.f32 %v2775_v21, %v3097_v61  ;;  %v1119_v5 = vsel %vm1118_vm2, %v1115_v15, %v1117_v38  ;;  %v1296_v7 = vpop.permute.xlu1 %1295 }
 0x160   :  { %v1120_v23 = vsel %vm1118_vm2, %v1117_v38, %v1115_v15  ;;  %v1468_v49 = vmul.f32 %v1466_v22, %v2405_v37  ;;  %v1469_v27 = vmul.f32 %v1467_v17, %v2412_v39  ;;  %v959_v19 = vrot.slane %v955_v55, 2 }
 0x161   :  { %v960_v14 = vrot.slane %v956_v6, 2  ;;  %v1123_v36 = vmul.f32 %v1122_v60, %v1119_v5  ;;  %v1124_v21 = vmul.f32 %v1122_v60, %v1120_v23  ;;  %v1127_v28 = vmul.f32 %v1126_v31, %v1119_v5 }
 0x162   :  { %v1128_v61 = vmul.f32 %v1126_v31, %v1120_v23  ;;  %vm1628_vm5 = vcmp.lt.s32.totalorder %v2373_v29, 83  ;;  %v3210_v35 = vadd.f32 %v1468_v49, %v1441_v58  ;;  %v3212_v63 = vadd.f32 %v1469_v27, %v1442_v11 }
 0x163   :  { %v963_v40 = vadd.f32 %v959_v19, %v951_v16  ;;  %v964_v52 = vadd.f32 %v960_v14, %v952_v3  ;;  %v1131_v60 = vrot.slane %v1127_v28, 2  ;;  %v1298_v31 = vsel %vm1297_vm3, %v1294_v44, %v1296_v7  ;;  %v1475_v5 = vpop.permute.xlu1 %1474 }
 0x164   :  { %v1132_v41 = vrot.slane %v1128_v61, 2  ;;  %v1299_v2 = vsel %vm1297_vm3, %v1296_v7, %v1294_v44  ;;  %v1153_v24 = vstv %s3172_s13  ;;  %v1328_v16 = vstv %s3174_s26 }
 0x165   :  { %v965_v58 = vmul.f32 %v963_v40, %v2454_v54  ;;  %v966_v11 = vmul.f32 %v964_v52, %v2459_v56  ;;  %v1135_v57 = vadd.f32 %v1131_v60, %v1123_v36  ;;  %v1306_v22 = vmul.f32 %v1305_v48, %v1298_v31 }
 0x166   :  { %v1136_v3 = vadd.f32 %v1132_v41, %v1124_v21  ;;  %v1307_v17 = vmul.f32 %v1305_v48, %v1299_v2  ;;  %v1302_v38 = vmul.f32 %v1301_v26, %v1298_v31  ;;  %v1303_v15 = vmul.f32 %v1301_v26, %v1299_v2  ;;  %v3243_v48 = vld [vmem:[#allocation8 + $0x3] ss:$8 sm:$0x3] }
 0x167   :  { %v3233_v55 = vadd.f32 %v965_v58, %v3134_v1  ;;  %v3236_v6 = vadd.f32 %v966_v11, %v3137_v45  ;;  %vm1655_vm6 = vcmp.lt.s32.totalorder %v2373_v29, 82  ;;  %v1137_v23 = vmul.f32 %v1135_v57, %v2441_v50  ;;  %v1473_v45 = vpop.permute.xlu0 %1472  ;;  %v1627_v44 = vpop.permute.xlu1 %1626 }
 0x168   :  { %v1138_v49 = vmul.f32 %v1136_v3, %v2449_v51  ;;  %v1310_v1 = vrot.slane %v1306_v22, 2  ;;  %v1311_v27 = vrot.slane %v1307_v17, 2  ;;  %v1477_v26 = vsel %vm1476_vm4, %v1473_v45, %v1475_v5 }
 0x169   :  { %v1478_v19 = vsel %vm1476_vm4, %v1475_v5, %v1473_v45  ;;  %v1332_v14 = vstv %s3197_s17  ;;  %v1507_v36 = vstv %s3199_s6  ;;  %v3257_v21 = vadd.f32 %v1137_v23, %v1112_v20 }
 0x16a   :  { %v3259_v28 = vadd.f32 %v1138_v49, %v1113_v13  ;;  %v1314_v61 = vadd.f32 %v1310_v1, %v1302_v38  ;;  %v1315_v40 = vadd.f32 %v1311_v27, %v1303_v15  ;;  %vm973_vm7 = vcmp.lt.s32.totalorder %v2373_v29, 13 }
 0x16b   :  { %v1485_v52 = vmul.f32 %v1484_v33, %v1477_v26  ;;  %v1486_v7 = vmul.f32 %v1484_v33, %v1478_v19  ;;  %v1511_v60 = vstv %s3214_s5  ;;  %v1199_v41 = vrot.slane %v3243_v48, %v2378_v30  ;;  %v1625_v58 = vpop.permute.xlu0 %1624  ;;  %v1654_v1 = vpop.permute.xlu1 %1653 }
 0x16c   :  { %v1316_v20 = vmul.f32 %v1314_v61, %v2429_v46  ;;  %v1317_v13 = vmul.f32 %v1315_v40, %v2436_v47  ;;  %v1481_v31 = vmul.f32 %v1480_v4, %v1477_v26  ;;  %v1482_v2 = vmul.f32 %v1480_v4, %v1478_v19 }
 0x16d   :  { %v1489_v33 = vrot.slane %v1485_v52, 2  ;;  %v1490_v11 = vrot.slane %v1486_v7, 2  ;;  %v1629_v57 = vsel %vm1628_vm5, %v1625_v58, %v1627_v44  ;;  %v1630_v3 = vsel %vm1628_vm5, %v1627_v44, %v1625_v58 }
 0x16e   :  { %v3286_v22 = vadd.f32 %v1316_v20, %v3164_v34  ;;  %v3289_v4 = vadd.f32 %v1317_v13, %v3166_v25  ;;  %vm1145_vm8 = vcmp.lt.s32.totalorder %v2373_v29, 126  ;;  %v1686_v17 = vstv %s3228_s18 }
 0x16f   :  { %v1690_v38 = vstv %s3230_s3  ;;  %v1493_v15 = vadd.f32 %v1489_v33, %v1481_v31  ;;  %v1494_v5 = vadd.f32 %v1490_v11, %v1482_v2  ;;  %v1637_v23 = vmul.f32 %v1636_v0, %v1629_v57  ;;  %v1652_v27 = vpop.permute.xlu0 %1651  ;;  %v972_v58 = vpop.permute.xlu1 %971 }
 0x170   :  { %v1638_v49 = vmul.f32 %v1636_v0, %v1630_v3  ;;  %v1633_v34 = vmul.f32 %v1632_v12, %v1629_v57  ;;  %v1634_v25 = vmul.f32 %v1632_v12, %v1630_v3  ;;  %v1176_v45 = vstv %s3247_s10 }
 0x171   :  { %v1180_v26 = vstv %s3249_s7  ;;  %v1495_v19 = vmul.f32 %v1493_v15, %v2417_v42  ;;  %v1496_v61 = vmul.f32 %v1494_v5, %v2424_v43  ;;  %v1641_v0 = vrot.slane %v1637_v23, 2 }
 0x172   :  { %v1642_v40 = vrot.slane %v1638_v49, 2  ;;  %v1656_v52 = vsel %vm1655_vm6, %v1652_v27, %v1654_v1  ;;  %v1657_v7 = vsel %vm1655_vm6, %v1654_v1, %v1652_v27  ;;  %v1355_v44 = vstv %s3262_s15 }
 0x173   :  { %v3322_v20 = vadd.f32 %v1495_v19, %v3210_v35  ;;  %v3325_v13 = vadd.f32 %v1496_v61, %v3212_v63  ;;  %v1645_v31 = vadd.f32 %v1641_v0, %v1633_v34  ;;  %vm1324_vm9 = vcmp.lt.s32.totalorder %v2373_v29, 111  ;;  %v970_v15 = vpop.permute.xlu0 %969 }
 0x174   :  { %v1646_v2 = vadd.f32 %v1642_v40, %v1634_v25  ;;  %v3839_v33 = vstv %s2998_s19  ;;  %v1359_v5 = vstv %s3277_s16  ;;  %v1534_v35 = vstv %s3279_s12  ;;  %s3534_s19 = sld [smem:[#allocation4 + $0x2f]] }
 0x175   :  { %v1664_v11 = vmul.f32 %v3839_v33, %v1656_v52  ;;  %v3840_v57 = vmov %v3839_v33  ;;  %v1647_v23 = vmul.f32 %v1645_v31, %v2494_v9  ;;  %v974_v49 = vsel %vm973_vm7, %v970_v15, %v972_v58 }
 0x176   :  { %v1665_v3 = vmul.f32 %v3840_v57, %v1657_v7  ;;  %v1648_v63 = vmul.f32 %v1646_v2, %v2497_v10  ;;  %v975_v1 = vsel %vm973_vm7, %v972_v58, %v970_v15  ;;  %v3841_v34 = vstv %s2987_s30  ;;  %v1144_v2 = vpop.permute.xlu1 %1143  ;;  %s3505_s30 = sld [smem:[#allocation4 + $0x5a]] }
 0x177   :  { %v1660_v25 = vmul.f32 %v3841_v34, %v1656_v52  ;;  %v3842_v27 = vmov %v3841_v34  ;;  %v1668_v61 = vrot.slane %v1664_v11, 2  ;;  %v3843_v40 = vstv %s3012_s8  ;;  %v1142_v34 = vpop.permute.xlu0 %1141  ;;  %s3600_s8 = sld [smem:[#allocation4 + $0x61]] }
 0x178   :  { %v1661_v19 = vmul.f32 %v3842_v27, %v1657_v7  ;;  %v1669_v0 = vrot.slane %v1665_v3, 2  ;;  %v982_v9 = vmul.f32 %v3843_v40, %v975_v1  ;;  %v3844_v31 = vmov %v3843_v40 }
 0x179   :  { %v983_v10 = vmul.f32 %v3844_v31, %v974_v49  ;;  %vm1503_vm10 = vcmp.lt.s32.totalorder %v2373_v29, 96  ;;  %v1538_v33 = vstv %s3298_s22  ;;  %v1672_v58 = vadd.f32 %v1668_v61, %v1660_v25 }
 0x17a   :  { %v1673_v52 = vadd.f32 %v1669_v0, %v1661_v19  ;;  %v3845_v15 = vstv %s3004_s11  ;;  %v986_v27 = vrot.slane %v982_v9, 2  ;;  %v1146_v31 = vsel %vm1145_vm8, %v1142_v34, %v1144_v2  ;;  %s3536_s11 = sld [smem:[#allocation4 + $0x60]] }
 0x17b   :  { %v978_v7 = vmul.f32 %v3845_v15, %v975_v1  ;;  %v3846_v11 = vmov %v3845_v15  ;;  %v987_v40 = vrot.slane %v983_v10, 2  ;;  %v1147_v12 = vsel %vm1145_vm8, %v1144_v2, %v1142_v34  ;;  %v1323_v15 = vpop.permute.xlu1 %1322  ;;  %v1321_v34 = vpop.permute.xlu0 %1320 }
 0x17c   :  { %v979_v3 = vmul.f32 %v3846_v11, %v974_v49  ;;  %v1674_v25 = vmul.f32 %v1672_v58, %v2405_v37  ;;  %v1675_v19 = vmul.f32 %v1673_v52, %v2412_v39  ;;  %vm1682_vm11 = vcmp.lt.s32.totalorder %v2373_v29, 81  ;;  %v3370_v11 = vld [vmem:[#allocation8 + $0x4] ss:$8 sm:$0x3] }
 0x17d   :  { %v1717_v1 = vstv %s3317_s4  ;;  %v1382_v61 = vstv %s3319_s24  ;;  %v990_v49 = vadd.f32 %v986_v27, %v978_v7  ;;  %v1154_v9 = vmul.f32 %v1153_v24, %v1146_v31 }
 0x17e   :  { %v991_v0 = vadd.f32 %v987_v40, %v979_v3  ;;  %v1155_v10 = vmul.f32 %v1153_v24, %v1147_v12  ;;  %v3372_v57 = vadd.f32 %v1674_v25, %v1647_v23  ;;  %v3374_v2 = vadd.f32 %v1675_v19, %v1648_v63 }
 0x17f   :  { %v3847_v37 = vstv %s3014_s14  ;;  %v992_v7 = vmul.f32 %v990_v49, %v2464_v59  ;;  %v1158_v3 = vrot.slane %v1154_v9, 2  ;;  %v1325_v63 = vsel %vm1324_vm9, %v1321_v34, %v1323_v15  ;;  %s3634_s14 = sld [smem:[#allocation4 + $0x30]] }
 0x180   :  { %v1150_v39 = vmul.f32 %v3847_v37, %v1146_v31  ;;  %v3848_v58 = vmov %v3847_v37  ;;  %v993_v24 = vmul.f32 %v991_v0, %v2473_v62  ;;  %v1159_v23 = vrot.slane %v1155_v10, 2  ;;  %v1502_v0 = vpop.permute.xlu1 %1501 }
 0x181   :  { %v1151_v52 = vmul.f32 %v3848_v58, %v1147_v12  ;;  %v1326_v27 = vsel %vm1324_vm9, %v1323_v15, %v1321_v34  ;;  %v1386_v12 = vstv %s3344_s25  ;;  %v1405_v40 = vrot.slane %v3370_v11, %v2378_v30  ;;  %v1500_v58 = vpop.permute.xlu0 %1499 }
 0x182   :  { %v994_v31 = vadd.f32 %v992_v7, %v3233_v55  ;;  %v995_v25 = vadd.f32 %v993_v24, %v3236_v6  ;;  %v1162_v19 = vadd.f32 %v1158_v3, %v1150_v39  ;;  %vm1172_vm12 = vcmp.lt.s32.totalorder %v2373_v29, 125 }
 0x183   :  { %v1163_v49 = vadd.f32 %v1159_v23, %v1151_v52  ;;  %v1329_v9 = vmul.f32 %v1328_v16, %v1325_v63  ;;  %v1330_v10 = vmul.f32 %v1328_v16, %v1326_v27  ;;  %v1333_v37 = vmul.f32 %v1332_v14, %v1325_v63 }
 0x184   :  { %v1334_v15 = vmul.f32 %v1332_v14, %v1326_v27  ;;  %v3849_v34 = vrot.slane %v3031_v18, %v2378_v30  ;;  %v3850_v6 = vrot.slane %v3031_v18, %v2385_v32  ;;  %v1164_v52 = vmul.f32 %v1162_v19, %v2454_v54 }
 0x185   :  { %v1165_v7 = vmul.f32 %v1163_v49, %v2459_v56  ;;  %v1337_v24 = vrot.slane %v1333_v37, 2  ;;  %v1504_v14 = vsel %vm1503_vm10, %v1500_v58, %v1502_v0  ;;  %v1505_v3 = vsel %vm1503_vm10, %v1502_v0, %v1500_v58 }
 0x186   :  { %v1007_v55 = vmul.f32 %v3849_v34, %v994_v31  ;;  %v1008_v39 = vmul.f32 %v3850_v6, %v995_v25  ;;  %v1338_v16 = vrot.slane %v1334_v15, 2  ;;  %v3425_v63 = vadd.f32 %v1164_v52, %v3257_v21  ;;  %v1681_v31 = vpop.permute.xlu1 %1680 }
 0x187   :  { %v3428_v27 = vadd.f32 %v1165_v7, %v3259_v28  ;;  %vm1351_vm13 = vcmp.lt.s32.totalorder %v2373_v29, 110  ;;  %v1341_v25 = vadd.f32 %v1337_v24, %v1329_v9  ;;  %v1561_v49 = vstv %s3380_s2 }
 0x188   :  { %v3419_v18 = vadd.f32 %v1007_v55, %v2939_v8  ;;  %v3422_v23 = vadd.f32 %v1008_v39, %v2941_v53  ;;  %v1342_v19 = vadd.f32 %v1338_v16, %v1330_v10  ;;  %v1679_v8 = vpop.permute.xlu0 %1678  ;;  %v1409_v53 = vrot.slane %v3370_v11, %v2385_v32 }
 0x189   :  { %v1512_v0 = vmul.f32 %v1511_v60, %v1504_v14  ;;  %v1513_v21 = vmul.f32 %v1511_v60, %v1505_v3  ;;  %v1683_v28 = vsel %vm1682_vm11, %v1679_v8, %v1681_v31  ;;  %v1684_v37 = vsel %vm1682_vm11, %v1681_v31, %v1679_v8 }
 0x18a   :  { %v1343_v9 = vmul.f32 %v1341_v25, %v2441_v50  ;;  %v1344_v10 = vmul.f32 %v1342_v19, %v2449_v51  ;;  %v1508_v15 = vmul.f32 %v1507_v36, %v1504_v14  ;;  %v1509_v58 = vmul.f32 %v1507_v36, %v1505_v3  ;;  %v1171_v39 = vpop.permute.xlu1 %1170 }
 0x18b   :  { %vm1530_vm14 = vcmp.lt.s32.totalorder %v2373_v29, 95  ;;  %v1516_v34 = vrot.slane %v1512_v0, 2  ;;  %v1517_v60 = vrot.slane %v1513_v21, 2  ;;  %v1691_v55 = vmul.f32 %v1690_v38, %v1683_v28 }
 0x18c   :  { %v1692_v6 = vmul.f32 %v1690_v38, %v1684_v37  ;;  %v3458_v52 = vadd.f32 %v1343_v9, %v3286_v22  ;;  %v3461_v36 = vadd.f32 %v1344_v10, %v3289_v4  ;;  %v1687_v7 = vmul.f32 %v1686_v17, %v1683_v28  ;;  %v1169_v16 = vpop.permute.xlu0 %1168 }
 0x18d   :  { %v1688_v24 = vmul.f32 %v1686_v17, %v1684_v37  ;;  %v1520_v38 = vadd.f32 %v1516_v34, %v1508_v15  ;;  %v1521_v14 = vadd.f32 %v1517_v60, %v1509_v58  ;;  %v1695_v3 = vrot.slane %v1691_v55, 2 }
 0x18e   :  { %v1696_v31 = vrot.slane %v1692_v6, 2  ;;  %v1173_v22 = vsel %vm1172_vm12, %v1169_v16, %v1171_v39  ;;  %v1174_v4 = vsel %vm1172_vm12, %v1171_v39, %v1169_v16  ;;  %vm1709_vm15 = vcmp.lt.s32.totalorder %v2373_v29, 80  ;;  %v1350_v28 = vpop.permute.xlu1 %1349 }
 0x18f   :  { %v1565_v25 = vstv %s3414_s27  ;;  %v1740_v19 = vstv %s3416_s28  ;;  %v1522_v17 = vmul.f32 %v1520_v38, %v2429_v46  ;;  %v1523_v8 = vmul.f32 %v1521_v14, %v2436_v47 }
 0x190   :  { %v1699_v0 = vadd.f32 %v1695_v3, %v1687_v7  ;;  %v1700_v21 = vadd.f32 %v1696_v31, %v1688_v24  ;;  %v1177_v37 = vmul.f32 %v1176_v45, %v1173_v22  ;;  %v1178_v9 = vmul.f32 %v1176_v45, %v1174_v4  ;;  %v1348_v58 = vpop.permute.xlu0 %1347 }
 0x191   :  { %v1181_v10 = vmul.f32 %v1180_v26, %v1173_v22  ;;  %v1182_v15 = vmul.f32 %v1180_v26, %v1174_v4  ;;  %v3485_v34 = vadd.f32 %v1522_v17, %v3322_v20  ;;  %v3488_v60 = vadd.f32 %v1523_v8, %v3325_v13 }
 0x192   :  { %v1701_v55 = vmul.f32 %v1699_v0, %v2417_v42  ;;  %v1702_v6 = vmul.f32 %v1700_v21, %v2424_v43  ;;  %v1352_v26 = vsel %vm1351_vm13, %v1348_v58, %v1350_v28  ;;  %v1353_v20 = vsel %vm1351_vm13, %v1350_v28, %v1348_v58  ;;  %v1529_v42 = vpop.permute.xlu1 %1528 }
 0x193   :  { %v1185_v45 = vrot.slane %v1181_v10, 2  ;;  %v1186_v39 = vrot.slane %v1182_v15, 2  ;;  %vm1378_vm0 = vcmp.lt.s32.totalorder %v2373_v29, 109  ;;  %v1744_v43 = vstv %s3453_s29  ;;  %v3530_v10 = vld [vmem:[#allocation8 + $0x5] ss:$8 sm:$0x3] }
 0x194   :  { %v3497_v7 = vadd.f32 %v1701_v55, %v3372_v57  ;;  %v3500_v13 = vadd.f32 %v1702_v6, %v3374_v2  ;;  %v1588_v24 = vstv %s3455_s21  ;;  %v1360_v14 = vmul.f32 %v1359_v5, %v1352_v26  ;;  %v1527_v3 = vpop.permute.xlu0 %1526 }
 0x195   :  { %v1189_v16 = vadd.f32 %v1185_v45, %v1177_v37  ;;  %v1190_v38 = vadd.f32 %v1186_v39, %v1178_v9  ;;  %v1361_v57 = vmul.f32 %v1359_v5, %v1353_v20  ;;  %v1356_v2 = vmul.f32 %v1355_v44, %v1352_v26 }
 0x196   :  { %v1357_v31 = vmul.f32 %v1355_v44, %v1353_v20  ;;  %v1531_v22 = vsel %vm1530_vm14, %v1527_v3, %v1529_v42  ;;  %v1532_v4 = vsel %vm1530_vm14, %v1529_v42, %v1527_v3  ;;  %v1364_v0 = vrot.slane %v1360_v14, 2  ;;  %v1708_v9 = vpop.permute.xlu1 %1707 }
 0x197   :  { %v1191_v17 = vmul.f32 %v1189_v16, %v2464_v59  ;;  %v1192_v8 = vmul.f32 %v1190_v38, %v2473_v62  ;;  %v1365_v21 = vrot.slane %v1361_v57, 2  ;;  %vm1557_vm1 = vcmp.lt.s32.totalorder %v2373_v29, 94 }
 0x198   :  { %v1535_v5 = vmul.f32 %v1534_v35, %v1531_v22  ;;  %v1536_v28 = vmul.f32 %v1534_v35, %v1532_v4  ;;  %v1539_v44 = vmul.f32 %v1538_v33, %v1531_v22  ;;  %v1540_v37 = vmul.f32 %v1538_v33, %v1532_v4  ;;  %v1706_v45 = vpop.permute.xlu0 %1705 }
 0x199   :  { %v1193_v15 = vadd.f32 %v1191_v17, %v3425_v63  ;;  %v1194_v58 = vadd.f32 %v1192_v8, %v3428_v27  ;;  %v1368_v55 = vadd.f32 %v1364_v0, %v1356_v2  ;;  %v1369_v6 = vadd.f32 %v1365_v21, %v1357_v31 }
 0x19a   :  { %v1543_v35 = vrot.slane %v1539_v44, 2  ;;  %v1544_v39 = vrot.slane %v1540_v37, 2  ;;  %v1710_v33 = vsel %vm1709_vm15, %v1706_v45, %v1708_v9  ;;  %v1711_v26 = vsel %vm1709_vm15, %v1708_v9, %v1706_v45  ;;  %v1377_v57 = vpop.permute.xlu1 %1376 }
 0x19b   :  { %v1206_v63 = vmul.f32 %v1199_v41, %v1193_v15  ;;  %v3851_v27 = vrot.slane %v3243_v48, %v2385_v32  ;;  %v1370_v42 = vmul.f32 %v1368_v55, %v2454_v54  ;;  %v1371_v16 = vmul.f32 %v1369_v6, %v2459_v56 }
 0x19c   :  { %v1547_v38 = vadd.f32 %v1543_v35, %v1535_v5  ;;  %v1548_v14 = vadd.f32 %v1544_v39, %v1536_v28  ;;  %vm1736_vm2 = vcmp.lt.s32.totalorder %v2373_v29, 79  ;;  %v1592_v3 = vstv %s3505_s30  ;;  %v1375_v4 = vpop.permute.xlu0 %1374 }
 0x19d   :  { %v1207_v20 = vmul.f32 %v3851_v27, %v1194_v58  ;;  %v1611_v41 = vrot.slane %v3530_v10, %v2378_v30  ;;  %v3555_v48 = vadd.f32 %v1206_v63, %v3419_v18  ;;  %v1372_v31 = vadd.f32 %v1370_v42, %v3458_v52 }
 0x19e   :  { %v1373_v22 = vadd.f32 %v1371_v16, %v3461_v36  ;;  %v1549_v17 = vmul.f32 %v1547_v38, %v2441_v50  ;;  %v1550_v8 = vmul.f32 %v1548_v14, %v2449_v51  ;;  %v1718_v0 = vmul.f32 %v1717_v1, %v1710_v33  ;;  %v1556_v15 = vpop.permute.xlu1 %1555 }
 0x19f   :  { %v3558_v2 = vadd.f32 %v1207_v20, %v3422_v23  ;;  %v1719_v18 = vmul.f32 %v1717_v1, %v1711_v26  ;;  %v3852_v21 = vstv %s3300_s23  ;;  %v1379_v52 = vsel %vm1378_vm0, %v1375_v4, %v1377_v57 }
 0x1a0   :  { %v1714_v23 = vmul.f32 %v3852_v21, %v1710_v33  ;;  %v3853_v5 = vmov %v3852_v21  ;;  %v1380_v36 = vsel %vm1378_vm0, %v1377_v57, %v1375_v4  ;;  %vm1584_vm3 = vcmp.lt.s32.totalorder %v2373_v29, 93  ;;  %v1554_v6 = vpop.permute.xlu0 %1553 }
 0x1a1   :  { %v1715_v28 = vmul.f32 %v3853_v5, %v1711_v26  ;;  %v1551_v44 = vadd.f32 %v1549_v17, %v3485_v34  ;;  %v1552_v37 = vadd.f32 %v1550_v8, %v3488_v60  ;;  %v1722_v9 = vrot.slane %v1718_v0, 2 }
 0x1a2   :  { %v1723_v1 = vrot.slane %v1719_v18, 2  ;;  %v1387_v58 = vmul.f32 %v1386_v12, %v1379_v52  ;;  %v1388_v55 = vmul.f32 %v1386_v12, %v1380_v36  ;;  %v1767_v45 = vstv %s3534_s19  ;;  %v1735_v14 = vpop.permute.xlu1 %1734 }
 0x1a3   :  { %v1771_v35 = vstv %s3536_s11  ;;  %v1726_v39 = vadd.f32 %v1722_v9, %v1714_v23  ;;  %v1558_v34 = vsel %vm1557_vm1, %v1554_v6, %v1556_v15  ;;  %v1559_v60 = vsel %vm1557_vm1, %v1556_v15, %v1554_v6 }
 0x1a4   :  { %v1727_v33 = vadd.f32 %v1723_v1, %v1715_v28  ;;  %v1383_v26 = vmul.f32 %v1382_v61, %v1379_v52  ;;  %v1384_v63 = vmul.f32 %v1382_v61, %v1380_v36  ;;  %v1391_v27 = vrot.slane %v1387_v58, 2  ;;  %v1733_v8 = vpop.permute.xlu0 %1732 }
 0x1a5   :  { %v1392_v12 = vrot.slane %v1388_v55, 2  ;;  %vm1763_vm4 = vcmp.lt.s32.totalorder %v2373_v29, 78  ;;  %v1728_v20 = vmul.f32 %v1726_v39, %v2429_v46  ;;  %v1566_v16 = vmul.f32 %v1565_v25, %v1558_v34 }
 0x1a6   :  { %v1729_v42 = vmul.f32 %v1727_v33, %v2436_v47  ;;  %v1567_v38 = vmul.f32 %v1565_v25, %v1559_v60  ;;  %v1395_v57 = vadd.f32 %v1391_v27, %v1383_v26  ;;  %v1562_v61 = vmul.f32 %v1561_v49, %v1558_v34  ;;  %v1583_v36 = vpop.permute.xlu1 %1582 }
 0x1a7   :  { %v1396_v4 = vadd.f32 %v1392_v12, %v1384_v63  ;;  %v1563_v17 = vmul.f32 %v1561_v49, %v1559_v60  ;;  %v1730_v46 = vadd.f32 %v1728_v20, %v3497_v7  ;;  %v1570_v0 = vrot.slane %v1566_v16, 2 }
 0x1a8   :  { %v1731_v47 = vadd.f32 %v1729_v42, %v3500_v13  ;;  %v1571_v25 = vrot.slane %v1567_v38, 2  ;;  %v1397_v18 = vmul.f32 %v1395_v57, %v2464_v59  ;;  %v1737_v23 = vsel %vm1736_vm2, %v1733_v8, %v1735_v14  ;;  %v1581_v58 = vpop.permute.xlu0 %1580 }
 0x1a9   :  { %v1398_v21 = vmul.f32 %v1396_v4, %v2473_v62  ;;  %v1738_v5 = vsel %vm1736_vm2, %v1735_v14, %v1733_v8  ;;  %v1574_v49 = vadd.f32 %v1570_v0, %v1562_v61  ;;  %v1741_v52 = vmul.f32 %v1740_v19, %v1737_v23 }
 0x1aa   :  { %v1575_v28 = vadd.f32 %v1571_v25, %v1563_v17  ;;  %v1742_v7 = vmul.f32 %v1740_v19, %v1738_v5  ;;  %v1399_v13 = vadd.f32 %v1397_v18, %v1372_v31  ;;  %v1745_v1 = vmul.f32 %v1744_v43, %v1737_v23  ;;  %v1762_v26 = vpop.permute.xlu1 %1761 }
 0x1ab   :  { %v1400_v9 = vadd.f32 %v1398_v21, %v1373_v22  ;;  %v1746_v15 = vmul.f32 %v1744_v43, %v1738_v5  ;;  %v1576_v55 = vmul.f32 %v1574_v49, %v2454_v54  ;;  %v1585_v39 = vsel %vm1584_vm3, %v1581_v58, %v1583_v36 }
 0x1ac   :  { %v1577_v6 = vmul.f32 %v1575_v28, %v2459_v56  ;;  %v1586_v33 = vsel %vm1584_vm3, %v1583_v36, %v1581_v58  ;;  %v1412_v19 = vmul.f32 %v1405_v40, %v1399_v13  ;;  %v1749_v31 = vrot.slane %v1745_v1, 2  ;;  %v1760_v12 = vpop.permute.xlu0 %1759 }
 0x1ad   :  { %v1413_v43 = vmul.f32 %v1409_v53, %v1400_v9  ;;  %v1750_v22 = vrot.slane %v1746_v15, 2  ;;  %v1578_v34 = vadd.f32 %v1576_v55, %v1551_v44  ;;  %vm1790_vm5 = vcmp.lt.s32.totalorder %v2373_v29, 77 }
 0x1ae   :  { %v1579_v60 = vadd.f32 %v1577_v6, %v1552_v37  ;;  %v1798_v63 = vstv %s3600_s8  ;;  %v1414_v40 = vadd.f32 %v1412_v19, %v3555_v48  ;;  %v1753_v27 = vadd.f32 %v1749_v31, %v1741_v52  ;;  %v1789_v61 = vpop.permute.xlu1 %1788 }
 0x1af   :  { %v1415_v11 = vadd.f32 %v1413_v43, %v3558_v2  ;;  %v1754_v53 = vadd.f32 %v1750_v22, %v1742_v7  ;;  %v1593_v20 = vmul.f32 %v1592_v3, %v1585_v39  ;;  %v1594_v44 = vmul.f32 %v1592_v3, %v1586_v33  ;;  %v1623_v43 = vld [vmem:[#allocation8 + $0x6] ss:$8 sm:$0x3] }
 0x1b0   :  { %v1764_v37 = vsel %vm1763_vm4, %v1760_v12, %v1762_v26  ;;  %v1765_v42 = vsel %vm1763_vm4, %v1762_v26, %v1760_v12  ;;  %v1755_v48 = vmul.f32 %v1753_v27, %v2441_v50  ;;  %v1589_v2 = vmul.f32 %v1588_v24, %v1585_v39  ;;  %v1787_v25 = vpop.permute.xlu0 %1786 }
 0x1b1   :  { %v1756_v16 = vmul.f32 %v1754_v53, %v2449_v51  ;;  %v1590_v38 = vmul.f32 %v1588_v24, %v1586_v33  ;;  %v1597_v14 = vrot.slane %v1593_v20, 2  ;;  %v1598_v57 = vrot.slane %v1594_v44, 2 }
 0x1b2   :  { %v1772_v4 = vmul.f32 %v1771_v35, %v1764_v37  ;;  %v1773_v3 = vmul.f32 %v1771_v35, %v1765_v42  ;;  %v1757_v17 = vadd.f32 %v1755_v48, %v1730_v46  ;;  %v1768_v0 = vmul.f32 %v1767_v45, %v1764_v37 }
 0x1b3   :  { %v1758_v8 = vadd.f32 %v1756_v16, %v1731_v47  ;;  %v1769_v50 = vmul.f32 %v1767_v45, %v1765_v42  ;;  %v1601_v51 = vadd.f32 %v1597_v14, %v1589_v2  ;;  %v1602_v18 = vadd.f32 %v1598_v57, %v1590_v38 }
 0x1b4   :  { %v1776_v21 = vrot.slane %v1772_v4, 2  ;;  %v1777_v23 = vrot.slane %v1773_v3, 2  ;;  %v1615_v24 = vrot.slane %v3530_v10, %v2385_v32  ;;  %v1794_v5 = vstv %s3634_s14 }
 0x1b5   :  { %v1791_v49 = vsel %vm1790_vm5, %v1787_v25, %v1789_v61  ;;  %v1792_v35 = vsel %vm1790_vm5, %v1789_v61, %v1787_v25  ;;  %v1603_v46 = vmul.f32 %v1601_v51, %v2464_v59  ;;  %v1604_v47 = vmul.f32 %v1602_v18, %v2473_v62 }
 0x1b6   :  { %v1780_v45 = vadd.f32 %v1776_v21, %v1768_v0  ;;  %v1781_v28 = vadd.f32 %v1777_v23, %v1769_v50  ;;  %v1799_v52 = vmul.f32 %v1798_v63, %v1791_v49  ;;  %v1800_v7 = vmul.f32 %v1798_v63, %v1792_v35 }
 0x1b7   :  { %v1605_v36 = vadd.f32 %v1603_v46, %v1578_v34  ;;  %v1606_v13 = vadd.f32 %v1604_v47, %v1579_v60  ;;  %v1795_v15 = vmul.f32 %v1794_v5, %v1791_v49  ;;  %v1796_v58 = vmul.f32 %v1794_v5, %v1792_v35 }
 0x1b8   :  { %v1782_v9 = vmul.f32 %v1780_v45, %v2454_v54  ;;  %v1783_v1 = vmul.f32 %v1781_v28, %v2459_v56  ;;  %v1803_v55 = vrot.slane %v1799_v52, 2  ;;  %v1804_v6 = vrot.slane %v1800_v7, 2 }
 0x1b9   :  { %v1618_v29 = vmul.f32 %v1611_v41, %v1605_v36  ;;  %v1619_v39 = vmul.f32 %v1615_v24, %v1606_v13  ;;  %v1817_v54 = vrot.slane %v1623_v43, %v2378_v30  ;;  %v1821_v56 = vrot.slane %v1623_v43, %v2385_v32 }
 0x1ba   :  { %v1784_v33 = vadd.f32 %v1782_v9, %v1757_v17  ;;  %v1785_v19 = vadd.f32 %v1783_v1, %v1758_v8  ;;  %v1807_v31 = vadd.f32 %v1803_v55, %v1795_v15  ;;  %v1808_v22 = vadd.f32 %v1804_v6, %v1796_v58 }
 0x1bb   :  { %v1620_v34 = vadd.f32 %v1618_v29, %v1414_v40  ;;  %v1621_v60 = vadd.f32 %v1619_v39, %v1415_v11 }
 0x1bc   :  { %v1809_v26 = vmul.f32 %v1807_v31, %v2464_v59  ;;  %v1810_v63 = vmul.f32 %v1808_v22, %v2473_v62 }
 0x1be   :  { %v1811_v27 = vadd.f32 %v1809_v26, %v1784_v33  ;;  %v1812_v53 = vadd.f32 %v1810_v63, %v1785_v19 }
 0x1c0   :  { %v1824_v10 = vmul.f32 %v1817_v54, %v1811_v27  ;;  %v1825_v41 = vmul.f32 %v1821_v56, %v1812_v53 }
 0x1c2   :  { %v1826_v12 = vadd.f32 %v1824_v10, %v1620_v34  ;;  %v1827_v20 = vadd.f32 %v1825_v41, %v1621_v60 }
 0x1c4   :  { %v1967_v44 = vmul.f32 -1.442695, %v1826_v12  ;;  %v1968_v37 = vmul.f32 -1.442695, %v1827_v20 }
 0x1c6   :  { %2029 = vpow2.f32 %v1967_v44 }
 0x1c7   :  { %2031 = vpow2.f32 %v1968_v37 }
 0x1d0   :  { %v2030_v40 = vpop.eup %2029 }
 0x1d1   :  { %v2032_v11 = vpop.eup %2031  ;;  %v1834_v42 = vadd.f32 1.0, %v2030_v40 }
 0x1d2   :  { %v1835_v30 = vadd.f32 1.0, %v2032_v11 }
 0x1d3   :  { %2033 = vrcp.f32 %v1834_v42 }
 0x1d4   :  { %2035 = vrcp.f32 %v1835_v30 }
 0x1dd   :  { %v2034_v32 = vpop.eup %2033 }
 0x1de   :  { %v2036_v59 = vpop.eup %2035 }
 0x1df   :  { %v1842_v62 = vcombine.low %v2034_v32, %v2036_v59 }
 0x1e1   :  { %1969 = vst.sshfl [vmem:[#allocation12] sm:$0x33 pattern:$0x76325410] %v1842_v62 }
 0x1e2   :  { %2124 = shalt.err (!%p2121_p3)
}
 0x1e3   :  { %s3854_s26 = sld [smem:[#allocation35_spill]] }
 0x1e9   :  { %s2125_s17 = scalar_lea.hbm %s3854_s26, 64 }
 0x1ea   :  { %p2126_p4 = scmp.ne.s32.totalorder %s3854_s26, %s2125_s17  ;;  %p2129_p5 = scmp.lt.u32.totalorder %s2125_s17, %s3854_s26 }
 0x1ec   :  { %p2131_p6 = pnand %p2129_p5, %p2126_p4 }
 0x1ee   :  { %2134 = shalt.err (!%p2131_p6)
}
 0x1ef   :  { %1861 = dma.vmem_to_hbm [thread:$0]  %s1859_s0, 64, %s3854_s26, [#allocation6]  }
 0x1f0   :  { %2141 = dma.done.wait [#allocation6], 64  }
 0x1f1   :  { %2142 = vsyncadd [#allocation6], 4294967232 }
 0x1f2   :  { %1865 = vsyncpa [#allocation5], 1 }
 0x1f3   :  { %1866 = vsyncpa [#allocation10], 1 }
 0x1f4   :  { %1867 = vsyncpa [#allocation6], 1 }
 0x1f5   :  { %1868 = vsyncpa [#allocation7], 1 }

</bundles_post_ra>
